<compile_context>
chip_gen: v7x
topology: tpu7x:2x2x1
jax: 0.10.0
libtpu: 0.0.40
codegen_flags: <defaults>
</compile_context>

<pallas_src>
import functools
import math

import jax
import jax.numpy as jnp
from jax.experimental import pallas as pl
from jax.experimental.pallas import tpu as pltpu


def _round_up(x, m):
    return (x + m - 1) // m * m


def _pad_dim(d):
    # Feature dims are padded to a multiple of 512 (so tn=512 tiles divide N
    # evenly and each big layer has several N blocks); tiny dims pad to 128.
    return _round_up(d, 512) if d > 128 else _round_up(d, 128)


# ----------------------------- Pallas kernel --------------------------------
# Single-step fused:  out = act( x @ W + b ),  act = LeakyReLU(0.1) / identity.
def _linear_kernel(x_ref, w_ref, b_ref, o_ref, *, apply_act, slope):
    out = jnp.dot(x_ref[...], w_ref[...], preferred_element_type=jnp.float32)
    out = out + b_ref[...]
    if apply_act:
        out = jnp.where(out > 0, out, slope * out)
    o_ref[...] = out.astype(o_ref.dtype)


def fused_linear(x, w, b, *, apply_act, slope=0.1, tn=512):
    """x: [M, K], w: [K, N], b: [1, N].  M % 8 == 0, K % 128 == 0, tn | N."""
    M, K = x.shape
    Kw, N = w.shape
    assert K == Kw and b.shape == (1, N)
    tn = min(tn, N)
    assert M % 8 == 0 and K % 128 == 0 and tn % 128 == 0 and N % tn == 0

    kernel = functools.partial(_linear_kernel, apply_act=apply_act, slope=slope)
    return pl.pallas_call(
        kernel,
        out_shape=jax.ShapeDtypeStruct((M, N), x.dtype),
        grid_spec=pltpu.PrefetchScalarGridSpec(
            num_scalar_prefetch=0,
            grid=(N // tn,),                                   # single N axis
            in_specs=[
                pl.BlockSpec((M, K), lambda j: (0, 0)),        # full x strip
                pl.BlockSpec((K, tn), lambda j: (0, j)),       # full-K weight
                pl.BlockSpec((1, tn), lambda j: (0, j)),       # bias tile
            ],
            out_specs=pl.BlockSpec((M, tn), lambda j: (0, j)),
        ),
        compiler_params=pltpu.CompilerParams(
            dimension_semantics=("parallel",),
            vmem_limit_bytes=32 * 1024 * 1024,
        ),
    )(x, w, b)


# --------------------------- parameter construction -------------------------
def make_params(key, num_blocks, num_classes, latent_dim=None):
    """Builds raw (reference) and pre-padded (kernel) parameters."""
    input_dim = 3 * 32 * 32
    q = 1.0 / math.sqrt(2.0)

    dims = [input_dim]
    for i in range(num_blocks):
        dims.append(int(input_dim * q ** (i + 1)))
    feat_dim = dims[-1] if latent_dim is None else latent_dim
    padded = [_pad_dim(d) for d in dims]

    layers_raw, layers_pad = [], []
    for i in range(num_blocks):
        d_in, d_out = dims[i], dims[i + 1]
        p_in, p_out = padded[i], padded[i + 1]
        key, k1, k2 = jax.random.split(key, 3)
        bound = 1.0 / math.sqrt(d_in)
        W = jax.random.uniform(k1, (d_in, d_out), jnp.float32, -bound, bound)
        bb = jax.random.uniform(k2, (d_out,), jnp.float32, -bound, bound)
        Wp = jnp.zeros((p_in, p_out), jnp.float32).at[:d_in, :d_out].set(W)
        bp = jnp.zeros((1, p_out), jnp.float32).at[0, :d_out].set(bb)
        layers_raw.append((W, bb))
        layers_pad.append((Wp, bp))

    # classifier head
    key, k1, k2 = jax.random.split(key, 3)
    bound = 1.0 / math.sqrt(feat_dim)
    Wc = jax.random.uniform(k1, (feat_dim, num_classes), jnp.float32, -bound, bound)
    bc = jax.random.uniform(k2, (num_classes,), jnp.float32, -bound, bound)
    p_in, p_out = padded[-1], _pad_dim(num_classes)
    Wcp = jnp.zeros((p_in, p_out), jnp.float32).at[:feat_dim, :num_classes].set(Wc)
    bcp = jnp.zeros((1, p_out), jnp.float32).at[0, :num_classes].set(bc)

    return {
        "layers_pad": layers_pad,
        "cls_pad": (Wcp, bcp),
        "layers_raw": layers_raw,
        "cls_raw": (Wc, bc),
        "feat_dim": feat_dim,
        "num_classes": num_classes,
        "in_dim": input_dim,
        "in_dim_pad": padded[0],
    }


# -------------------------------- forward -----------------------------------
def mlp_forward(x_nchw, layers_pad, cls_pad, feat_dim, num_classes, in_dim_pad):
    B = x_nchw.shape[0]
    x = x_nchw.reshape(B, -1).astype(jnp.float32)       # LinearView
    D = x.shape[1]

    Mp = _round_up(B, 8)
    h = jnp.zeros((Mp, in_dim_pad), jnp.float32).at[:B, :D].set(x)

    # feature-extractor blocks: Linear -> Identity(BN) -> LeakyReLU(0.1)
    for Wp, bp in layers_pad:
        h = fused_linear(h, Wp, bp, apply_act=True)

    z = h[:B, :feat_dim]                                 # Identity + 'none' compactifier

    # classifier head (padded h columns / W rows are zero -> exact result)
    Wcp, bcp = cls_pad
    y = fused_linear(h, Wcp, bcp, apply_act=False)
    y_hat = y[:B, :num_classes]
    return y_hat, z


if __name__ == "__main__":
    key = jax.random.PRNGKey(0)
    key, kx = jax.random.split(key)

    B, num_blocks, num_classes = 8, 2, 10
    x = jax.random.normal(kx, (B, 3, 32, 32), jnp.float32)

    params = make_params(key, num_blocks, num_classes)

    y_hat, z = mlp_forward(
        x,
        params["layers_pad"],
        params["cls_pad"],
        params["feat_dim"],
        params["num_classes"],
        params["in_dim_pad"],
    )
    jax.block_until_ready((y_hat, z))

    # pure-JAX reference check (raw, unpadded params)
    h = x.reshape(B, -1)
    for W, bb in params["layers_raw"]:
        h = h @ W + bb
        h = jnp.where(h > 0, h, 0.1 * h)
    z_ref = h
    Wc, bc = params["cls_raw"]
    y_ref = z_ref @ Wc + bc

    assert z.shape == (B, params["feat_dim"]) and y_hat.shape == (B, num_classes)
    assert jnp.allclose(z, z_ref, atol=2e-3, rtol=2e-3)
    assert jnp.allclose(y_hat, y_ref, atol=2e-3, rtol=2e-3)
    print("KERNEL_OK")
</pallas_src>

<mosaic_0001>
module attributes {stable_mosaic.version = 11 : i64} {
  func.func @_linear_kernel(%arg0: i32, %arg1: memref<8x3072xf32, #tpu.memory_space<vmem>>, %arg2: memref<3072x512xf32, #tpu.memory_space<vmem>>, %arg3: memref<1x512xf32, #tpu.memory_space<vmem>>, %arg4: memref<8x512xf32, #tpu.memory_space<vmem>>) attributes {dimension_semantics = [#tpu.dimension_semantics<parallel>], iteration_bounds = array<i64: 5>, scalar_prefetch = 0 : i64, scratch_operands = 0 : i64, tpu.core_type = #tpu.core_type<tc>, window_params = [{pipeline_mode = #tpu.pipeline_mode<synchronous>, transform_indices = @transform_0, window_bounds = array<i64: 8, 3072>}, {transform_indices = @transform_1, window_bounds = array<i64: 3072, 512>}, {transform_indices = @transform_2, window_bounds = array<i64: 1, 512>}, {transform_indices = @transform_3, window_bounds = array<i64: 8, 512>}]} {
    %c0 = arith.constant 0 : index
    %c0_0 = arith.constant 0 : index
    %0 = vector.load %arg1[%c0, %c0_0] : memref<8x3072xf32, #tpu.memory_space<vmem>>, vector<8x3072xf32>
    %c0_1 = arith.constant 0 : index
    %c0_2 = arith.constant 0 : index
    %1 = vector.load %arg2[%c0_1, %c0_2] : memref<3072x512xf32, #tpu.memory_space<vmem>>, vector<3072x512xf32>
    %cst = arith.constant dense<0.000000e+00> : vector<8x512xf32>
    %2 = tpu.matmul %0, %1, %cst {dimension_numbers = #tpu.dot_dimension_numbers<[1], [0], [0], [1], [0, 0, 1, 1], [], []>} : vector<8x3072xf32>, vector<3072x512xf32>, vector<8x512xf32> -> vector<8x512xf32>
    %c0_3 = arith.constant 0 : index
    %c0_4 = arith.constant 0 : index
    %3 = vector.load %arg3[%c0_3, %c0_4] : memref<1x512xf32, #tpu.memory_space<vmem>>, vector<1x512xf32>
    %4 = vector.broadcast %3 : vector<1x512xf32> to vector<8x512xf32>
    %5 = arith.addf %2, %4 : vector<8x512xf32>
    %cst_5 = arith.constant 0.000000e+00 : f32
    %6 = vector.broadcast %cst_5 : f32 to vector<8x512xf32>
    %7 = arith.cmpf ogt, %5, %6 : vector<8x512xf32>
    %cst_6 = arith.constant 1.000000e-01 : f32
    %8 = vector.broadcast %cst_6 : f32 to vector<8x512xf32>
    %9 = arith.mulf %8, %5 : vector<8x512xf32>
    %10 = arith.select %7, %5, %9 : vector<8x512xi1>, vector<8x512xf32>
    %c0_7 = arith.constant 0 : index
    %c0_8 = arith.constant 0 : index
    %11 = vector.load %arg4[%c0_7, %c0_8] : memref<8x512xf32, #tpu.memory_space<vmem>>, vector<8x512xf32>
    tpu.vector_store %arg4[%c0_7, %c0_8], %10 {strides = array<i32>} : memref<8x512xf32, #tpu.memory_space<vmem>>, vector<8x512xf32>,
    return
  }
  func.func @transform_0(%arg0: i32) -> (i32, i32) {
    %c0_i32 = arith.constant 0 : i32
    %c0_i32_0 = arith.constant 0 : i32
    %c0_i32_1 = arith.constant 0 : i32
    return %c0_i32, %c0_i32_0 : i32, i32
  }
  func.func @transform_1(%arg0: i32) -> (i32, i32) {
    %c0_i32 = arith.constant 0 : i32
    %c0_i32_0 = arith.constant 0 : i32
    return %c0_i32, %arg0 : i32, i32
  }
  func.func @transform_2(%arg0: i32) -> (i32, i32) {
    %c0_i32 = arith.constant 0 : i32
    %c0_i32_0 = arith.constant 0 : i32
    return %c0_i32, %arg0 : i32, i32
  }
  func.func @transform_3(%arg0: i32) -> (i32, i32) {
    %c0_i32 = arith.constant 0 : i32
    %c0_i32_0 = arith.constant 0 : i32
    return %c0_i32, %arg0 : i32, i32
  }
}

</mosaic_0001>

<bundles_post_ra>
// kernel: tpu_custom_call.1
= control target key start
LH: loop header
LB: loop body
LE: loop exit
PB: predicated region body
PF: predicated region fallthrough
CT: control target
= control target key end

     0   :  { %8 = vsyncpa [#allocation3], 0  ;;  %s7289_s0 = inlined_call_operand.hbm [shape: f32[8,3072], index: 0, kind: input, shape index: {}]   ;;  %s7290_s1 = inlined_call_operand.hbm [shape: f32[3072,2560], index: 1, kind: input, shape index: {}]   ;;  %s7291_s2 = inlined_call_operand.hbm [shape: f32[1,2560], index: 2, kind: input, shape index: {}]   ;;  %s7292_s3 = inlined_call_operand.hbm [shape: f32[8,2560], index: 3, kind: output, shape index: {}]  }
   0x1   :  { %9 = vsyncpa [#allocation6], 0 }
   0x2   :  { %11 = vsyncpa [#allocation6 + $0x1], 0 }
   0x3   :  { %12 = vsyncpa [#allocation4], 0 }
   0x4   :  { %14 = vsyncpa [#allocation4 + $0x1], 0  ;;  %s5518_s12 = smov 0   ;;  %s5520_s13 = smov 0  }
   0x5   :  { %s5522_s14 = smov 0   ;;  %s5524_s15 = smov 0  }
   0x6 LB: > { %s5539_s16 = sadd.s32 1, %s5489_s15   ;;  %s48_s17 = sadd.s32 1, %s5485_s14  ;;  %s5489_s15 = sphi %s5524_s15, %s7318_s15   ;;  %s5485_s14 = sphi %s5522_s14, %s7317_s14   ;;  %s5481_s13 = sphi %s5520_s13, %s7316_s13   ;;  %s5477_s12 = sphi %s5518_s12, %s7315_s12  }
   0x7   : > { %s45_s18 = ssub.s32 %s5489_s15, %s5539_s16  ;;  %p55_p0 = scmp.ne.s32.totalorder %s5485_s14, %s5481_s13 }
   0x8   : > { %p46_p1 = scmp.eq.s32.totalorder %s45_s18, 0  ;;  %p56_p2 = scmp.eq.s32.totalorder %s5489_s15, 0 }
   0x9   : > { %p5292_p3 = scmp.lt.s32.totalorder %s5489_s15, 5  ;;  %s148_s20 = sand.u32 1, %s5489_s15  }
   0xa   : > { %s5549_s19 = scalar_select %p46_p1, %s5485_s14, %s48_s17  }
   0xb   : > { %p57_p4 = por %p56_p2, %p55_p0  ;;  %s150_s21 = sand.u32 1, %s5485_s14  }
   0xc   : > { %s5264_s22 = smul.u32 12288, %s150_s21  ;;  %s3677_s23 = sshll.u32 %s5489_s15, 9 }
   0xd   : > { %s5562_s26 = scalar_lea.hbm %s7290_s1, %s3677_s23  ;;  %p5564_p5 = pnand %p5292_p3, %p57_p4 }
   0xe   : > { %s152_s28 = scalar_lea.vmem [#allocation5], %s5264_s22  ;;  %s5570_s30 = scalar_lea.sflag [#allocation6], %s148_s20 }
   0xf   : > { %s7300_s27 = scalar_select %p5564_p5, 1, 0 }
  0x10   : > { %s159_s29 = sshll.u32 %s152_s28, 4  ;;  %s5331_s4 = scalar_lea.hbm %s5562_s26, 196608  ;;  %s5568_s29 = int_to_ptr.vmem [resolvable:$true] %s159_s29 }
  0x11   : > { %p5332_p6 = scmp.ne.s32.totalorder %s5562_s26, %s5331_s4  ;;  %p7294_p7 = pneg %p5564_p5 }
  0x12   : > { %s5336_s7 = scalar_lea.hbm %s7290_s1, 983040  ;;  %p5337_p10 = scmp.lt.u32.totalorder %s5562_s26, %s7290_s1 }
  0x13   : > { %p5334_p8 = pnand %p7294_p7, %p5332_p6  ;;  %p5338_p11 = scmp.lt.u32.totalorder %s5336_s7, %s5331_s4 }
  0x14   : > { %p5340_p13 = scmp.lt.u32.totalorder %s5331_s4, %s5562_s26 }
  0x15   : > { %p5335_p9 = pneg %p5334_p8  ;;  %p5339_p12 = por %p5338_p11, %p5337_p10 }
  0x17   : > { %p5341_p1 = por %p5340_p13, %p5339_p12 }
  0x19   : > { %p5342_p2 = pnand %p5341_p1, %p5335_p9 }
  0x1b   : > { %5345 = shalt.err (!%p5342_p2)
}
  0x1c   : > { %s5346_s10 = scalar_lea.vmem %s5568_s29, 196608  ;;  %s5491_s11 = smov [#allocation5]  }
  0x1d   : > { %p5347_p3 = scmp.ne.s32.totalorder %s5568_s29, %s5346_s10  ;;  %s5351_s17 = sshll.u32 %s5491_s11, 4  ;;  %s5352_s17 = int_to_ptr.vmem [resolvable:$false] %s5351_s17 }
  0x1e   : > { %s5353_s18 = scalar_lea.vmem %s5352_s17, 393216  ;;  %p5354_p8 = scmp.lt.s32.totalorder %s5568_s29, %s5352_s17 }
  0x1f   : > { %p5349_p4 = pnand %p5347_p3, %p7294_p7  ;;  %p5355_p10 = scmp.lt.s32.totalorder %s5353_s18, %s5346_s10 }
  0x21   : > { %p5350_p6 = pneg %p5349_p4  ;;  %p5356_p11 = por %p5355_p10, %p5354_p8 }
  0x23   : > { %p5357_p12 = pnand %p5356_p11, %p5350_p6 }
  0x25   : > { %5360 = shalt.err (!%p5357_p12)
}
  0x26   : > { %s5492_s20 = smov 2560   ;;  %s5493_s22 = smov 512  }
  0x27   : > { %s5494_s23 = smov 32   ;;  %s5599_s24 = sadd.s32 4294967295, %s5489_s15  }
  0x28   : > { %5283 = dma.hbm_to_vmem [thread:$0]  (!%p5564_p5), %s5562_s26, 196608, %s5568_s29, %s5570_s30, %s5492_s20, %s5493_s22, %s5494_s23  }
  0x29   : > { %s3659_s25 = sadd.s32 4294967294, %s5489_s15   ;;  %p61_p9 = scmp.ne.s32.totalorder %s5481_s13, %s5477_s12 }
  0x2a   : > { %p7293_p13 = scmp.eq.s32.totalorder %s5599_s24, 0  ;;  %p111_p1 = scmp.eq.s32.totalorder %s5599_s24, 4 }
  0x2b   : > { %p117_p2 = scmp.eq.s32.totalorder %s3659_s25, 4  ;;  %p3660_p3 = scmp.ge.s32.totalorder %s5489_s15, 1 }
  0x2c   : > { %p5609_p4 = por %p7293_p13, %p61_p9  ;;  %p5616_p6 = por %p111_p1, %p55_p0 }
  0x2d   : > { %p5620_p8 = por %p117_p2, %p61_p9  ;;  %p124_p10 = scmp.lt.s32.totalorder %s5489_s15, 6 }
  0x2e   : > { %s7301_s28 = scalar_select %p5609_p4, 1, 0 }
  0x2f   : > { %s7302_s26 = scalar_select %p5616_p6, 1, 0 }
  0x30   : > { %s7303_s29 = scalar_select %p5620_p8, 1, 0 }
  0x31   : > { %p5625_p11 = pnand %p3660_p3, %p124_p10  ;;  %s5495_s5 = smov [#allocation2]  }
  0x32   : > { %s137_s6 = sshll.u32 %s5495_s5, 4  ;;  %s3665_s7 = sshll.u32 %s150_s21, 2  ;;  %s138_s6 = int_to_ptr.vmem [resolvable:$true] %s137_s6 }
  0x33   : > { %s7304_s4 = scalar_select %p5625_p11, 1, 0 }
  0x34   : > { %p5276_p12 = pneg %p5625_p11  ;;  %s3678_s8 = sshll.u32 %s5489_s15, 6 }
  0x35   : > { %s173_s9 = scalar_lea.vmem [#allocation7], %s3665_s7  ;;  %s5643_s20 = scalar_lea.hbm %s7291_s2, %s3678_s8 }
  0x36   : > { %s181_s10 = sshll.u32 %s173_s9, 4  ;;  %p5636_p0 = pnand %p5276_p12, %p7293_p13  ;;  %s5645_s10 = int_to_ptr.vmem [resolvable:$true] %s181_s10 }
  0x37   : > { %s5361_s23 = scalar_lea.hbm %s7289_s0, 3072 }
  0x38   : > { %p5362_p9 = scmp.ne.s32.totalorder %s7289_s0, %s5361_s23  ;;  %p5363_p1 = pneg %p5636_p0 }
  0x39   : > { %p5368_p10 = scmp.lt.u32.totalorder %s5361_s23, %s7289_s0 }
  0x3a   : > { %p5364_p2 = pnand %p5363_p1, %p5362_p9 }
  0x3c   : > { %p5365_p3 = pneg %p5364_p2 }
  0x3e   : > { %p5370_p12 = pnand %p5368_p10, %p5365_p3 }
  0x40   : > { %5373 = shalt.err (!%p5370_p12)
}
  0x41   : > { %s5374_s8 = scalar_lea.vmem %s138_s6, 3072  ;;  %p5382_p6 = scmp.lt.s32.totalorder %s138_s6, %s138_s6 }
  0x42   : > { %p5375_p13 = scmp.ne.s32.totalorder %s138_s6, %s5374_s8  ;;  %p5383_p4 = scmp.lt.s32.totalorder %s5374_s8, %s5374_s8 }
  0x44   : > { %p5377_p7 = pnand %p5375_p13, %p5363_p1  ;;  %p5384_p11 = por %p5383_p4, %p5382_p6 }
  0x46   : > { %p5378_p8 = pneg %p5377_p7 }
  0x48   : > { %p5385_p5 = pnand %p5384_p11, %p5378_p8 }
  0x4a   : > { %5388 = shalt.err (!%p5385_p5)
}
  0x4b   : > { %5279 = dma.hbm_to_vmem [thread:$0]  (!%p5636_p0), %s7289_s0, 3072, %s138_s6, [#allocation3]  }
  0x4c   : > { %s5389_s21 = scalar_lea.hbm %s5643_s20, 64  ;;  %p7306_p13 = scmp.ne.s32.totalorder %s7300_s27, 0 }
  0x4d   : > { %p5390_p9 = scmp.ne.s32.totalorder %s5643_s20, %s5389_s21  ;;  %s5394_s25 = scalar_lea.hbm %s7291_s2, 320 }
  0x4e   : > { %p7307_p7 = pneg %p7306_p13  ;;  %p5395_p5 = scmp.lt.u32.totalorder %s5643_s20, %s7291_s2 }
  0x4f   : > { %p5396_p4 = scmp.lt.u32.totalorder %s5394_s25, %s5389_s21  ;;  %p5398_p8 = scmp.lt.u32.totalorder %s5389_s21, %s5643_s20 }
  0x50   : > { %p5392_p1 = pnand %p5390_p9, %p7307_p7 }
  0x51   : > { %p5397_p6 = por %p5396_p4, %p5395_p5 }
  0x52   : > { %p5393_p2 = pneg %p5392_p1 }
  0x53   : > { %p5399_p11 = por %p5398_p8, %p5397_p6 }
  0x55   : > { %p5400_p3 = pnand %p5399_p11, %p5393_p2 }
  0x57   : > { %5403 = shalt.err (!%p5400_p3)
}
  0x58   : > { %s5404_s6 = scalar_lea.vmem %s5645_s10, 64  ;;  %p7308_p10 = pmov %p7307_p7 }
  0x59   : > { %p5405_p0 = scmp.ne.s32.totalorder %s5645_s10, %s5404_s6  ;;  %s5496_s7 = smov [#allocation7]  }
  0x5a   : > { %s5409_s9 = sshll.u32 %s5496_s7, 4  ;;  %s5410_s9 = int_to_ptr.vmem [resolvable:$false] %s5409_s9 }
  0x5b   : > { %p5407_p12 = pnand %p5405_p0, %p7308_p10  ;;  %s5411_s8 = scalar_lea.vmem %s5410_s9, 128 }
  0x5c   : > { %p5412_p7 = scmp.lt.s32.totalorder %s5645_s10, %s5410_s9  ;;  %p5413_p1 = scmp.lt.s32.totalorder %s5411_s8, %s5404_s6 }
  0x5d   : > { %p5408_p9 = pneg %p5407_p12 }
  0x5e   : > { %p5414_p5 = por %p5413_p1, %p5412_p7 }
  0x60   : > { %p5415_p4 = pnand %p5414_p5, %p5408_p9 }
  0x62   : > { %5418 = shalt.err (!%p5415_p4)
}
  0x63   : > { %5286 = dma.hbm_to_vmem [thread:$0]  (!%p7306_p13), %s5643_s20, 64, %s5645_s10, %s5570_s30  }
  0x64   : > { %p7309_p2 = scmp.ne.s32.totalorder %s7304_s4, 0 }
  0x65   : > { %p7310_p6 = scmp.eq.s32.totalorder (!%p7309_p2), %s5599_s24, 0 }
  0x66   : > { %190 = sbr.rel (%p7309_p2) target bundleno = 1120 (0x460), region = 32 }
  0x6d   : > { %5464 = dma.done.wait (%p7310_p6), [#allocation3], 3072   ;;  %p7311_p8 = pmov %p7310_p6 }
  0x6e   : > { %s196_s17 = sand.u32 1, %s5599_s24   ;;  %s5695_s18 = sand.u32 1, %s5481_s13  }
  0x6f   : > { %5466 = vsyncadd (%p7311_p8), [#allocation3], 4294964224  ;;  %s5265_s27 = smul.u32 12288, %s5695_s18  ;;  %s197_s21 = scalar_lea.sflag [#allocation6], %s196_s17 }
  0x70   : > { %p7312_p13 = scmp.ne.s32.totalorder %s7301_s28, 0 }
  0x71   : > { %s5698_s22 = scalar_lea.vmem [#allocation5], %s5265_s27 }
  0x72   : > { %5468 = dma.done.wait (%p7312_p13), %s197_s21, 196672  }
  0x73   : > { %5470 = vsyncadd (%p7312_p13), %s197_s21, 4294770624  ;;  %v265_v0 = vld [vmem:[%s5698_s22 + $0x8] sm:$0xff]  ;;  %v267_v2 = vld [vmem:[%s5698_s22 + $0x18] sm:$0xff]  ;;  %s3670_s30 = sshll.u32 %s5695_s18, 2  ;;  %s3671_s4 = sshll.u32 %s5695_s18, 5 }
  0x74   : > { %v269_v1 = vld [vmem:[%s5698_s22 + $0x28] sm:$0xff]  ;;  %v271_v4 = vld [vmem:[%s5698_s22 + $0x38] sm:$0xff]  ;;  %v264_v5 = vld [vmem:[%s5698_s22] sm:$0xff]  ;;  %s209_s28 = scalar_lea.vmem [#allocation7], %s3670_s30  ;;  %s3679_s10 = sshll.u32 %s5599_s24, 9 }
  0x75   : > { %v3680_v3 = vpack.c.bf16 %v269_v1, %v265_v0  ;;  %v268_v6 = vld [vmem:[%s5698_s22 + $0x20] sm:$0xff]  ;;  %v4448_v7 = vpack.c.bf16 %v271_v4, %v267_v2  ;;  %v266_v9 = vld [vmem:[%s5698_s22 + $0x10] sm:$0xff]  ;;  %v273_v11 = vld [vmem:[%s5698_s22 + $0x48] sm:$0xff]  ;;  %s236_s20 = scalar_lea.vmem [#allocation8], %s3671_s4  ;;  %s7246_s5 = scalar_lea.hbm %s7292_s3, %s3679_s10 }
  0x76   : > { %v3682_v8 = vpack.c.bf16 %v268_v6, %v264_v5  ;;  %v270_v10 = vld [vmem:[%s5698_s22 + $0x30] sm:$0xff]  ;;  %v277_v13 = vld [vmem:[%s5698_s22 + $0x68] sm:$0xff]  ;;  %v275_v14 = vld [vmem:[%s5698_s22 + $0x58] sm:$0xff]  ;;  %s3557_s23 = sshll.u32 %s236_s20, 4  ;;  %s3543_s24 = scalar_lea.sflag [#allocation4], %s5695_s18  ;;  %s7248_s23 = int_to_ptr.vmem [resolvable:$true] %s3557_s23 }
  0x77   : > { %3681 = vmatprep.subr.bf16.mxu0 %v3680_v3  ;;  %v4450_v12 = vpack.c.bf16 %v270_v10, %v266_v9  ;;  %v279_v15 = vld [vmem:[%s5698_s22 + $0x78] sm:$0xff]  ;;  %4449 = vmatprep.subr.bf16.mxu1 %v4448_v7  ;;  %v3684_v16 = vpack.c.bf16 %v277_v13, %v273_v11  ;;  %v272_v18 = vld [vmem:[%s5698_s22 + $0x40] sm:$0xff]  ;;  %v274_v20 = vld [vmem:[%s5698_s22 + $0x50] sm:$0xff]  ;;  %s5419_s6 = scalar_lea.vmem %s7248_s23, 512  ;;  %p7313_p3 = scmp.ne.s32.totalorder %s7302_s26, 0 }
  0x78   : > { %3683 = vmatpush1.bf16.msra.mxu0 %v3682_v8  ;;  %v4452_v17 = vpack.c.bf16 %v279_v15, %v275_v14  ;;  %v276_v19 = vld [vmem:[%s5698_s22 + $0x60] sm:$0xff]  ;;  %v278_v22 = vld [vmem:[%s5698_s22 + $0x70] sm:$0xff]  ;;  %v281_v23 = vld [vmem:[%s5698_s22 + $0x88] sm:$0xff]  ;;  %p5420_p11 = scmp.ne.s32.totalorder %s7248_s23, %s5419_s6  ;;  %s5497_s7 = smov [#allocation8]  }
  0x79   : > { %4451 = vmatpush1.bf16.msra.mxu1 %v4450_v12  ;;  %v3686_v21 = vpack.c.bf16 %v276_v19, %v272_v18  ;;  %v285_v24 = vld [vmem:[%s5698_s22 + $0xa8] sm:$0xff]  ;;  %3685 = vmatprep.subr.bf16.mxu0 %v3684_v16  ;;  %v4454_v25 = vpack.c.bf16 %v278_v22, %v274_v20  ;;  %v283_v27 = vld [vmem:[%s5698_s22 + $0x98] sm:$0xff]  ;;  %v280_v29 = vld [vmem:[%s5698_s22 + $0x80] sm:$0xff]  ;;  %s5423_s9 = sshll.u32 %s5497_s7, 4  ;;  %s5424_s9 = int_to_ptr.vmem [resolvable:$false] %s5423_s9 }
  0x7a   : > { %4453 = vmatprep.subr.bf16.mxu1 %v4452_v17  ;;  %v3688_v26 = vpack.c.bf16 %v285_v24, %v281_v23  ;;  %v287_v28 = vld [vmem:[%s5698_s22 + $0xb8] sm:$0xff]  ;;  %v284_v31 = vld [vmem:[%s5698_s22 + $0xa0] sm:$0xff]  ;;  %v282_v32 = vld [vmem:[%s5698_s22 + $0x90] sm:$0xff]  ;;  %p5421_p0 = pnand %p5420_p11, %p7313_p3  ;;  %s5425_s8 = scalar_lea.vmem %s5424_s9, 1024 }
  0x7b   : > { %v4456_v30 = vpack.c.bf16 %v287_v28, %v283_v27  ;;  %v286_v33 = vld [vmem:[%s5698_s22 + $0xb0] sm:$0xff]  ;;  %v3690_v34 = vpack.c.bf16 %v284_v31, %v280_v29  ;;  %v289_v35 = vld [vmem:[%s5698_s22 + $0xc8] sm:$0xff]  ;;  %v291_v37 = vld [vmem:[%s5698_s22 + $0xd8] sm:$0xff]  ;;  %p5426_p12 = scmp.lt.s32.totalorder %s7248_s23, %s5424_s9  ;;  %p5427_p9 = scmp.lt.s32.totalorder %s5425_s8, %s5419_s6 }
  0x7c   : > { %3687 = vmatpush1.bf16.msra.mxu0 %v3686_v21  ;;  %v293_v36 = vld [vmem:[%s5698_s22 + $0xe8] sm:$0xff]  ;;  %v4458_v38 = vpack.c.bf16 %v286_v33, %v282_v32  ;;  %v295_v40 = vld [vmem:[%s5698_s22 + $0xf8] sm:$0xff]  ;;  %v288_v41 = vld [vmem:[%s5698_s22 + $0xc0] sm:$0xff]  ;;  %p5422_p10 = pneg %p5421_p0 }
  0x7d   : > { %4455 = vmatpush1.bf16.msra.mxu1 %v4454_v25  ;;  %3689 = vmatprep.subr.bf16.mxu0 %v3688_v26  ;;  %v3692_v39 = vpack.c.bf16 %v293_v36, %v289_v35  ;;  %v292_v42 = vld [vmem:[%s5698_s22 + $0xe0] sm:$0xff]  ;;  %v4460_v43 = vpack.c.bf16 %v295_v40, %v291_v37  ;;  %v290_v44 = vld [vmem:[%s5698_s22 + $0xd0] sm:$0xff]  ;;  %v297_v46 = vld [vmem:[%s5698_s22 + $0x108] sm:$0xff]  ;;  %p5428_p7 = por %p5427_p9, %p5426_p12 }
  0x7e   : > { %4457 = vmatprep.subr.bf16.mxu1 %v4456_v30  ;;  %v294_v45 = vld [vmem:[%s5698_s22 + $0xf0] sm:$0xff]  ;;  %v301_v47 = vld [vmem:[%s5698_s22 + $0x128] sm:$0xff]  ;;  %v299_v48 = vld [vmem:[%s5698_s22 + $0x118] sm:$0xff]  ;;  %v3694_v50 = vpack.c.bf16 %v292_v42, %v288_v41 }
  0x7f   : > { %v303_v49 = vld [vmem:[%s5698_s22 + $0x138] sm:$0xff]  ;;  %v4462_v51 = vpack.c.bf16 %v294_v45, %v290_v44  ;;  %v3696_v52 = vpack.c.bf16 %v301_v47, %v297_v46  ;;  %v296_v53 = vld [vmem:[%s5698_s22 + $0x100] sm:$0xff]  ;;  %v298_v55 = vld [vmem:[%s5698_s22 + $0x110] sm:$0xff]  ;;  %p5429_p1 = pnand %p5428_p7, %p5422_p10 }
  0x80   : > { %3691 = vmatpush1.bf16.msra.mxu0 %v3690_v34  ;;  %v300_v54 = vld [vmem:[%s5698_s22 + $0x120] sm:$0xff]  ;;  %v4464_v56 = vpack.c.bf16 %v303_v49, %v299_v48  ;;  %v302_v57 = vld [vmem:[%s5698_s22 + $0x130] sm:$0xff]  ;;  %v305_v58 = vld [vmem:[%s5698_s22 + $0x148] sm:$0xff] }
  0x81   : > { %4459 = vmatpush1.bf16.msra.mxu1 %v4458_v38  ;;  %3693 = vmatprep.subr.bf16.mxu0 %v3692_v39  ;;  %v309_v59 = vld [vmem:[%s5698_s22 + $0x168] sm:$0xff]  ;;  %v307_v60 = vld [vmem:[%s5698_s22 + $0x158] sm:$0xff]  ;;  %v3698_v62 = vpack.c.bf16 %v300_v54, %v296_v53  ;;  %v4466_v63 = vpack.c.bf16 %v302_v57, %v298_v55  ;;  %v304_v1 = vld [vmem:[%s5698_s22 + $0x140] sm:$0xff] }
  0x82   : > { %4461 = vmatprep.subr.bf16.mxu1 %v4460_v43  ;;  %v311_v61 = vld [vmem:[%s5698_s22 + $0x178] sm:$0xff]  ;;  %v3700_v0 = vpack.c.bf16 %v309_v59, %v305_v58  ;;  %v308_v2 = vld [vmem:[%s5698_s22 + $0x160] sm:$0xff]  ;;  %v306_v3 = vld [vmem:[%s5698_s22 + $0x150] sm:$0xff] }
  0x83   : > { %v4468_v4 = vpack.c.bf16 %v311_v61, %v307_v60  ;;  %v310_v5 = vld [vmem:[%s5698_s22 + $0x170] sm:$0xff]  ;;  %v313_v6 = vld [vmem:[%s5698_s22 + $0x188] sm:$0xff]  ;;  %v315_v8 = vld [vmem:[%s5698_s22 + $0x198] sm:$0xff]  ;;  %v3702_v10 = vpack.c.bf16 %v308_v2, %v304_v1 }
  0x84   : > { %3695 = vmatpush1.bf16.msra.mxu0 %v3694_v50  ;;  %v317_v7 = vld [vmem:[%s5698_s22 + $0x1a8] sm:$0xff]  ;;  %v319_v9 = vld [vmem:[%s5698_s22 + $0x1b8] sm:$0xff]  ;;  %v4470_v11 = vpack.c.bf16 %v310_v5, %v306_v3  ;;  %v312_v13 = vld [vmem:[%s5698_s22 + $0x180] sm:$0xff] }
  0x85   : > { %4463 = vmatpush1.bf16.msra.mxu1 %v4462_v51  ;;  %3697 = vmatprep.subr.bf16.mxu0 %v3696_v52  ;;  %v3704_v12 = vpack.c.bf16 %v317_v7, %v313_v6  ;;  %v316_v14 = vld [vmem:[%s5698_s22 + $0x1a0] sm:$0xff]  ;;  %v314_v15 = vld [vmem:[%s5698_s22 + $0x190] sm:$0xff]  ;;  %v4472_v16 = vpack.c.bf16 %v319_v9, %v315_v8  ;;  %v321_v18 = vld [vmem:[%s5698_s22 + $0x1c8] sm:$0xff] }
  0x86   : > { %4465 = vmatprep.subr.bf16.mxu1 %v4464_v56  ;;  %v318_v17 = vld [vmem:[%s5698_s22 + $0x1b0] sm:$0xff]  ;;  %v325_v19 = vld [vmem:[%s5698_s22 + $0x1e8] sm:$0xff]  ;;  %v323_v20 = vld [vmem:[%s5698_s22 + $0x1d8] sm:$0xff]  ;;  %v3706_v22 = vpack.c.bf16 %v316_v14, %v312_v13 }
  0x87   : > { %v327_v21 = vld [vmem:[%s5698_s22 + $0x1f8] sm:$0xff]  ;;  %v4474_v23 = vpack.c.bf16 %v318_v17, %v314_v15  ;;  %v3708_v24 = vpack.c.bf16 %v325_v19, %v321_v18  ;;  %v320_v25 = vld [vmem:[%s5698_s22 + $0x1c0] sm:$0xff]  ;;  %v322_v27 = vld [vmem:[%s5698_s22 + $0x1d0] sm:$0xff] }
  0x88   : > { %3699 = vmatpush1.bf16.msra.mxu0 %v3698_v62  ;;  %v324_v26 = vld [vmem:[%s5698_s22 + $0x1e0] sm:$0xff]  ;;  %v4476_v28 = vpack.c.bf16 %v327_v21, %v323_v20  ;;  %v326_v29 = vld [vmem:[%s5698_s22 + $0x1f0] sm:$0xff]  ;;  %v329_v30 = vld [vmem:[%s5698_s22 + $0x208] sm:$0xff] }
  0x89   : > { %4467 = vmatpush1.bf16.msra.mxu1 %v4466_v63  ;;  %3701 = vmatprep.subr.bf16.mxu0 %v3700_v0  ;;  %v333_v31 = vld [vmem:[%s5698_s22 + $0x228] sm:$0xff]  ;;  %v331_v32 = vld [vmem:[%s5698_s22 + $0x218] sm:$0xff]  ;;  %v3710_v34 = vpack.c.bf16 %v324_v26, %v320_v25  ;;  %v4478_v35 = vpack.c.bf16 %v326_v29, %v322_v27  ;;  %v328_v37 = vld [vmem:[%s5698_s22 + $0x200] sm:$0xff] }
  0x8a   : > { %4469 = vmatprep.subr.bf16.mxu1 %v4468_v4  ;;  %v335_v33 = vld [vmem:[%s5698_s22 + $0x238] sm:$0xff]  ;;  %v3712_v36 = vpack.c.bf16 %v333_v31, %v329_v30  ;;  %v332_v38 = vld [vmem:[%s5698_s22 + $0x220] sm:$0xff]  ;;  %v330_v39 = vld [vmem:[%s5698_s22 + $0x210] sm:$0xff] }
  0x8b   : > { %v4480_v40 = vpack.c.bf16 %v335_v33, %v331_v32  ;;  %v334_v41 = vld [vmem:[%s5698_s22 + $0x230] sm:$0xff]  ;;  %v337_v42 = vld [vmem:[%s5698_s22 + $0x248] sm:$0xff]  ;;  %v339_v44 = vld [vmem:[%s5698_s22 + $0x258] sm:$0xff]  ;;  %v3714_v46 = vpack.c.bf16 %v332_v38, %v328_v37 }
  0x8c   : > { %3703 = vmatpush1.bf16.msra.mxu0 %v3702_v10  ;;  %v341_v43 = vld [vmem:[%s5698_s22 + $0x268] sm:$0xff]  ;;  %v343_v45 = vld [vmem:[%s5698_s22 + $0x278] sm:$0xff]  ;;  %v4482_v47 = vpack.c.bf16 %v334_v41, %v330_v39  ;;  %v336_v49 = vld [vmem:[%s5698_s22 + $0x240] sm:$0xff] }
  0x8d   : > { %4471 = vmatpush1.bf16.msra.mxu1 %v4470_v11  ;;  %3705 = vmatprep.subr.bf16.mxu0 %v3704_v12  ;;  %v3716_v48 = vpack.c.bf16 %v341_v43, %v337_v42  ;;  %v340_v50 = vld [vmem:[%s5698_s22 + $0x260] sm:$0xff]  ;;  %v338_v51 = vld [vmem:[%s5698_s22 + $0x250] sm:$0xff]  ;;  %v4484_v52 = vpack.c.bf16 %v343_v45, %v339_v44  ;;  %v345_v54 = vld [vmem:[%s5698_s22 + $0x288] sm:$0xff] }
  0x8e   : > { %4473 = vmatprep.subr.bf16.mxu1 %v4472_v16  ;;  %v342_v53 = vld [vmem:[%s5698_s22 + $0x270] sm:$0xff]  ;;  %v349_v55 = vld [vmem:[%s5698_s22 + $0x2a8] sm:$0xff]  ;;  %v347_v56 = vld [vmem:[%s5698_s22 + $0x298] sm:$0xff]  ;;  %v3718_v58 = vpack.c.bf16 %v340_v50, %v336_v49 }
  0x8f   : > { %v351_v57 = vld [vmem:[%s5698_s22 + $0x2b8] sm:$0xff]  ;;  %v4486_v59 = vpack.c.bf16 %v342_v53, %v338_v51  ;;  %v3720_v60 = vpack.c.bf16 %v349_v55, %v345_v54  ;;  %v344_v61 = vld [vmem:[%s5698_s22 + $0x280] sm:$0xff]  ;;  %v346_v63 = vld [vmem:[%s5698_s22 + $0x290] sm:$0xff] }
  0x90   : > { %3707 = vmatpush1.bf16.msra.mxu0 %v3706_v22  ;;  %v348_v62 = vld [vmem:[%s5698_s22 + $0x2a0] sm:$0xff]  ;;  %v4488_v0 = vpack.c.bf16 %v351_v57, %v347_v56  ;;  %v350_v1 = vld [vmem:[%s5698_s22 + $0x2b0] sm:$0xff]  ;;  %v353_v2 = vld [vmem:[%s5698_s22 + $0x2c8] sm:$0xff] }
  0x91   : > { %4475 = vmatpush1.bf16.msra.mxu1 %v4474_v23  ;;  %3709 = vmatprep.subr.bf16.mxu0 %v3708_v24  ;;  %v357_v3 = vld [vmem:[%s5698_s22 + $0x2e8] sm:$0xff]  ;;  %v355_v4 = vld [vmem:[%s5698_s22 + $0x2d8] sm:$0xff]  ;;  %v3722_v6 = vpack.c.bf16 %v348_v62, %v344_v61  ;;  %v352_v7 = vld [vmem:[%s5698_s22 + $0x2c0] sm:$0xff]  ;;  %v4490_v8 = vpack.c.bf16 %v350_v1, %v346_v63 }
  0x92   : > { %4477 = vmatprep.subr.bf16.mxu1 %v4476_v28  ;;  %v359_v5 = vld [vmem:[%s5698_s22 + $0x2f8] sm:$0xff]  ;;  %v3724_v9 = vpack.c.bf16 %v357_v3, %v353_v2  ;;  %v356_v10 = vld [vmem:[%s5698_s22 + $0x2e0] sm:$0xff]  ;;  %v354_v11 = vld [vmem:[%s5698_s22 + $0x2d0] sm:$0xff] }
  0x93   : > { %v358_v12 = vld [vmem:[%s5698_s22 + $0x2f0] sm:$0xff]  ;;  %v4492_v13 = vpack.c.bf16 %v359_v5, %v355_v4  ;;  %v361_v14 = vld [vmem:[%s5698_s22 + $0x308] sm:$0xff]  ;;  %v363_v17 = vld [vmem:[%s5698_s22 + $0x318] sm:$0xff]  ;;  %v3726_v19 = vpack.c.bf16 %v356_v10, %v352_v7 }
  0x94   : > { %3711 = vmatpush1.bf16.msra.mxu0 %v3710_v34  ;;  %v365_v15 = vld [vmem:[%s5698_s22 + $0x328] sm:$0xff]  ;;  %v367_v18 = vld [vmem:[%s5698_s22 + $0x338] sm:$0xff]  ;;  %v4494_v20 = vpack.c.bf16 %v358_v12, %v354_v11  ;;  %v360_v22 = vld [vmem:[%s5698_s22 + $0x300] sm:$0xff] }
  0x95   : > { %4479 = vmatpush1.bf16.msra.mxu1 %v4478_v35  ;;  %3713 = vmatprep.subr.bf16.mxu0 %v3712_v36  ;;  %v241_v16 = vld [vmem:[#allocation2 + $0x8] sm:$0xff]  ;;  %v3728_v21 = vpack.c.bf16 %v365_v15, %v361_v14  ;;  %v364_v23 = vld [vmem:[%s5698_s22 + $0x320] sm:$0xff]  ;;  %v362_v24 = vld [vmem:[%s5698_s22 + $0x310] sm:$0xff]  ;;  %v4496_v25 = vpack.c.bf16 %v367_v18, %v363_v17 }
  0x96   : > { %4481 = vmatprep.subr.bf16.mxu1 %v4480_v40  ;;  %1886 = vmatprep.mubr.f32.mxu0 %v241_v16  ;;  %v366_v26 = vld [vmem:[%s5698_s22 + $0x330] sm:$0xff]  ;;  %v369_v27 = vld [vmem:[%s5698_s22 + $0x348] sm:$0xff]  ;;  %v371_v29 = vld [vmem:[%s5698_s22 + $0x358] sm:$0xff]  ;;  %v3730_v31 = vpack.c.bf16 %v364_v23, %v360_v22 }
  0x97   : > { %2738 = vmatprep.mubr.f32.mxu1 %v241_v16  ;;  %v373_v28 = vld [vmem:[%s5698_s22 + $0x368] sm:$0xff]  ;;  %v375_v30 = vld [vmem:[%s5698_s22 + $0x378] sm:$0xff]  ;;  %v4498_v32 = vpack.c.bf16 %v366_v26, %v362_v24  ;;  %v368_v34 = vld [vmem:[%s5698_s22 + $0x340] sm:$0xff] }
  0x98   : > { %3715 = vmatpush1.bf16.msra.mxu0 %v3714_v46  ;;  %v3732_v33 = vpack.c.bf16 %v373_v28, %v369_v27  ;;  %v372_v35 = vld [vmem:[%s5698_s22 + $0x360] sm:$0xff]  ;;  %v370_v36 = vld [vmem:[%s5698_s22 + $0x350] sm:$0xff]  ;;  %v4500_v37 = vpack.c.bf16 %v375_v30, %v371_v29  ;;  %v377_v39 = vld [vmem:[%s5698_s22 + $0x388] sm:$0xff] }
  0x99   : > { %4483 = vmatpush1.bf16.msra.mxu1 %v4482_v47  ;;  %3717 = vmatprep.subr.bf16.mxu0 %v3716_v48  ;;  %v374_v38 = vld [vmem:[%s5698_s22 + $0x370] sm:$0xff]  ;;  %v381_v40 = vld [vmem:[%s5698_s22 + $0x3a8] sm:$0xff]  ;;  %v379_v41 = vld [vmem:[%s5698_s22 + $0x398] sm:$0xff]  ;;  %v3734_v43 = vpack.c.bf16 %v372_v35, %v368_v34 }
  0x9a   : > { %4485 = vmatprep.subr.bf16.mxu1 %v4484_v52  ;;  %v383_v42 = vld [vmem:[%s5698_s22 + $0x3b8] sm:$0xff]  ;;  %v4502_v44 = vpack.c.bf16 %v374_v38, %v370_v36  ;;  %v3736_v45 = vpack.c.bf16 %v381_v40, %v377_v39  ;;  %v376_v46 = vld [vmem:[%s5698_s22 + $0x380] sm:$0xff]  ;;  %v378_v48 = vld [vmem:[%s5698_s22 + $0x390] sm:$0xff] }
  0x9b   : > { %v380_v47 = vld [vmem:[%s5698_s22 + $0x3a0] sm:$0xff]  ;;  %v4504_v49 = vpack.c.bf16 %v383_v42, %v379_v41  ;;  %v382_v50 = vld [vmem:[%s5698_s22 + $0x3b0] sm:$0xff]  ;;  %v385_v51 = vld [vmem:[%s5698_s22 + $0x3c8] sm:$0xff] }
  0x9c   : > { %3719 = vmatpush1.bf16.msra.mxu0 %v3718_v58  ;;  %v389_v52 = vld [vmem:[%s5698_s22 + $0x3e8] sm:$0xff]  ;;  %v387_v53 = vld [vmem:[%s5698_s22 + $0x3d8] sm:$0xff]  ;;  %v3738_v55 = vpack.c.bf16 %v380_v47, %v376_v46  ;;  %v4506_v56 = vpack.c.bf16 %v382_v50, %v378_v48  ;;  %v384_v58 = vld [vmem:[%s5698_s22 + $0x3c0] sm:$0xff] }
  0x9d   : > { %4487 = vmatpush1.bf16.msra.mxu1 %v4486_v59  ;;  %3721 = vmatprep.subr.bf16.mxu0 %v3720_v60  ;;  %v391_v54 = vld [vmem:[%s5698_s22 + $0x3f8] sm:$0xff]  ;;  %v3740_v57 = vpack.c.bf16 %v389_v52, %v385_v51  ;;  %v388_v59 = vld [vmem:[%s5698_s22 + $0x3e0] sm:$0xff]  ;;  %v386_v60 = vld [vmem:[%s5698_s22 + $0x3d0] sm:$0xff] }
  0x9e   : > { %4489 = vmatprep.subr.bf16.mxu1 %v4488_v0  ;;  %v4508_v61 = vpack.c.bf16 %v391_v54, %v387_v53  ;;  %v390_v62 = vld [vmem:[%s5698_s22 + $0x3f0] sm:$0xff]  ;;  %v393_v63 = vld [vmem:[%s5698_s22 + $0x408] sm:$0xff]  ;;  %v395_v1 = vld [vmem:[%s5698_s22 + $0x418] sm:$0xff]  ;;  %v3742_v3 = vpack.c.bf16 %v388_v59, %v384_v58 }
  0x9f   : > { %v397_v0 = vld [vmem:[%s5698_s22 + $0x428] sm:$0xff]  ;;  %v399_v2 = vld [vmem:[%s5698_s22 + $0x438] sm:$0xff]  ;;  %v4510_v4 = vpack.c.bf16 %v390_v62, %v386_v60  ;;  %v396_v7 = vld [vmem:[%s5698_s22 + $0x420] sm:$0xff] }
  0xa0   : > { %3723 = vmatpush1.bf16.msra.mxu0 %v3722_v6  ;;  %v3744_v5 = vpack.c.bf16 %v397_v0, %v393_v63  ;;  %v392_v6 = vld [vmem:[%s5698_s22 + $0x400] sm:$0xff]  ;;  %v398_v10 = vld [vmem:[%s5698_s22 + $0x430] sm:$0xff]  ;;  %v401_v11 = vld [vmem:[%s5698_s22 + $0x448] sm:$0xff] }
  0xa1   : > { %4491 = vmatpush1.bf16.msra.mxu1 %v4490_v8  ;;  %3725 = vmatprep.subr.bf16.mxu0 %v3724_v9  ;;  %v394_v8 = vld [vmem:[%s5698_s22 + $0x410] sm:$0xff]  ;;  %v4512_v9 = vpack.c.bf16 %v399_v2, %v395_v1  ;;  %v405_v12 = vld [vmem:[%s5698_s22 + $0x468] sm:$0xff]  ;;  %v407_v14 = vld [vmem:[%s5698_s22 + $0x478] sm:$0xff]  ;;  %v3746_v16 = vpack.c.bf16 %v396_v7, %v392_v6 }
  0xa2   : > { %4493 = vmatprep.subr.bf16.mxu1 %v4492_v13  ;;  %v403_v13 = vld [vmem:[%s5698_s22 + $0x458] sm:$0xff]  ;;  %v240_v15 = vld [vmem:[#allocation2] sm:$0xff]  ;;  %v4514_v17 = vpack.c.bf16 %v398_v10, %v394_v8  ;;  %v3748_v18 = vpack.c.bf16 %v405_v12, %v401_v11  ;;  %v406_v23 = vld [vmem:[%s5698_s22 + $0x470] sm:$0xff] }
  0xa3   : > { %v4516_v22 = vpack.c.bf16 %v407_v14, %v403_v13  ;;  %v409_v24 = vld [vmem:[%s5698_s22 + $0x488] sm:$0xff]  ;;  %v411_v26 = vld [vmem:[%s5698_s22 + $0x498] sm:$0xff]  ;;  %v414_v35 = vld [vmem:[%s5698_s22 + $0x4b0] sm:$0xff] }
  0xa4   : > { %3727 = vmatpush1.bf16.msra.mxu0 %v3726_v19  ;;  %v400_v19 = vld [vmem:[%s5698_s22 + $0x440] sm:$0xff]  ;;  %v415_v27 = vld [vmem:[%s5698_s22 + $0x4b8] sm:$0xff]  ;;  %v417_v36 = vld [vmem:[%s5698_s22 + $0x4c8] sm:$0xff] }
  0xa5   : > { %4495 = vmatpush1.bf16.msra.mxu1 %v4494_v20  ;;  %3729 = vmatprep.subr.bf16.mxu0 %v3728_v21  ;;  %v404_v20 = vld [vmem:[%s5698_s22 + $0x460] sm:$0xff]  ;;  %v402_v21 = vld [vmem:[%s5698_s22 + $0x450] sm:$0xff]  ;;  %v4520_v34 = vpack.c.bf16 %v415_v27, %v411_v26  ;;  %v419_v38 = vld [vmem:[%s5698_s22 + $0x4d8] sm:$0xff] }
  0xa6   : > { %4497 = vmatprep.subr.bf16.mxu1 %v4496_v25  ;;  %v413_v25 = vld [vmem:[%s5698_s22 + $0x4a8] sm:$0xff]  ;;  %v3750_v28 = vpack.c.bf16 %v404_v20, %v400_v19  ;;  %v4518_v29 = vpack.c.bf16 %v406_v23, %v402_v21  ;;  %v423_v39 = vld [vmem:[%s5698_s22 + $0x4f8] sm:$0xff]  ;;  %v422_v47 = vld [vmem:[%s5698_s22 + $0x4f0] sm:$0xff] }
  0xa7   : > { %v3752_v30 = vpack.c.bf16 %v413_v25, %v409_v24  ;;  %v4524_v46 = vpack.c.bf16 %v423_v39, %v419_v38  ;;  %v425_v48 = vld [vmem:[%s5698_s22 + $0x508] sm:$0xff]  ;;  %v427_v50 = vld [vmem:[%s5698_s22 + $0x518] sm:$0xff]  ;;  %v430_v59 = vld [vmem:[%s5698_s22 + $0x530] sm:$0xff] }
  0xa8   : > { %3731 = vmatpush1.bf16.msra.mxu0 %v3730_v31  ;;  %v408_v31 = vld [vmem:[%s5698_s22 + $0x480] sm:$0xff]  ;;  %v431_v51 = vld [vmem:[%s5698_s22 + $0x538] sm:$0xff]  ;;  %v433_v60 = vld [vmem:[%s5698_s22 + $0x548] sm:$0xff] }
  0xa9   : > { %4499 = vmatpush1.bf16.msra.mxu1 %v4498_v32  ;;  %3733 = vmatprep.subr.bf16.mxu0 %v3732_v33  ;;  %v412_v32 = vld [vmem:[%s5698_s22 + $0x4a0] sm:$0xff]  ;;  %v410_v33 = vld [vmem:[%s5698_s22 + $0x490] sm:$0xff]  ;;  %v4528_v58 = vpack.c.bf16 %v431_v51, %v427_v50  ;;  %v435_v62 = vld [vmem:[%s5698_s22 + $0x558] sm:$0xff] }
  0xaa   : > { %4501 = vmatprep.subr.bf16.mxu1 %v4500_v37  ;;  %v421_v37 = vld [vmem:[%s5698_s22 + $0x4e8] sm:$0xff]  ;;  %v3754_v40 = vpack.c.bf16 %v412_v32, %v408_v31  ;;  %v4522_v41 = vpack.c.bf16 %v414_v35, %v410_v33  ;;  %v439_v63 = vld [vmem:[%s5698_s22 + $0x578] sm:$0xff]  ;;  %v438_v7 = vld [vmem:[%s5698_s22 + $0x570] sm:$0xff] }
  0xab   : > { %v3756_v42 = vpack.c.bf16 %v421_v37, %v417_v36  ;;  %v4532_v6 = vpack.c.bf16 %v439_v63, %v435_v62  ;;  %v441_v8 = vld [vmem:[%s5698_s22 + $0x588] sm:$0xff]  ;;  %v443_v10 = vld [vmem:[%s5698_s22 + $0x598] sm:$0xff]  ;;  %v440_v13 = vld [vmem:[%s5698_s22 + $0x580] sm:$0xff] }
  0xac   : > { %3735 = vmatpush1.bf16.msra.mxu0 %v3734_v43  ;;  %v416_v43 = vld [vmem:[%s5698_s22 + $0x4c0] sm:$0xff]  ;;  %v447_v11 = vld [vmem:[%s5698_s22 + $0x5b8] sm:$0xff]  ;;  %v449_v20 = vld [vmem:[%s5698_s22 + $0x5c8] sm:$0xff] }
  0xad   : > { %4503 = vmatpush1.bf16.msra.mxu1 %v4502_v44  ;;  %3737 = vmatprep.subr.bf16.mxu0 %v3736_v45  ;;  %v420_v44 = vld [vmem:[%s5698_s22 + $0x4e0] sm:$0xff]  ;;  %v418_v45 = vld [vmem:[%s5698_s22 + $0x4d0] sm:$0xff]  ;;  %v4536_v19 = vpack.c.bf16 %v447_v11, %v443_v10  ;;  %v453_v21 = vld [vmem:[%s5698_s22 + $0x5e8] sm:$0xff] }
  0xae   : > { %4505 = vmatprep.subr.bf16.mxu1 %v4504_v49  ;;  %v429_v49 = vld [vmem:[%s5698_s22 + $0x528] sm:$0xff]  ;;  %v3758_v52 = vpack.c.bf16 %v420_v44, %v416_v43  ;;  %v4526_v53 = vpack.c.bf16 %v422_v47, %v418_v45  ;;  %v451_v23 = vld [vmem:[%s5698_s22 + $0x5d8] sm:$0xff]  ;;  %v3772_v27 = vpack.c.bf16 %v453_v21, %v449_v20  ;;  %v454_v32 = vld [vmem:[%s5698_s22 + $0x5f0] sm:$0xff] }
  0xaf   : > { %v3760_v54 = vpack.c.bf16 %v429_v49, %v425_v48  ;;  %v455_v24 = vld [vmem:[%s5698_s22 + $0x5f8] sm:$0xff]  ;;  %v457_v33 = vld [vmem:[%s5698_s22 + $0x608] sm:$0xff]  ;;  %v462_v44 = vld [vmem:[%s5698_s22 + $0x630] sm:$0xff] }
  0xb0   : > { %3739 = vmatpush1.bf16.msra.mxu0 %v3738_v55  ;;  %v424_v55 = vld [vmem:[%s5698_s22 + $0x500] sm:$0xff]  ;;  %v4540_v31 = vpack.c.bf16 %v455_v24, %v451_v23  ;;  %v459_v35 = vld [vmem:[%s5698_s22 + $0x618] sm:$0xff]  ;;  %v465_v45 = vld [vmem:[%s5698_s22 + $0x648] sm:$0xff] }
  0xb1   : > { %4507 = vmatpush1.bf16.msra.mxu1 %v4506_v56  ;;  %3741 = vmatprep.subr.bf16.mxu0 %v3740_v57  ;;  %v428_v56 = vld [vmem:[%s5698_s22 + $0x520] sm:$0xff]  ;;  %v426_v57 = vld [vmem:[%s5698_s22 + $0x510] sm:$0xff]  ;;  %v463_v36 = vld [vmem:[%s5698_s22 + $0x638] sm:$0xff] }
  0xb2   : > { %4509 = vmatprep.subr.bf16.mxu1 %v4508_v61  ;;  %v437_v61 = vld [vmem:[%s5698_s22 + $0x568] sm:$0xff]  ;;  %v3762_v0 = vpack.c.bf16 %v428_v56, %v424_v55  ;;  %v4530_v1 = vpack.c.bf16 %v430_v59, %v426_v57  ;;  %v4544_v43 = vpack.c.bf16 %v463_v36, %v459_v35  ;;  %v467_v47 = vld [vmem:[%s5698_s22 + $0x658] sm:$0xff]  ;;  %v470_v56 = vld [vmem:[%s5698_s22 + $0x670] sm:$0xff] }
  0xb3   : > { %v3764_v2 = vpack.c.bf16 %v437_v61, %v433_v60  ;;  %v471_v48 = vld [vmem:[%s5698_s22 + $0x678] sm:$0xff]  ;;  %v473_v57 = vld [vmem:[%s5698_s22 + $0x688] sm:$0xff]  ;;  %v488_v24 = vld [vmem:[%s5698_s22 + $0x700] sm:$0xff] }
  0xb4   : > { %3743 = vmatpush1.bf16.msra.mxu0 %v3742_v3  ;;  %v432_v3 = vld [vmem:[%s5698_s22 + $0x540] sm:$0xff]  ;;  %v4548_v55 = vpack.c.bf16 %v471_v48, %v467_v47  ;;  %v475_v59 = vld [vmem:[%s5698_s22 + $0x698] sm:$0xff] }
  0xb5   : > { %4511 = vmatpush1.bf16.msra.mxu1 %v4510_v4  ;;  %3745 = vmatprep.subr.bf16.mxu0 %v3744_v5  ;;  %v436_v4 = vld [vmem:[%s5698_s22 + $0x560] sm:$0xff]  ;;  %v434_v5 = vld [vmem:[%s5698_s22 + $0x550] sm:$0xff]  ;;  %v479_v60 = vld [vmem:[%s5698_s22 + $0x6b8] sm:$0xff] }
  0xb6   : > { %4513 = vmatprep.subr.bf16.mxu1 %v4512_v9  ;;  %v445_v9 = vld [vmem:[%s5698_s22 + $0x5a8] sm:$0xff]  ;;  %v3766_v12 = vpack.c.bf16 %v436_v4, %v432_v3  ;;  %v4534_v14 = vpack.c.bf16 %v438_v7, %v434_v5  ;;  %v4552_v3 = vpack.c.bf16 %v479_v60, %v475_v59  ;;  %v478_v4 = vld [vmem:[%s5698_s22 + $0x6b0] sm:$0xff]  ;;  %v483_v7 = vld [vmem:[%s5698_s22 + $0x6d8] sm:$0xff] }
  0xb7   : > { %1887 = vmatmul.mubr.f32.vlgmr.msra.gmra.mrb[0].mxu0 %v240_v15  ;;  %v481_v5 = vld [vmem:[%s5698_s22 + $0x6c8] sm:$0xff]  ;;  %v495_v20 = vld [vmem:[%s5698_s22 + $0x738] sm:$0xff]  ;;  %v496_v36 = vld [vmem:[%s5698_s22 + $0x740] sm:$0xff] }
  0xb8   : > { %3747 = vmatpush1.bf16.msra.mxu0 %v3746_v16  ;;  %2739 = vmatmul.mubr.f32.vlgmr.msra.gmra.mrb[0].mxu1 %v240_v15  ;;  %v3768_v15 = vpack.c.bf16 %v445_v9, %v441_v8  ;;  %v444_v16 = vld [vmem:[%s5698_s22 + $0x5a0] sm:$0xff]  ;;  %v487_v8 = vld [vmem:[%s5698_s22 + $0x6f8] sm:$0xff] }
  0xb9   : > { %4515 = vmatpush1.bf16.msra.mxu1 %v4514_v17  ;;  %3749 = vmatprep.subr.bf16.mxu0 %v3748_v18  ;;  %v442_v17 = vld [vmem:[%s5698_s22 + $0x590] sm:$0xff]  ;;  %v3770_v25 = vpack.c.bf16 %v444_v16, %v440_v13  ;;  %v484_v13 = vld [vmem:[%s5698_s22 + $0x6e0] sm:$0xff] }
  0xba   : > { %4517 = vmatprep.subr.bf16.mxu1 %v4516_v22  ;;  %v446_v18 = vld [vmem:[%s5698_s22 + $0x5b0] sm:$0xff]  ;;  %v243_v22 = vld [vmem:[#allocation2 + $0x18] sm:$0xff]  ;;  %v504_v48 = vld [vmem:[%s5698_s22 + $0x780] sm:$0xff] }
  0xbb   : > { %1957 = vmatprep.mubr.f32.mxu0 %v243_v22  ;;  %2809 = vmatprep.mubr.f32.mxu1 %v243_v22  ;;  %v4538_v26 = vpack.c.bf16 %v446_v18, %v442_v17  ;;  %v486_v16 = vld [vmem:[%s5698_s22 + $0x6f0] sm:$0xff]  ;;  %v489_v17 = vld [vmem:[%s5698_s22 + $0x708] sm:$0xff]  ;;  %v512_v60 = vld [vmem:[%s5698_s22 + $0x7c0] sm:$0xff] }
  0xbc   : > { %3751 = vmatpush1.bf16.msra.mxu0 %v3750_v28  ;;  %v448_v28 = vld [vmem:[%s5698_s22 + $0x5c0] sm:$0xff]  ;;  %v493_v18 = vld [vmem:[%s5698_s22 + $0x728] sm:$0xff] }
  0xbd   : > { %4519 = vmatpush1.bf16.msra.mxu1 %v4518_v29  ;;  %3753 = vmatprep.subr.bf16.mxu0 %v3752_v30  ;;  %v452_v29 = vld [vmem:[%s5698_s22 + $0x5e0] sm:$0xff]  ;;  %v450_v30 = vld [vmem:[%s5698_s22 + $0x5d0] sm:$0xff]  ;;  %v3792_v23 = vpack.c.bf16 %v493_v18, %v489_v17 }
  0xbe   : > { %4521 = vmatprep.subr.bf16.mxu1 %v4520_v34  ;;  %v461_v34 = vld [vmem:[%s5698_s22 + $0x628] sm:$0xff]  ;;  %v3774_v37 = vpack.c.bf16 %v452_v29, %v448_v28  ;;  %v4542_v38 = vpack.c.bf16 %v454_v32, %v450_v30  ;;  %v494_v28 = vld [vmem:[%s5698_s22 + $0x730] sm:$0xff]  ;;  %v503_v32 = vld [vmem:[%s5698_s22 + $0x778] sm:$0xff] }
  0xbf   : > { %v3776_v39 = vpack.c.bf16 %v461_v34, %v457_v33  ;;  %v497_v29 = vld [vmem:[%s5698_s22 + $0x748] sm:$0xff]  ;;  %v242_v17 = vld [vmem:[#allocation2 + $0x10] sm:$0xff] }
  0xc0   : > { %3755 = vmatpush1.bf16.msra.mxu0 %v3754_v40  ;;  %v456_v40 = vld [vmem:[%s5698_s22 + $0x600] sm:$0xff]  ;;  %v501_v30 = vld [vmem:[%s5698_s22 + $0x768] sm:$0xff] }
  0xc1   : > { %4523 = vmatpush1.bf16.msra.mxu1 %v4522_v41  ;;  %3757 = vmatprep.subr.bf16.mxu0 %v3756_v42  ;;  %v460_v41 = vld [vmem:[%s5698_s22 + $0x620] sm:$0xff]  ;;  %v458_v42 = vld [vmem:[%s5698_s22 + $0x610] sm:$0xff]  ;;  %v3796_v35 = vpack.c.bf16 %v501_v30, %v497_v29  ;;  %v543_v29 = vld [vmem:[%s5698_s22 + $0x8b8] sm:$0xff] }
  0xc2   : > { %4525 = vmatprep.subr.bf16.mxu1 %v4524_v46  ;;  %v469_v46 = vld [vmem:[%s5698_s22 + $0x668] sm:$0xff]  ;;  %v3778_v49 = vpack.c.bf16 %v460_v41, %v456_v40  ;;  %v4546_v50 = vpack.c.bf16 %v462_v44, %v458_v42  ;;  %v502_v40 = vld [vmem:[%s5698_s22 + $0x770] sm:$0xff]  ;;  %v511_v44 = vld [vmem:[%s5698_s22 + $0x7b8] sm:$0xff] }
  0xc3   : > { %v3780_v51 = vpack.c.bf16 %v469_v46, %v465_v45  ;;  %v505_v41 = vld [vmem:[%s5698_s22 + $0x788] sm:$0xff] }
  0xc4   : > { %3759 = vmatpush1.bf16.msra.mxu0 %v3758_v52  ;;  %v464_v52 = vld [vmem:[%s5698_s22 + $0x640] sm:$0xff]  ;;  %v509_v42 = vld [vmem:[%s5698_s22 + $0x7a8] sm:$0xff] }
  0xc5   : > { %4527 = vmatpush1.bf16.msra.mxu1 %v4526_v53  ;;  %3761 = vmatprep.subr.bf16.mxu0 %v3760_v54  ;;  %v468_v53 = vld [vmem:[%s5698_s22 + $0x660] sm:$0xff]  ;;  %v466_v54 = vld [vmem:[%s5698_s22 + $0x650] sm:$0xff]  ;;  %v3800_v47 = vpack.c.bf16 %v509_v42, %v505_v41  ;;  %v245_v30 = vld [vmem:[#allocation2 + $0x28] sm:$0xff] }
  0xc6   : > { %4529 = vmatprep.subr.bf16.mxu1 %v4528_v58  ;;  %v477_v58 = vld [vmem:[%s5698_s22 + $0x6a8] sm:$0xff]  ;;  %v3782_v61 = vpack.c.bf16 %v468_v53, %v464_v52  ;;  %v4550_v62 = vpack.c.bf16 %v470_v56, %v466_v54  ;;  %v510_v52 = vld [vmem:[%s5698_s22 + $0x7b0] sm:$0xff]  ;;  %v519_v56 = vld [vmem:[%s5698_s22 + $0x7f8] sm:$0xff] }
  0xc7   : > { %v3784_v63 = vpack.c.bf16 %v477_v58, %v473_v57  ;;  %v513_v53 = vld [vmem:[%s5698_s22 + $0x7c8] sm:$0xff]  ;;  %v547_v41 = vld [vmem:[%s5698_s22 + $0x8d8] sm:$0xff] }
  0xc8   : > { %3763 = vmatpush1.bf16.msra.mxu0 %v3762_v0  ;;  %v472_v0 = vld [vmem:[%s5698_s22 + $0x680] sm:$0xff]  ;;  %v517_v54 = vld [vmem:[%s5698_s22 + $0x7e8] sm:$0xff]  ;;  %v551_v42 = vld [vmem:[%s5698_s22 + $0x8f8] sm:$0xff] }
  0xc9   : > { %4531 = vmatpush1.bf16.msra.mxu1 %v4530_v1  ;;  %3765 = vmatprep.subr.bf16.mxu0 %v3764_v2  ;;  %v476_v1 = vld [vmem:[%s5698_s22 + $0x6a0] sm:$0xff]  ;;  %v474_v2 = vld [vmem:[%s5698_s22 + $0x690] sm:$0xff]  ;;  %v3804_v59 = vpack.c.bf16 %v517_v54, %v513_v53  ;;  %v555_v53 = vld [vmem:[%s5698_s22 + $0x918] sm:$0xff] }
  0xca   : > { %4533 = vmatprep.subr.bf16.mxu1 %v4532_v6  ;;  %v485_v6 = vld [vmem:[%s5698_s22 + $0x6e8] sm:$0xff]  ;;  %v3786_v9 = vpack.c.bf16 %v476_v1, %v472_v0  ;;  %v4554_v10 = vpack.c.bf16 %v478_v4, %v474_v2  ;;  %v518_v0 = vld [vmem:[%s5698_s22 + $0x7f0] sm:$0xff]  ;;  %v527_v4 = vld [vmem:[%s5698_s22 + $0x838] sm:$0xff] }
  0xcb   : > { %v3788_v11 = vpack.c.bf16 %v485_v6, %v481_v5  ;;  %v521_v1 = vld [vmem:[%s5698_s22 + $0x808] sm:$0xff]  ;;  %v559_v54 = vld [vmem:[%s5698_s22 + $0x938] sm:$0xff] }
  0xcc   : > { %3767 = vmatpush1.bf16.msra.mxu0 %v3766_v12  ;;  %v480_v12 = vld [vmem:[%s5698_s22 + $0x6c0] sm:$0xff]  ;;  %v525_v2 = vld [vmem:[%s5698_s22 + $0x828] sm:$0xff] }
  0xcd   : > { %4535 = vmatpush1.bf16.msra.mxu1 %v4534_v14  ;;  %3769 = vmatprep.subr.bf16.mxu0 %v3768_v15  ;;  %v482_v14 = vld [vmem:[%s5698_s22 + $0x6d0] sm:$0xff]  ;;  %v4556_v15 = vpack.c.bf16 %v487_v8, %v483_v7  ;;  %v3790_v21 = vpack.c.bf16 %v484_v13, %v480_v12  ;;  %v3808_v7 = vpack.c.bf16 %v525_v2, %v521_v1  ;;  %v520_v8 = vld [vmem:[%s5698_s22 + $0x800] sm:$0xff]  ;;  %v529_v13 = vld [vmem:[%s5698_s22 + $0x848] sm:$0xff] }
  0xce   : > { %4537 = vmatprep.subr.bf16.mxu1 %v4536_v19  ;;  %v491_v19 = vld [vmem:[%s5698_s22 + $0x718] sm:$0xff]  ;;  %v4558_v22 = vpack.c.bf16 %v486_v16, %v482_v14  ;;  %v526_v12 = vld [vmem:[%s5698_s22 + $0x830] sm:$0xff]  ;;  %v533_v14 = vld [vmem:[%s5698_s22 + $0x868] sm:$0xff] }
  0xcf   : > { %v535_v16 = vld [vmem:[%s5698_s22 + $0x878] sm:$0xff] }
  0xd0   : > { %3771 = vmatpush1.bf16.msra.mxu0 %v3770_v25  ;;  %v492_v25 = vld [vmem:[%s5698_s22 + $0x720] sm:$0xff]  ;;  %v563_v1 = vld [vmem:[%s5698_s22 + $0x958] sm:$0xff] }
  0xd1   : > { %4539 = vmatpush1.bf16.msra.mxu1 %v4538_v26  ;;  %3773 = vmatprep.subr.bf16.mxu0 %v3772_v27  ;;  %v490_v26 = vld [vmem:[%s5698_s22 + $0x710] sm:$0xff]  ;;  %v4560_v27 = vpack.c.bf16 %v495_v20, %v491_v19  ;;  %v3794_v33 = vpack.c.bf16 %v492_v25, %v488_v24  ;;  %v3812_v20 = vpack.c.bf16 %v533_v14, %v529_v13  ;;  %v567_v2 = vld [vmem:[%s5698_s22 + $0x978] sm:$0xff] }
  0xd2   : > { %4541 = vmatprep.subr.bf16.mxu1 %v4540_v31  ;;  %v499_v31 = vld [vmem:[%s5698_s22 + $0x758] sm:$0xff]  ;;  %v4562_v34 = vpack.c.bf16 %v494_v28, %v490_v26  ;;  %v534_v25 = vld [vmem:[%s5698_s22 + $0x870] sm:$0xff]  ;;  %v537_v26 = vld [vmem:[%s5698_s22 + $0x888] sm:$0xff] }
  0xd3   : > { %v539_v28 = vld [vmem:[%s5698_s22 + $0x898] sm:$0xff] }
  0xd4   : > { %3775 = vmatpush1.bf16.msra.mxu0 %v3774_v37  ;;  %v500_v37 = vld [vmem:[%s5698_s22 + $0x760] sm:$0xff]  ;;  %v571_v13 = vld [vmem:[%s5698_s22 + $0x998] sm:$0xff] }
  0xd5   : > { %4543 = vmatpush1.bf16.msra.mxu1 %v4542_v38  ;;  %3777 = vmatprep.subr.bf16.mxu0 %v3776_v39  ;;  %v498_v38 = vld [vmem:[%s5698_s22 + $0x750] sm:$0xff]  ;;  %v4564_v39 = vpack.c.bf16 %v503_v32, %v499_v31  ;;  %v3798_v45 = vpack.c.bf16 %v500_v37, %v496_v36  ;;  %v4584_v37 = vpack.c.bf16 %v543_v29, %v539_v28  ;;  %v575_v14 = vld [vmem:[%s5698_s22 + $0x9b8] sm:$0xff] }
  0xd6   : > { %4545 = vmatprep.subr.bf16.mxu1 %v4544_v43  ;;  %v507_v43 = vld [vmem:[%s5698_s22 + $0x798] sm:$0xff]  ;;  %v4566_v46 = vpack.c.bf16 %v502_v40, %v498_v38  ;;  %v538_v36 = vld [vmem:[%s5698_s22 + $0x890] sm:$0xff]  ;;  %v549_v40 = vld [vmem:[%s5698_s22 + $0x8e8] sm:$0xff] }
  0xd7   : > { %v542_v38 = vld [vmem:[%s5698_s22 + $0x8b0] sm:$0xff] }
  0xd8   : > { %3779 = vmatpush1.bf16.msra.mxu0 %v3778_v49  ;;  %v508_v49 = vld [vmem:[%s5698_s22 + $0x7a0] sm:$0xff] }
  0xd9   : > { %4547 = vmatpush1.bf16.msra.mxu1 %v4546_v50  ;;  %3781 = vmatprep.subr.bf16.mxu0 %v3780_v51  ;;  %v506_v50 = vld [vmem:[%s5698_s22 + $0x790] sm:$0xff]  ;;  %v4568_v51 = vpack.c.bf16 %v511_v44, %v507_v43  ;;  %v3802_v57 = vpack.c.bf16 %v508_v49, %v504_v48  ;;  %v4586_v44 = vpack.c.bf16 %v542_v38, %v538_v36  ;;  %v589_v36 = vld [vmem:[%s5698_s22 + $0xa28] sm:$0xff]  ;;  %v591_v38 = vld [vmem:[%s5698_s22 + $0xa38] sm:$0xff] }
  0xda   : > { %4549 = vmatprep.subr.bf16.mxu1 %v4548_v55  ;;  %v515_v55 = vld [vmem:[%s5698_s22 + $0x7d8] sm:$0xff]  ;;  %v4570_v58 = vpack.c.bf16 %v510_v52, %v506_v50  ;;  %v546_v48 = vld [vmem:[%s5698_s22 + $0x8d0] sm:$0xff]  ;;  %v4588_v49 = vpack.c.bf16 %v551_v42, %v547_v41  ;;  %v557_v52 = vld [vmem:[%s5698_s22 + $0x928] sm:$0xff] }
  0xdb   : > { %v550_v50 = vld [vmem:[%s5698_s22 + $0x8f0] sm:$0xff]  ;;  %v584_v42 = vld [vmem:[%s5698_s22 + $0xa00] sm:$0xff] }
  0xdc   : > { %3783 = vmatpush1.bf16.msra.mxu0 %v3782_v61  ;;  %v516_v61 = vld [vmem:[%s5698_s22 + $0x7e0] sm:$0xff] }
  0xdd   : > { %4551 = vmatpush1.bf16.msra.mxu1 %v4550_v62  ;;  %3785 = vmatprep.subr.bf16.mxu0 %v3784_v63  ;;  %v514_v62 = vld [vmem:[%s5698_s22 + $0x7d0] sm:$0xff]  ;;  %v4572_v63 = vpack.c.bf16 %v519_v56, %v515_v55  ;;  %v3806_v5 = vpack.c.bf16 %v516_v61, %v512_v60  ;;  %v4590_v56 = vpack.c.bf16 %v550_v50, %v546_v48  ;;  %v597_v48 = vld [vmem:[%s5698_s22 + $0xa68] sm:$0xff]  ;;  %v599_v50 = vld [vmem:[%s5698_s22 + $0xa78] sm:$0xff] }
  0xde   : > { %4553 = vmatprep.subr.bf16.mxu1 %v4552_v3  ;;  %v523_v3 = vld [vmem:[%s5698_s22 + $0x818] sm:$0xff]  ;;  %v4574_v6 = vpack.c.bf16 %v518_v0, %v514_v62  ;;  %v554_v60 = vld [vmem:[%s5698_s22 + $0x910] sm:$0xff]  ;;  %v4592_v61 = vpack.c.bf16 %v559_v54, %v555_v53  ;;  %v565_v0 = vld [vmem:[%s5698_s22 + $0x968] sm:$0xff] }
  0xdf   : > { %v558_v62 = vld [vmem:[%s5698_s22 + $0x930] sm:$0xff]  ;;  %v592_v54 = vld [vmem:[%s5698_s22 + $0xa40] sm:$0xff] }
  0xe0   : > { %3787 = vmatpush1.bf16.msra.mxu0 %v3786_v9  ;;  %v524_v9 = vld [vmem:[%s5698_s22 + $0x820] sm:$0xff] }
  0xe1   : > { %4555 = vmatpush1.bf16.msra.mxu1 %v4554_v10  ;;  %3789 = vmatprep.subr.bf16.mxu0 %v3788_v11  ;;  %v522_v10 = vld [vmem:[%s5698_s22 + $0x810] sm:$0xff]  ;;  %v4576_v11 = vpack.c.bf16 %v527_v4, %v523_v3  ;;  %v3810_v18 = vpack.c.bf16 %v524_v9, %v520_v8  ;;  %v4594_v4 = vpack.c.bf16 %v558_v62, %v554_v60  ;;  %v605_v60 = vld [vmem:[%s5698_s22 + $0xaa8] sm:$0xff]  ;;  %v607_v62 = vld [vmem:[%s5698_s22 + $0xab8] sm:$0xff] }
  0xe2   : > { %4557 = vmatprep.subr.bf16.mxu1 %v4556_v15  ;;  %v531_v15 = vld [vmem:[%s5698_s22 + $0x858] sm:$0xff]  ;;  %v4578_v19 = vpack.c.bf16 %v526_v12, %v522_v10  ;;  %v562_v8 = vld [vmem:[%s5698_s22 + $0x950] sm:$0xff]  ;;  %v4596_v9 = vpack.c.bf16 %v567_v2, %v563_v1  ;;  %v573_v12 = vld [vmem:[%s5698_s22 + $0x9a8] sm:$0xff] }
  0xe3   : > { %v4580_v24 = vpack.c.bf16 %v535_v16, %v531_v15  ;;  %v566_v10 = vld [vmem:[%s5698_s22 + $0x970] sm:$0xff]  ;;  %v600_v2 = vld [vmem:[%s5698_s22 + $0xa80] sm:$0xff] }
  0xe4   : > { %3791 = vmatpush1.bf16.msra.mxu0 %v3790_v21  ;;  %v528_v21 = vld [vmem:[%s5698_s22 + $0x840] sm:$0xff]  ;;  %v4598_v16 = vpack.c.bf16 %v566_v10, %v562_v8  ;;  %v613_v8 = vld [vmem:[%s5698_s22 + $0xae8] sm:$0xff]  ;;  %v615_v10 = vld [vmem:[%s5698_s22 + $0xaf8] sm:$0xff] }
  0xe5   : > { %4559 = vmatpush1.bf16.msra.mxu1 %v4558_v22  ;;  %3793 = vmatprep.subr.bf16.mxu0 %v3792_v23  ;;  %v532_v22 = vld [vmem:[%s5698_s22 + $0x860] sm:$0xff]  ;;  %v530_v23 = vld [vmem:[%s5698_s22 + $0x850] sm:$0xff] }
  0xe6   : > { %4561 = vmatprep.subr.bf16.mxu1 %v4560_v27  ;;  %v541_v27 = vld [vmem:[%s5698_s22 + $0x8a8] sm:$0xff]  ;;  %v3814_v31 = vpack.c.bf16 %v532_v22, %v528_v21  ;;  %v4582_v32 = vpack.c.bf16 %v534_v25, %v530_v23  ;;  %v4600_v21 = vpack.c.bf16 %v575_v14, %v571_v13  ;;  %v574_v22 = vld [vmem:[%s5698_s22 + $0x9b0] sm:$0xff]  ;;  %v579_v25 = vld [vmem:[%s5698_s22 + $0x9d8] sm:$0xff] }
  0xe7   : > { %v577_v23 = vld [vmem:[%s5698_s22 + $0x9c8] sm:$0xff]  ;;  %v608_v14 = vld [vmem:[%s5698_s22 + $0xac0] sm:$0xff] }
  0xe8   : > { %3795 = vmatpush1.bf16.msra.mxu0 %v3794_v33  ;;  %v3816_v33 = vpack.c.bf16 %v541_v27, %v537_v26  ;;  %v583_v26 = vld [vmem:[%s5698_s22 + $0x9f8] sm:$0xff] }
  0xe9   : > { %4563 = vmatpush1.bf16.msra.mxu1 %v4562_v34  ;;  %3797 = vmatprep.subr.bf16.mxu0 %v3796_v35  ;;  %v536_v34 = vld [vmem:[%s5698_s22 + $0x880] sm:$0xff] }
  0xea   : > { %4565 = vmatprep.subr.bf16.mxu1 %v4564_v39  ;;  %v540_v35 = vld [vmem:[%s5698_s22 + $0x8a0] sm:$0xff]  ;;  %v545_v39 = vld [vmem:[%s5698_s22 + $0x8c8] sm:$0xff] }
  0xeb   : > { %v3818_v43 = vpack.c.bf16 %v540_v35, %v536_v34  ;;  %v582_v34 = vld [vmem:[%s5698_s22 + $0x9f0] sm:$0xff]  ;;  %v585_v35 = vld [vmem:[%s5698_s22 + $0xa08] sm:$0xff] }
  0xec   : > { %3799 = vmatpush1.bf16.msra.mxu0 %v3798_v45  ;;  %v3820_v45 = vpack.c.bf16 %v549_v40, %v545_v39  ;;  %v3840_v41 = vpack.c.bf16 %v589_v36, %v585_v35 }
  0xed   : > { %4567 = vmatpush1.bf16.msra.mxu1 %v4566_v46  ;;  %3801 = vmatprep.subr.bf16.mxu0 %v3800_v47  ;;  %v544_v46 = vld [vmem:[%s5698_s22 + $0x8c0] sm:$0xff] }
  0xee   : > { %4569 = vmatprep.subr.bf16.mxu1 %v4568_v51  ;;  %v548_v47 = vld [vmem:[%s5698_s22 + $0x8e0] sm:$0xff]  ;;  %v553_v51 = vld [vmem:[%s5698_s22 + $0x908] sm:$0xff] }
  0xef   : > { %v3822_v55 = vpack.c.bf16 %v548_v47, %v544_v46  ;;  %v590_v46 = vld [vmem:[%s5698_s22 + $0xa30] sm:$0xff]  ;;  %v593_v47 = vld [vmem:[%s5698_s22 + $0xa48] sm:$0xff] }
  0xf0   : > { %3803 = vmatpush1.bf16.msra.mxu0 %v3802_v57  ;;  %v3824_v57 = vpack.c.bf16 %v557_v52, %v553_v51  ;;  %v3844_v53 = vpack.c.bf16 %v597_v48, %v593_v47 }
  0xf1   : > { %4571 = vmatpush1.bf16.msra.mxu1 %v4570_v58  ;;  %3805 = vmatprep.subr.bf16.mxu0 %v3804_v59  ;;  %v552_v58 = vld [vmem:[%s5698_s22 + $0x900] sm:$0xff] }
  0xf2   : > { %4573 = vmatprep.subr.bf16.mxu1 %v4572_v63  ;;  %v556_v59 = vld [vmem:[%s5698_s22 + $0x920] sm:$0xff]  ;;  %v561_v63 = vld [vmem:[%s5698_s22 + $0x948] sm:$0xff] }
  0xf3   : > { %v3826_v3 = vpack.c.bf16 %v556_v59, %v552_v58  ;;  %v598_v58 = vld [vmem:[%s5698_s22 + $0xa70] sm:$0xff]  ;;  %v601_v59 = vld [vmem:[%s5698_s22 + $0xa88] sm:$0xff] }
  0xf4   : > { %3807 = vmatpush1.bf16.msra.mxu0 %v3806_v5  ;;  %v3828_v5 = vpack.c.bf16 %v565_v0, %v561_v63  ;;  %v3848_v1 = vpack.c.bf16 %v605_v60, %v601_v59 }
  0xf5   : > { %4575 = vmatpush1.bf16.msra.mxu1 %v4574_v6  ;;  %3809 = vmatprep.subr.bf16.mxu0 %v3808_v7  ;;  %v560_v6 = vld [vmem:[%s5698_s22 + $0x940] sm:$0xff] }
  0xf6   : > { %4577 = vmatprep.subr.bf16.mxu1 %v4576_v11  ;;  %v564_v7 = vld [vmem:[%s5698_s22 + $0x960] sm:$0xff]  ;;  %v569_v11 = vld [vmem:[%s5698_s22 + $0x988] sm:$0xff] }
  0xf7   : > { %1958 = vmatmul.mubr.f32.vlgmr.msra.gmra.mrb[0].mxu0 %v242_v17  ;;  %v3830_v15 = vpack.c.bf16 %v564_v7, %v560_v6  ;;  %v606_v6 = vld [vmem:[%s5698_s22 + $0xab0] sm:$0xff]  ;;  %v609_v7 = vld [vmem:[%s5698_s22 + $0xac8] sm:$0xff] }
  0xf8   : > { %3811 = vmatpush1.bf16.msra.mxu0 %v3810_v18  ;;  %2810 = vmatmul.mubr.f32.vlgmr.msra.gmra.mrb[0].mxu1 %v242_v17  ;;  %v3832_v17 = vpack.c.bf16 %v573_v12, %v569_v11  ;;  %v568_v18 = vld [vmem:[%s5698_s22 + $0x980] sm:$0xff]  ;;  %v3852_v13 = vpack.c.bf16 %v613_v8, %v609_v7 }
  0xf9   : > { %4579 = vmatpush1.bf16.msra.mxu1 %v4578_v19  ;;  %3813 = vmatprep.subr.bf16.mxu0 %v3812_v20  ;;  %v572_v19 = vld [vmem:[%s5698_s22 + $0x9a0] sm:$0xff]  ;;  %v570_v20 = vld [vmem:[%s5698_s22 + $0x990] sm:$0xff] }
  0xfa   : > { %4581 = vmatprep.subr.bf16.mxu1 %v4580_v24  ;;  %2028 = vmatprep.mubr.f32.mxu0 %v245_v30  ;;  %v581_v24 = vld [vmem:[%s5698_s22 + $0x9e8] sm:$0xff]  ;;  %v3834_v27 = vpack.c.bf16 %v572_v19, %v568_v18  ;;  %v4602_v28 = vpack.c.bf16 %v574_v22, %v570_v20  ;;  %v614_v18 = vld [vmem:[%s5698_s22 + $0xaf0] sm:$0xff]  ;;  %v623_v22 = vld [vmem:[%s5698_s22 + $0xb38] sm:$0xff] }
  0xfb   : > { %2880 = vmatprep.mubr.f32.mxu1 %v245_v30  ;;  %v3836_v29 = vpack.c.bf16 %v581_v24, %v577_v23  ;;  %v576_v30 = vld [vmem:[%s5698_s22 + $0x9c0] sm:$0xff]  ;;  %v617_v19 = vld [vmem:[%s5698_s22 + $0xb08] sm:$0xff] }
  0xfc   : > { %3815 = vmatpush1.bf16.msra.mxu0 %v3814_v31  ;;  %v580_v31 = vld [vmem:[%s5698_s22 + $0x9e0] sm:$0xff]  ;;  %v621_v20 = vld [vmem:[%s5698_s22 + $0xb28] sm:$0xff] }
  0xfd   : > { %4583 = vmatpush1.bf16.msra.mxu1 %v4582_v32  ;;  %3817 = vmatprep.subr.bf16.mxu0 %v3816_v33  ;;  %v578_v32 = vld [vmem:[%s5698_s22 + $0x9d0] sm:$0xff]  ;;  %v4604_v33 = vpack.c.bf16 %v583_v26, %v579_v25  ;;  %v3838_v39 = vpack.c.bf16 %v580_v31, %v576_v30  ;;  %v3856_v25 = vpack.c.bf16 %v621_v20, %v617_v19  ;;  %v616_v26 = vld [vmem:[%s5698_s22 + $0xb00] sm:$0xff]  ;;  %v625_v31 = vld [vmem:[%s5698_s22 + $0xb48] sm:$0xff] }
  0xfe   : > { %4585 = vmatprep.subr.bf16.mxu1 %v4584_v37  ;;  %v587_v37 = vld [vmem:[%s5698_s22 + $0xa18] sm:$0xff]  ;;  %v4606_v40 = vpack.c.bf16 %v582_v34, %v578_v32  ;;  %v622_v30 = vld [vmem:[%s5698_s22 + $0xb30] sm:$0xff]  ;;  %v629_v32 = vld [vmem:[%s5698_s22 + $0xb68] sm:$0xff] }
  0xff   : > { %v631_v34 = vld [vmem:[%s5698_s22 + $0xb78] sm:$0xff]  ;;  %v244_v19 = vld [vmem:[#allocation2 + $0x20] sm:$0xff] }
 0x100   : > { %3819 = vmatpush1.bf16.msra.mxu0 %v3818_v43  ;;  %v588_v43 = vld [vmem:[%s5698_s22 + $0xa20] sm:$0xff] }
 0x101   : > { %4587 = vmatpush1.bf16.msra.mxu1 %v4586_v44  ;;  %3821 = vmatprep.subr.bf16.mxu0 %v3820_v45  ;;  %v586_v44 = vld [vmem:[%s5698_s22 + $0xa10] sm:$0xff]  ;;  %v4608_v45 = vpack.c.bf16 %v591_v38, %v587_v37  ;;  %v3842_v51 = vpack.c.bf16 %v588_v43, %v584_v42  ;;  %v3860_v37 = vpack.c.bf16 %v629_v32, %v625_v31  ;;  %v624_v38 = vld [vmem:[%s5698_s22 + $0xb40] sm:$0xff]  ;;  %v633_v43 = vld [vmem:[%s5698_s22 + $0xb88] sm:$0xff] }
 0x102   : > { %4589 = vmatprep.subr.bf16.mxu1 %v4588_v49  ;;  %v595_v49 = vld [vmem:[%s5698_s22 + $0xa58] sm:$0xff]  ;;  %v4610_v52 = vpack.c.bf16 %v590_v46, %v586_v44  ;;  %v630_v42 = vld [vmem:[%s5698_s22 + $0xb70] sm:$0xff]  ;;  %v637_v44 = vld [vmem:[%s5698_s22 + $0xba8] sm:$0xff] }
 0x103   : > { %v639_v46 = vld [vmem:[%s5698_s22 + $0xbb8] sm:$0xff] }
 0x104   : > { %3823 = vmatpush1.bf16.msra.mxu0 %v3822_v55  ;;  %v596_v55 = vld [vmem:[%s5698_s22 + $0xa60] sm:$0xff]  ;;  %v671_v31 = vld [vmem:[%s5698_s22 + $0xcb8] sm:$0xff] }
 0x105   : > { %4591 = vmatpush1.bf16.msra.mxu1 %v4590_v56  ;;  %3825 = vmatprep.subr.bf16.mxu0 %v3824_v57  ;;  %v594_v56 = vld [vmem:[%s5698_s22 + $0xa50] sm:$0xff]  ;;  %v4612_v57 = vpack.c.bf16 %v599_v50, %v595_v49  ;;  %v3846_v63 = vpack.c.bf16 %v596_v55, %v592_v54  ;;  %v3864_v49 = vpack.c.bf16 %v637_v44, %v633_v43  ;;  %v632_v50 = vld [vmem:[%s5698_s22 + $0xb80] sm:$0xff]  ;;  %v641_v55 = vld [vmem:[%s5698_s22 + $0xbc8] sm:$0xff] }
 0x106   : > { %4593 = vmatprep.subr.bf16.mxu1 %v4592_v61  ;;  %v603_v61 = vld [vmem:[%s5698_s22 + $0xa98] sm:$0xff]  ;;  %v4614_v0 = vpack.c.bf16 %v598_v58, %v594_v56  ;;  %v638_v54 = vld [vmem:[%s5698_s22 + $0xbb0] sm:$0xff]  ;;  %v645_v56 = vld [vmem:[%s5698_s22 + $0xbe8] sm:$0xff] }
 0x107   : > { %v647_v58 = vld [vmem:[%s5698_s22 + $0xbf8] sm:$0xff] }
 0x108   : > { %3827 = vmatpush1.bf16.msra.mxu0 %v3826_v3  ;;  %v604_v3 = vld [vmem:[%s5698_s22 + $0xaa0] sm:$0xff]  ;;  %v247_v32 = vld [vmem:[#allocation2 + $0x38] sm:$0xff] }
 0x109   : > { %4595 = vmatpush1.bf16.msra.mxu1 %v4594_v4  ;;  %3829 = vmatprep.subr.bf16.mxu0 %v3828_v5  ;;  %v602_v4 = vld [vmem:[%s5698_s22 + $0xa90] sm:$0xff]  ;;  %v4616_v5 = vpack.c.bf16 %v607_v62, %v603_v61  ;;  %v3850_v11 = vpack.c.bf16 %v604_v3, %v600_v2  ;;  %v3868_v61 = vpack.c.bf16 %v645_v56, %v641_v55  ;;  %v640_v62 = vld [vmem:[%s5698_s22 + $0xbc0] sm:$0xff]  ;;  %v649_v3 = vld [vmem:[%s5698_s22 + $0xc08] sm:$0xff] }
 0x10a   : > { %4597 = vmatprep.subr.bf16.mxu1 %v4596_v9  ;;  %v611_v9 = vld [vmem:[%s5698_s22 + $0xad8] sm:$0xff]  ;;  %v4618_v12 = vpack.c.bf16 %v606_v6, %v602_v4  ;;  %v646_v2 = vld [vmem:[%s5698_s22 + $0xbf0] sm:$0xff]  ;;  %v653_v4 = vld [vmem:[%s5698_s22 + $0xc28] sm:$0xff] }
 0x10b   : > { %v655_v6 = vld [vmem:[%s5698_s22 + $0xc38] sm:$0xff] }
 0x10c   : > { %3831 = vmatpush1.bf16.msra.mxu0 %v3830_v15  ;;  %v612_v15 = vld [vmem:[%s5698_s22 + $0xae0] sm:$0xff]  ;;  %v675_v43 = vld [vmem:[%s5698_s22 + $0xcd8] sm:$0xff] }
 0x10d   : > { %4599 = vmatpush1.bf16.msra.mxu1 %v4598_v16  ;;  %3833 = vmatprep.subr.bf16.mxu0 %v3832_v17  ;;  %v610_v16 = vld [vmem:[%s5698_s22 + $0xad0] sm:$0xff]  ;;  %v4620_v17 = vpack.c.bf16 %v615_v10, %v611_v9  ;;  %v3854_v23 = vpack.c.bf16 %v612_v15, %v608_v14  ;;  %v3872_v9 = vpack.c.bf16 %v653_v4, %v649_v3  ;;  %v648_v10 = vld [vmem:[%s5698_s22 + $0xc00] sm:$0xff]  ;;  %v657_v15 = vld [vmem:[%s5698_s22 + $0xc48] sm:$0xff] }
 0x10e   : > { %4601 = vmatprep.subr.bf16.mxu1 %v4600_v21  ;;  %v619_v21 = vld [vmem:[%s5698_s22 + $0xb18] sm:$0xff]  ;;  %v4622_v24 = vpack.c.bf16 %v614_v18, %v610_v16  ;;  %v654_v14 = vld [vmem:[%s5698_s22 + $0xc30] sm:$0xff]  ;;  %v661_v16 = vld [vmem:[%s5698_s22 + $0xc68] sm:$0xff] }
 0x10f   : > { %v663_v18 = vld [vmem:[%s5698_s22 + $0xc78] sm:$0xff] }
 0x110   : > { %3835 = vmatpush1.bf16.msra.mxu0 %v3834_v27  ;;  %v620_v27 = vld [vmem:[%s5698_s22 + $0xb20] sm:$0xff]  ;;  %v679_v44 = vld [vmem:[%s5698_s22 + $0xcf8] sm:$0xff] }
 0x111   : > { %4603 = vmatpush1.bf16.msra.mxu1 %v4602_v28  ;;  %3837 = vmatprep.subr.bf16.mxu0 %v3836_v29  ;;  %v618_v28 = vld [vmem:[%s5698_s22 + $0xb10] sm:$0xff]  ;;  %v4624_v29 = vpack.c.bf16 %v623_v22, %v619_v21  ;;  %v3858_v35 = vpack.c.bf16 %v620_v27, %v616_v26  ;;  %v3876_v22 = vpack.c.bf16 %v661_v16, %v657_v15  ;;  %v683_v55 = vld [vmem:[%s5698_s22 + $0xd18] sm:$0xff] }
 0x112   : > { %4605 = vmatprep.subr.bf16.mxu1 %v4604_v33  ;;  %v627_v33 = vld [vmem:[%s5698_s22 + $0xb58] sm:$0xff]  ;;  %v4626_v36 = vpack.c.bf16 %v622_v30, %v618_v28  ;;  %v662_v27 = vld [vmem:[%s5698_s22 + $0xc70] sm:$0xff]  ;;  %v665_v28 = vld [vmem:[%s5698_s22 + $0xc88] sm:$0xff] }
 0x113   : > { %v667_v30 = vld [vmem:[%s5698_s22 + $0xc98] sm:$0xff] }
 0x114   : > { %3839 = vmatpush1.bf16.msra.mxu0 %v3838_v39  ;;  %v628_v39 = vld [vmem:[%s5698_s22 + $0xb60] sm:$0xff]  ;;  %v687_v56 = vld [vmem:[%s5698_s22 + $0xd38] sm:$0xff] }
 0x115   : > { %4607 = vmatpush1.bf16.msra.mxu1 %v4606_v40  ;;  %3841 = vmatprep.subr.bf16.mxu0 %v3840_v41  ;;  %v626_v40 = vld [vmem:[%s5698_s22 + $0xb50] sm:$0xff]  ;;  %v4628_v41 = vpack.c.bf16 %v631_v34, %v627_v33  ;;  %v3862_v47 = vpack.c.bf16 %v628_v39, %v624_v38  ;;  %v4648_v39 = vpack.c.bf16 %v671_v31, %v667_v30  ;;  %v691_v3 = vld [vmem:[%s5698_s22 + $0xd58] sm:$0xff] }
 0x116   : > { %4609 = vmatprep.subr.bf16.mxu1 %v4608_v45  ;;  %v635_v45 = vld [vmem:[%s5698_s22 + $0xb98] sm:$0xff]  ;;  %v4630_v48 = vpack.c.bf16 %v630_v42, %v626_v40  ;;  %v666_v38 = vld [vmem:[%s5698_s22 + $0xc90] sm:$0xff]  ;;  %v677_v42 = vld [vmem:[%s5698_s22 + $0xce8] sm:$0xff] }
 0x117   : > { %v670_v40 = vld [vmem:[%s5698_s22 + $0xcb0] sm:$0xff]  ;;  %v695_v4 = vld [vmem:[%s5698_s22 + $0xd78] sm:$0xff] }
 0x118   : > { %3843 = vmatpush1.bf16.msra.mxu0 %v3842_v51  ;;  %v636_v51 = vld [vmem:[%s5698_s22 + $0xba0] sm:$0xff]  ;;  %v699_v15 = vld [vmem:[%s5698_s22 + $0xd98] sm:$0xff] }
 0x119   : > { %4611 = vmatpush1.bf16.msra.mxu1 %v4610_v52  ;;  %3845 = vmatprep.subr.bf16.mxu0 %v3844_v53  ;;  %v634_v52 = vld [vmem:[%s5698_s22 + $0xb90] sm:$0xff]  ;;  %v4632_v53 = vpack.c.bf16 %v639_v46, %v635_v45  ;;  %v3866_v59 = vpack.c.bf16 %v636_v51, %v632_v50  ;;  %v4650_v46 = vpack.c.bf16 %v670_v40, %v666_v38  ;;  %v703_v16 = vld [vmem:[%s5698_s22 + $0xdb8] sm:$0xff]  ;;  %v717_v38 = vld [vmem:[%s5698_s22 + $0xe28] sm:$0xff] }
 0x11a   : > { %4613 = vmatprep.subr.bf16.mxu1 %v4612_v57  ;;  %v643_v57 = vld [vmem:[%s5698_s22 + $0xbd8] sm:$0xff]  ;;  %v4634_v60 = vpack.c.bf16 %v638_v54, %v634_v52  ;;  %v674_v50 = vld [vmem:[%s5698_s22 + $0xcd0] sm:$0xff]  ;;  %v4652_v51 = vpack.c.bf16 %v679_v44, %v675_v43  ;;  %v685_v54 = vld [vmem:[%s5698_s22 + $0xd28] sm:$0xff] }
 0x11b   : > { %v678_v52 = vld [vmem:[%s5698_s22 + $0xcf0] sm:$0xff]  ;;  %v719_v40 = vld [vmem:[%s5698_s22 + $0xe38] sm:$0xff]  ;;  %v712_v44 = vld [vmem:[%s5698_s22 + $0xe00] sm:$0xff] }
 0x11c   : > { %3847 = vmatpush1.bf16.msra.mxu0 %v3846_v63  ;;  %v644_v63 = vld [vmem:[%s5698_s22 + $0xbe0] sm:$0xff] }
 0x11d   : > { %4615 = vmatpush1.bf16.msra.mxu1 %v4614_v0  ;;  %3849 = vmatprep.subr.bf16.mxu0 %v3848_v1  ;;  %v642_v0 = vld [vmem:[%s5698_s22 + $0xbd0] sm:$0xff]  ;;  %v4636_v1 = vpack.c.bf16 %v647_v58, %v643_v57  ;;  %v3870_v7 = vpack.c.bf16 %v644_v63, %v640_v62  ;;  %v4654_v58 = vpack.c.bf16 %v678_v52, %v674_v50  ;;  %v725_v50 = vld [vmem:[%s5698_s22 + $0xe68] sm:$0xff]  ;;  %v727_v52 = vld [vmem:[%s5698_s22 + $0xe78] sm:$0xff] }
 0x11e   : > { %4617 = vmatprep.subr.bf16.mxu1 %v4616_v5  ;;  %v651_v5 = vld [vmem:[%s5698_s22 + $0xc18] sm:$0xff]  ;;  %v4638_v8 = vpack.c.bf16 %v646_v2, %v642_v0  ;;  %v682_v62 = vld [vmem:[%s5698_s22 + $0xd10] sm:$0xff]  ;;  %v4656_v63 = vpack.c.bf16 %v687_v56, %v683_v55  ;;  %v693_v2 = vld [vmem:[%s5698_s22 + $0xd68] sm:$0xff] }
 0x11f   : > { %v686_v0 = vld [vmem:[%s5698_s22 + $0xd30] sm:$0xff]  ;;  %v720_v56 = vld [vmem:[%s5698_s22 + $0xe40] sm:$0xff] }
 0x120   : > { %3851 = vmatpush1.bf16.msra.mxu0 %v3850_v11  ;;  %v652_v11 = vld [vmem:[%s5698_s22 + $0xc20] sm:$0xff] }
 0x121   : > { %4619 = vmatpush1.bf16.msra.mxu1 %v4618_v12  ;;  %3853 = vmatprep.subr.bf16.mxu0 %v3852_v13  ;;  %v650_v12 = vld [vmem:[%s5698_s22 + $0xc10] sm:$0xff]  ;;  %v4640_v13 = vpack.c.bf16 %v655_v6, %v651_v5  ;;  %v3874_v20 = vpack.c.bf16 %v652_v11, %v648_v10  ;;  %v4658_v6 = vpack.c.bf16 %v686_v0, %v682_v62  ;;  %v733_v62 = vld [vmem:[%s5698_s22 + $0xea8] sm:$0xff]  ;;  %v735_v0 = vld [vmem:[%s5698_s22 + $0xeb8] sm:$0xff] }
 0x122   : > { %4621 = vmatprep.subr.bf16.mxu1 %v4620_v17  ;;  %v659_v17 = vld [vmem:[%s5698_s22 + $0xc58] sm:$0xff]  ;;  %v4642_v21 = vpack.c.bf16 %v654_v14, %v650_v12  ;;  %v690_v10 = vld [vmem:[%s5698_s22 + $0xd50] sm:$0xff]  ;;  %v4660_v11 = vpack.c.bf16 %v695_v4, %v691_v3  ;;  %v701_v14 = vld [vmem:[%s5698_s22 + $0xda8] sm:$0xff] }
 0x123   : > { %v4644_v26 = vpack.c.bf16 %v663_v18, %v659_v17  ;;  %v694_v12 = vld [vmem:[%s5698_s22 + $0xd70] sm:$0xff]  ;;  %v728_v4 = vld [vmem:[%s5698_s22 + $0xe80] sm:$0xff] }
 0x124   : > { %3855 = vmatpush1.bf16.msra.mxu0 %v3854_v23  ;;  %v656_v23 = vld [vmem:[%s5698_s22 + $0xc40] sm:$0xff]  ;;  %v4662_v18 = vpack.c.bf16 %v694_v12, %v690_v10  ;;  %v741_v10 = vld [vmem:[%s5698_s22 + $0xee8] sm:$0xff]  ;;  %v743_v12 = vld [vmem:[%s5698_s22 + $0xef8] sm:$0xff] }
 0x125   : > { %4623 = vmatpush1.bf16.msra.mxu1 %v4622_v24  ;;  %3857 = vmatprep.subr.bf16.mxu0 %v3856_v25  ;;  %v660_v24 = vld [vmem:[%s5698_s22 + $0xc60] sm:$0xff]  ;;  %v658_v25 = vld [vmem:[%s5698_s22 + $0xc50] sm:$0xff] }
 0x126   : > { %4625 = vmatprep.subr.bf16.mxu1 %v4624_v29  ;;  %v669_v29 = vld [vmem:[%s5698_s22 + $0xca8] sm:$0xff]  ;;  %v3878_v33 = vpack.c.bf16 %v660_v24, %v656_v23  ;;  %v4646_v34 = vpack.c.bf16 %v662_v27, %v658_v25  ;;  %v4664_v23 = vpack.c.bf16 %v703_v16, %v699_v15  ;;  %v702_v24 = vld [vmem:[%s5698_s22 + $0xdb0] sm:$0xff]  ;;  %v707_v27 = vld [vmem:[%s5698_s22 + $0xdd8] sm:$0xff] }
 0x127   : > { %v705_v25 = vld [vmem:[%s5698_s22 + $0xdc8] sm:$0xff]  ;;  %v736_v16 = vld [vmem:[%s5698_s22 + $0xec0] sm:$0xff] }
 0x128   : > { %3859 = vmatpush1.bf16.msra.mxu0 %v3858_v35  ;;  %v3880_v35 = vpack.c.bf16 %v669_v29, %v665_v28  ;;  %v711_v28 = vld [vmem:[%s5698_s22 + $0xdf8] sm:$0xff] }
 0x129   : > { %4627 = vmatpush1.bf16.msra.mxu1 %v4626_v36  ;;  %3861 = vmatprep.subr.bf16.mxu0 %v3860_v37  ;;  %v664_v36 = vld [vmem:[%s5698_s22 + $0xc80] sm:$0xff] }
 0x12a   : > { %4629 = vmatprep.subr.bf16.mxu1 %v4628_v41  ;;  %v668_v37 = vld [vmem:[%s5698_s22 + $0xca0] sm:$0xff]  ;;  %v673_v41 = vld [vmem:[%s5698_s22 + $0xcc8] sm:$0xff] }
 0x12b   : > { %v3882_v45 = vpack.c.bf16 %v668_v37, %v664_v36  ;;  %v710_v36 = vld [vmem:[%s5698_s22 + $0xdf0] sm:$0xff]  ;;  %v713_v37 = vld [vmem:[%s5698_s22 + $0xe08] sm:$0xff] }
 0x12c   : > { %3863 = vmatpush1.bf16.msra.mxu0 %v3862_v47  ;;  %v3884_v47 = vpack.c.bf16 %v677_v42, %v673_v41  ;;  %v3904_v43 = vpack.c.bf16 %v717_v38, %v713_v37 }
 0x12d   : > { %4631 = vmatpush1.bf16.msra.mxu1 %v4630_v48  ;;  %3865 = vmatprep.subr.bf16.mxu0 %v3864_v49  ;;  %v672_v48 = vld [vmem:[%s5698_s22 + $0xcc0] sm:$0xff] }
 0x12e   : > { %4633 = vmatprep.subr.bf16.mxu1 %v4632_v53  ;;  %v676_v49 = vld [vmem:[%s5698_s22 + $0xce0] sm:$0xff]  ;;  %v681_v53 = vld [vmem:[%s5698_s22 + $0xd08] sm:$0xff] }
 0x12f   : > { %v3886_v57 = vpack.c.bf16 %v676_v49, %v672_v48  ;;  %v718_v48 = vld [vmem:[%s5698_s22 + $0xe30] sm:$0xff]  ;;  %v721_v49 = vld [vmem:[%s5698_s22 + $0xe48] sm:$0xff] }
 0x130   : > { %3867 = vmatpush1.bf16.msra.mxu0 %v3866_v59  ;;  %v3888_v59 = vpack.c.bf16 %v685_v54, %v681_v53  ;;  %v3908_v55 = vpack.c.bf16 %v725_v50, %v721_v49 }
 0x131   : > { %4635 = vmatpush1.bf16.msra.mxu1 %v4634_v60  ;;  %3869 = vmatprep.subr.bf16.mxu0 %v3868_v61  ;;  %v680_v60 = vld [vmem:[%s5698_s22 + $0xd00] sm:$0xff] }
 0x132   : > { %4637 = vmatprep.subr.bf16.mxu1 %v4636_v1  ;;  %v684_v61 = vld [vmem:[%s5698_s22 + $0xd20] sm:$0xff]  ;;  %v689_v1 = vld [vmem:[%s5698_s22 + $0xd48] sm:$0xff] }
 0x133   : > { %v3890_v5 = vpack.c.bf16 %v684_v61, %v680_v60  ;;  %v726_v60 = vld [vmem:[%s5698_s22 + $0xe70] sm:$0xff]  ;;  %v729_v61 = vld [vmem:[%s5698_s22 + $0xe88] sm:$0xff] }
 0x134   : > { %3871 = vmatpush1.bf16.msra.mxu0 %v3870_v7  ;;  %v3892_v7 = vpack.c.bf16 %v693_v2, %v689_v1  ;;  %v3912_v3 = vpack.c.bf16 %v733_v62, %v729_v61 }
 0x135   : > { %4639 = vmatpush1.bf16.msra.mxu1 %v4638_v8  ;;  %3873 = vmatprep.subr.bf16.mxu0 %v3872_v9  ;;  %v688_v8 = vld [vmem:[%s5698_s22 + $0xd40] sm:$0xff] }
 0x136   : > { %4641 = vmatprep.subr.bf16.mxu1 %v4640_v13  ;;  %v692_v9 = vld [vmem:[%s5698_s22 + $0xd60] sm:$0xff]  ;;  %v697_v13 = vld [vmem:[%s5698_s22 + $0xd88] sm:$0xff] }
 0x137   : > { %2029 = vmatmul.mubr.f32.vlgmr.msra.gmra.mrb[0].mxu0 %v244_v19  ;;  %v3894_v17 = vpack.c.bf16 %v692_v9, %v688_v8  ;;  %v734_v8 = vld [vmem:[%s5698_s22 + $0xeb0] sm:$0xff]  ;;  %v737_v9 = vld [vmem:[%s5698_s22 + $0xec8] sm:$0xff] }
 0x138   : > { %3875 = vmatpush1.bf16.msra.mxu0 %v3874_v20  ;;  %2881 = vmatmul.mubr.f32.vlgmr.msra.gmra.mrb[0].mxu1 %v244_v19  ;;  %v3896_v19 = vpack.c.bf16 %v701_v14, %v697_v13  ;;  %v696_v20 = vld [vmem:[%s5698_s22 + $0xd80] sm:$0xff]  ;;  %v3916_v15 = vpack.c.bf16 %v741_v10, %v737_v9 }
 0x139   : > { %4643 = vmatpush1.bf16.msra.mxu1 %v4642_v21  ;;  %3877 = vmatprep.subr.bf16.mxu0 %v3876_v22  ;;  %v700_v21 = vld [vmem:[%s5698_s22 + $0xda0] sm:$0xff]  ;;  %v698_v22 = vld [vmem:[%s5698_s22 + $0xd90] sm:$0xff] }
 0x13a   : > { %4645 = vmatprep.subr.bf16.mxu1 %v4644_v26  ;;  %2099 = vmatprep.mubr.f32.mxu0 %v247_v32  ;;  %v709_v26 = vld [vmem:[%s5698_s22 + $0xde8] sm:$0xff]  ;;  %v3898_v29 = vpack.c.bf16 %v700_v21, %v696_v20  ;;  %v4666_v30 = vpack.c.bf16 %v702_v24, %v698_v22  ;;  %v742_v20 = vld [vmem:[%s5698_s22 + $0xef0] sm:$0xff]  ;;  %v751_v24 = vld [vmem:[%s5698_s22 + $0xf38] sm:$0xff] }
 0x13b   : > { %2951 = vmatprep.mubr.f32.mxu1 %v247_v32  ;;  %v3900_v31 = vpack.c.bf16 %v709_v26, %v705_v25  ;;  %v704_v32 = vld [vmem:[%s5698_s22 + $0xdc0] sm:$0xff]  ;;  %v745_v21 = vld [vmem:[%s5698_s22 + $0xf08] sm:$0xff] }
 0x13c   : > { %3879 = vmatpush1.bf16.msra.mxu0 %v3878_v33  ;;  %v708_v33 = vld [vmem:[%s5698_s22 + $0xde0] sm:$0xff]  ;;  %v749_v22 = vld [vmem:[%s5698_s22 + $0xf28] sm:$0xff] }
 0x13d   : > { %4647 = vmatpush1.bf16.msra.mxu1 %v4646_v34  ;;  %3881 = vmatprep.subr.bf16.mxu0 %v3880_v35  ;;  %v706_v34 = vld [vmem:[%s5698_s22 + $0xdd0] sm:$0xff]  ;;  %v4668_v35 = vpack.c.bf16 %v711_v28, %v707_v27  ;;  %v3902_v41 = vpack.c.bf16 %v708_v33, %v704_v32  ;;  %v3920_v27 = vpack.c.bf16 %v749_v22, %v745_v21  ;;  %v744_v28 = vld [vmem:[%s5698_s22 + $0xf00] sm:$0xff]  ;;  %v753_v33 = vld [vmem:[%s5698_s22 + $0xf48] sm:$0xff] }
 0x13e   : > { %4649 = vmatprep.subr.bf16.mxu1 %v4648_v39  ;;  %v715_v39 = vld [vmem:[%s5698_s22 + $0xe18] sm:$0xff]  ;;  %v4670_v42 = vpack.c.bf16 %v710_v36, %v706_v34  ;;  %v750_v32 = vld [vmem:[%s5698_s22 + $0xf30] sm:$0xff]  ;;  %v757_v34 = vld [vmem:[%s5698_s22 + $0xf68] sm:$0xff] }
 0x13f   : > { %v759_v36 = vld [vmem:[%s5698_s22 + $0xf78] sm:$0xff]  ;;  %v246_v21 = vld [vmem:[#allocation2 + $0x30] sm:$0xff] }
 0x140   : > { %3883 = vmatpush1.bf16.msra.mxu0 %v3882_v45  ;;  %v716_v45 = vld [vmem:[%s5698_s22 + $0xe20] sm:$0xff] }
 0x141   : > { %4651 = vmatpush1.bf16.msra.mxu1 %v4650_v46  ;;  %3885 = vmatprep.subr.bf16.mxu0 %v3884_v47  ;;  %v714_v46 = vld [vmem:[%s5698_s22 + $0xe10] sm:$0xff]  ;;  %v4672_v47 = vpack.c.bf16 %v719_v40, %v715_v39  ;;  %v3906_v53 = vpack.c.bf16 %v716_v45, %v712_v44  ;;  %v3924_v39 = vpack.c.bf16 %v757_v34, %v753_v33  ;;  %v752_v40 = vld [vmem:[%s5698_s22 + $0xf40] sm:$0xff]  ;;  %v761_v45 = vld [vmem:[%s5698_s22 + $0xf88] sm:$0xff] }
 0x142   : > { %4653 = vmatprep.subr.bf16.mxu1 %v4652_v51  ;;  %v723_v51 = vld [vmem:[%s5698_s22 + $0xe58] sm:$0xff]  ;;  %v4674_v54 = vpack.c.bf16 %v718_v48, %v714_v46  ;;  %v758_v44 = vld [vmem:[%s5698_s22 + $0xf70] sm:$0xff]  ;;  %v765_v46 = vld [vmem:[%s5698_s22 + $0xfa8] sm:$0xff] }
 0x143   : > { %v767_v48 = vld [vmem:[%s5698_s22 + $0xfb8] sm:$0xff]  ;;  %v249_v34 = vld [vmem:[#allocation2 + $0x48] sm:$0xff] }
 0x144   : > { %3887 = vmatpush1.bf16.msra.mxu0 %v3886_v57  ;;  %v724_v57 = vld [vmem:[%s5698_s22 + $0xe60] sm:$0xff]  ;;  %v799_v33 = vld [vmem:[%s5698_s22 + $0x10b8] sm:$0xff] }
 0x145   : > { %4655 = vmatpush1.bf16.msra.mxu1 %v4654_v58  ;;  %3889 = vmatprep.subr.bf16.mxu0 %v3888_v59  ;;  %v722_v58 = vld [vmem:[%s5698_s22 + $0xe50] sm:$0xff]  ;;  %v4676_v59 = vpack.c.bf16 %v727_v52, %v723_v51  ;;  %v3910_v1 = vpack.c.bf16 %v724_v57, %v720_v56  ;;  %v3928_v51 = vpack.c.bf16 %v765_v46, %v761_v45  ;;  %v760_v52 = vld [vmem:[%s5698_s22 + $0xf80] sm:$0xff]  ;;  %v769_v57 = vld [vmem:[%s5698_s22 + $0xfc8] sm:$0xff] }
 0x146   : > { %4657 = vmatprep.subr.bf16.mxu1 %v4656_v63  ;;  %v731_v63 = vld [vmem:[%s5698_s22 + $0xe98] sm:$0xff]  ;;  %v4678_v2 = vpack.c.bf16 %v726_v60, %v722_v58  ;;  %v766_v56 = vld [vmem:[%s5698_s22 + $0xfb0] sm:$0xff]  ;;  %v773_v58 = vld [vmem:[%s5698_s22 + $0xfe8] sm:$0xff] }
 0x147   : > { %v775_v60 = vld [vmem:[%s5698_s22 + $0xff8] sm:$0xff] }
 0x148   : > { %3891 = vmatpush1.bf16.msra.mxu0 %v3890_v5  ;;  %v732_v5 = vld [vmem:[%s5698_s22 + $0xea0] sm:$0xff]  ;;  %v803_v45 = vld [vmem:[%s5698_s22 + $0x10d8] sm:$0xff] }
 0x149   : > { %4659 = vmatpush1.bf16.msra.mxu1 %v4658_v6  ;;  %3893 = vmatprep.subr.bf16.mxu0 %v3892_v7  ;;  %v730_v6 = vld [vmem:[%s5698_s22 + $0xe90] sm:$0xff]  ;;  %v4680_v7 = vpack.c.bf16 %v735_v0, %v731_v63  ;;  %v3914_v13 = vpack.c.bf16 %v732_v5, %v728_v4  ;;  %v3932_v63 = vpack.c.bf16 %v773_v58, %v769_v57  ;;  %v768_v0 = vld [vmem:[%s5698_s22 + $0xfc0] sm:$0xff]  ;;  %v777_v5 = vld [vmem:[%s5698_s22 + $0x1008] sm:$0xff] }
 0x14a   : > { %4661 = vmatprep.subr.bf16.mxu1 %v4660_v11  ;;  %v739_v11 = vld [vmem:[%s5698_s22 + $0xed8] sm:$0xff]  ;;  %v4682_v14 = vpack.c.bf16 %v734_v8, %v730_v6  ;;  %v774_v4 = vld [vmem:[%s5698_s22 + $0xff0] sm:$0xff]  ;;  %v781_v6 = vld [vmem:[%s5698_s22 + $0x1028] sm:$0xff] }
 0x14b   : > { %v783_v8 = vld [vmem:[%s5698_s22 + $0x1038] sm:$0xff] }
 0x14c   : > { %3895 = vmatpush1.bf16.msra.mxu0 %v3894_v17  ;;  %v740_v17 = vld [vmem:[%s5698_s22 + $0xee0] sm:$0xff]  ;;  %v807_v46 = vld [vmem:[%s5698_s22 + $0x10f8] sm:$0xff] }
 0x14d   : > { %4663 = vmatpush1.bf16.msra.mxu1 %v4662_v18  ;;  %3897 = vmatprep.subr.bf16.mxu0 %v3896_v19  ;;  %v738_v18 = vld [vmem:[%s5698_s22 + $0xed0] sm:$0xff]  ;;  %v4684_v19 = vpack.c.bf16 %v743_v12, %v739_v11  ;;  %v3918_v25 = vpack.c.bf16 %v740_v17, %v736_v16  ;;  %v3936_v11 = vpack.c.bf16 %v781_v6, %v777_v5  ;;  %v776_v12 = vld [vmem:[%s5698_s22 + $0x1000] sm:$0xff]  ;;  %v785_v17 = vld [vmem:[%s5698_s22 + $0x1048] sm:$0xff] }
 0x14e   : > { %4665 = vmatprep.subr.bf16.mxu1 %v4664_v23  ;;  %v747_v23 = vld [vmem:[%s5698_s22 + $0xf18] sm:$0xff]  ;;  %v4686_v26 = vpack.c.bf16 %v742_v20, %v738_v18  ;;  %v782_v16 = vld [vmem:[%s5698_s22 + $0x1030] sm:$0xff]  ;;  %v789_v18 = vld [vmem:[%s5698_s22 + $0x1068] sm:$0xff] }
 0x14f   : > { %v791_v20 = vld [vmem:[%s5698_s22 + $0x1078] sm:$0xff] }
 0x150   : > { %3899 = vmatpush1.bf16.msra.mxu0 %v3898_v29  ;;  %v748_v29 = vld [vmem:[%s5698_s22 + $0xf20] sm:$0xff]  ;;  %v811_v57 = vld [vmem:[%s5698_s22 + $0x1118] sm:$0xff] }
 0x151   : > { %4667 = vmatpush1.bf16.msra.mxu1 %v4666_v30  ;;  %3901 = vmatprep.subr.bf16.mxu0 %v3900_v31  ;;  %v746_v30 = vld [vmem:[%s5698_s22 + $0xf10] sm:$0xff]  ;;  %v4688_v31 = vpack.c.bf16 %v751_v24, %v747_v23  ;;  %v3922_v37 = vpack.c.bf16 %v748_v29, %v744_v28  ;;  %v3940_v24 = vpack.c.bf16 %v789_v18, %v785_v17  ;;  %v815_v58 = vld [vmem:[%s5698_s22 + $0x1138] sm:$0xff] }
 0x152   : > { %4669 = vmatprep.subr.bf16.mxu1 %v4668_v35  ;;  %v755_v35 = vld [vmem:[%s5698_s22 + $0xf58] sm:$0xff]  ;;  %v4690_v38 = vpack.c.bf16 %v750_v32, %v746_v30  ;;  %v790_v29 = vld [vmem:[%s5698_s22 + $0x1070] sm:$0xff]  ;;  %v793_v30 = vld [vmem:[%s5698_s22 + $0x1088] sm:$0xff] }
 0x153   : > { %v795_v32 = vld [vmem:[%s5698_s22 + $0x1098] sm:$0xff] }
 0x154   : > { %3903 = vmatpush1.bf16.msra.mxu0 %v3902_v41  ;;  %v756_v41 = vld [vmem:[%s5698_s22 + $0xf60] sm:$0xff]  ;;  %v819_v5 = vld [vmem:[%s5698_s22 + $0x1158] sm:$0xff] }
 0x155   : > { %4671 = vmatpush1.bf16.msra.mxu1 %v4670_v42  ;;  %3905 = vmatprep.subr.bf16.mxu0 %v3904_v43  ;;  %v754_v42 = vld [vmem:[%s5698_s22 + $0xf50] sm:$0xff]  ;;  %v4692_v43 = vpack.c.bf16 %v759_v36, %v755_v35  ;;  %v3926_v49 = vpack.c.bf16 %v756_v41, %v752_v40  ;;  %v4712_v41 = vpack.c.bf16 %v799_v33, %v795_v32  ;;  %v823_v6 = vld [vmem:[%s5698_s22 + $0x1178] sm:$0xff] }
 0x156   : > { %4673 = vmatprep.subr.bf16.mxu1 %v4672_v47  ;;  %v763_v47 = vld [vmem:[%s5698_s22 + $0xf98] sm:$0xff]  ;;  %v4694_v50 = vpack.c.bf16 %v758_v44, %v754_v42  ;;  %v794_v40 = vld [vmem:[%s5698_s22 + $0x1090] sm:$0xff]  ;;  %v805_v44 = vld [vmem:[%s5698_s22 + $0x10e8] sm:$0xff] }
 0x157   : > { %v798_v42 = vld [vmem:[%s5698_s22 + $0x10b0] sm:$0xff]  ;;  %v827_v17 = vld [vmem:[%s5698_s22 + $0x1198] sm:$0xff] }
 0x158   : > { %3907 = vmatpush1.bf16.msra.mxu0 %v3906_v53  ;;  %v764_v53 = vld [vmem:[%s5698_s22 + $0xfa0] sm:$0xff]  ;;  %v831_v18 = vld [vmem:[%s5698_s22 + $0x11b8] sm:$0xff] }
 0x159   : > { %4675 = vmatpush1.bf16.msra.mxu1 %v4674_v54  ;;  %3909 = vmatprep.subr.bf16.mxu0 %v3908_v55  ;;  %v762_v54 = vld [vmem:[%s5698_s22 + $0xf90] sm:$0xff]  ;;  %v4696_v55 = vpack.c.bf16 %v767_v48, %v763_v47  ;;  %v3930_v61 = vpack.c.bf16 %v764_v53, %v760_v52  ;;  %v4714_v48 = vpack.c.bf16 %v798_v42, %v794_v40  ;;  %v845_v40 = vld [vmem:[%s5698_s22 + $0x1228] sm:$0xff]  ;;  %v847_v42 = vld [vmem:[%s5698_s22 + $0x1238] sm:$0xff] }
 0x15a   : > { %4677 = vmatprep.subr.bf16.mxu1 %v4676_v59  ;;  %v771_v59 = vld [vmem:[%s5698_s22 + $0xfd8] sm:$0xff]  ;;  %v4698_v62 = vpack.c.bf16 %v766_v56, %v762_v54  ;;  %v802_v52 = vld [vmem:[%s5698_s22 + $0x10d0] sm:$0xff]  ;;  %v4716_v53 = vpack.c.bf16 %v807_v46, %v803_v45  ;;  %v813_v56 = vld [vmem:[%s5698_s22 + $0x1128] sm:$0xff] }
 0x15b   : > { %v806_v54 = vld [vmem:[%s5698_s22 + $0x10f0] sm:$0xff]  ;;  %v840_v46 = vld [vmem:[%s5698_s22 + $0x1200] sm:$0xff] }
 0x15c   : > { %3911 = vmatpush1.bf16.msra.mxu0 %v3910_v1  ;;  %v772_v1 = vld [vmem:[%s5698_s22 + $0xfe0] sm:$0xff] }
 0x15d   : > { %4679 = vmatpush1.bf16.msra.mxu1 %v4678_v2  ;;  %3913 = vmatprep.subr.bf16.mxu0 %v3912_v3  ;;  %v770_v2 = vld [vmem:[%s5698_s22 + $0xfd0] sm:$0xff]  ;;  %v4700_v3 = vpack.c.bf16 %v775_v60, %v771_v59  ;;  %v3934_v9 = vpack.c.bf16 %v772_v1, %v768_v0  ;;  %v4718_v60 = vpack.c.bf16 %v806_v54, %v802_v52  ;;  %v853_v52 = vld [vmem:[%s5698_s22 + $0x1268] sm:$0xff]  ;;  %v855_v54 = vld [vmem:[%s5698_s22 + $0x1278] sm:$0xff] }
 0x15e   : > { %4681 = vmatprep.subr.bf16.mxu1 %v4680_v7  ;;  %v779_v7 = vld [vmem:[%s5698_s22 + $0x1018] sm:$0xff]  ;;  %v4702_v10 = vpack.c.bf16 %v774_v4, %v770_v2  ;;  %v810_v0 = vld [vmem:[%s5698_s22 + $0x1110] sm:$0xff]  ;;  %v4720_v1 = vpack.c.bf16 %v815_v58, %v811_v57  ;;  %v821_v4 = vld [vmem:[%s5698_s22 + $0x1168] sm:$0xff] }
 0x15f   : > { %v814_v2 = vld [vmem:[%s5698_s22 + $0x1130] sm:$0xff]  ;;  %v848_v58 = vld [vmem:[%s5698_s22 + $0x1240] sm:$0xff] }
 0x160   : > { %3915 = vmatpush1.bf16.msra.mxu0 %v3914_v13  ;;  %v780_v13 = vld [vmem:[%s5698_s22 + $0x1020] sm:$0xff] }
 0x161   : > { %4683 = vmatpush1.bf16.msra.mxu1 %v4682_v14  ;;  %3917 = vmatprep.subr.bf16.mxu0 %v3916_v15  ;;  %v778_v14 = vld [vmem:[%s5698_s22 + $0x1010] sm:$0xff]  ;;  %v4704_v15 = vpack.c.bf16 %v783_v8, %v779_v7  ;;  %v3938_v22 = vpack.c.bf16 %v780_v13, %v776_v12  ;;  %v4722_v8 = vpack.c.bf16 %v814_v2, %v810_v0  ;;  %v861_v0 = vld [vmem:[%s5698_s22 + $0x12a8] sm:$0xff]  ;;  %v863_v2 = vld [vmem:[%s5698_s22 + $0x12b8] sm:$0xff] }
 0x162   : > { %4685 = vmatprep.subr.bf16.mxu1 %v4684_v19  ;;  %v787_v19 = vld [vmem:[%s5698_s22 + $0x1058] sm:$0xff]  ;;  %v4706_v23 = vpack.c.bf16 %v782_v16, %v778_v14  ;;  %v818_v12 = vld [vmem:[%s5698_s22 + $0x1150] sm:$0xff]  ;;  %v4724_v13 = vpack.c.bf16 %v823_v6, %v819_v5  ;;  %v829_v16 = vld [vmem:[%s5698_s22 + $0x11a8] sm:$0xff] }
 0x163   : > { %v4708_v28 = vpack.c.bf16 %v791_v20, %v787_v19  ;;  %v822_v14 = vld [vmem:[%s5698_s22 + $0x1170] sm:$0xff]  ;;  %v856_v6 = vld [vmem:[%s5698_s22 + $0x1280] sm:$0xff] }
 0x164   : > { %3919 = vmatpush1.bf16.msra.mxu0 %v3918_v25  ;;  %v784_v25 = vld [vmem:[%s5698_s22 + $0x1040] sm:$0xff]  ;;  %v4726_v20 = vpack.c.bf16 %v822_v14, %v818_v12  ;;  %v869_v12 = vld [vmem:[%s5698_s22 + $0x12e8] sm:$0xff]  ;;  %v871_v14 = vld [vmem:[%s5698_s22 + $0x12f8] sm:$0xff] }
 0x165   : > { %4687 = vmatpush1.bf16.msra.mxu1 %v4686_v26  ;;  %3921 = vmatprep.subr.bf16.mxu0 %v3920_v27  ;;  %v788_v26 = vld [vmem:[%s5698_s22 + $0x1060] sm:$0xff]  ;;  %v786_v27 = vld [vmem:[%s5698_s22 + $0x1050] sm:$0xff] }
 0x166   : > { %4689 = vmatprep.subr.bf16.mxu1 %v4688_v31  ;;  %v797_v31 = vld [vmem:[%s5698_s22 + $0x10a8] sm:$0xff]  ;;  %v3942_v35 = vpack.c.bf16 %v788_v26, %v784_v25  ;;  %v4710_v36 = vpack.c.bf16 %v790_v29, %v786_v27  ;;  %v4728_v25 = vpack.c.bf16 %v831_v18, %v827_v17  ;;  %v830_v26 = vld [vmem:[%s5698_s22 + $0x11b0] sm:$0xff]  ;;  %v835_v29 = vld [vmem:[%s5698_s22 + $0x11d8] sm:$0xff] }
 0x167   : > { %v833_v27 = vld [vmem:[%s5698_s22 + $0x11c8] sm:$0xff]  ;;  %v864_v18 = vld [vmem:[%s5698_s22 + $0x12c0] sm:$0xff] }
 0x168   : > { %3923 = vmatpush1.bf16.msra.mxu0 %v3922_v37  ;;  %v3944_v37 = vpack.c.bf16 %v797_v31, %v793_v30  ;;  %v839_v30 = vld [vmem:[%s5698_s22 + $0x11f8] sm:$0xff] }
 0x169   : > { %4691 = vmatpush1.bf16.msra.mxu1 %v4690_v38  ;;  %3925 = vmatprep.subr.bf16.mxu0 %v3924_v39  ;;  %v792_v38 = vld [vmem:[%s5698_s22 + $0x1080] sm:$0xff] }
 0x16a   : > { %4693 = vmatprep.subr.bf16.mxu1 %v4692_v43  ;;  %v796_v39 = vld [vmem:[%s5698_s22 + $0x10a0] sm:$0xff]  ;;  %v801_v43 = vld [vmem:[%s5698_s22 + $0x10c8] sm:$0xff] }
 0x16b   : > { %v3946_v47 = vpack.c.bf16 %v796_v39, %v792_v38  ;;  %v838_v38 = vld [vmem:[%s5698_s22 + $0x11f0] sm:$0xff]  ;;  %v841_v39 = vld [vmem:[%s5698_s22 + $0x1208] sm:$0xff] }
 0x16c   : > { %3927 = vmatpush1.bf16.msra.mxu0 %v3926_v49  ;;  %v3948_v49 = vpack.c.bf16 %v805_v44, %v801_v43  ;;  %v3968_v45 = vpack.c.bf16 %v845_v40, %v841_v39 }
 0x16d   : > { %4695 = vmatpush1.bf16.msra.mxu1 %v4694_v50  ;;  %3929 = vmatprep.subr.bf16.mxu0 %v3928_v51  ;;  %v800_v50 = vld [vmem:[%s5698_s22 + $0x10c0] sm:$0xff] }
 0x16e   : > { %4697 = vmatprep.subr.bf16.mxu1 %v4696_v55  ;;  %v804_v51 = vld [vmem:[%s5698_s22 + $0x10e0] sm:$0xff]  ;;  %v809_v55 = vld [vmem:[%s5698_s22 + $0x1108] sm:$0xff] }
 0x16f   : > { %v3950_v59 = vpack.c.bf16 %v804_v51, %v800_v50  ;;  %v846_v50 = vld [vmem:[%s5698_s22 + $0x1230] sm:$0xff]  ;;  %v849_v51 = vld [vmem:[%s5698_s22 + $0x1248] sm:$0xff] }
 0x170   : > { %3931 = vmatpush1.bf16.msra.mxu0 %v3930_v61  ;;  %v3952_v61 = vpack.c.bf16 %v813_v56, %v809_v55  ;;  %v3972_v57 = vpack.c.bf16 %v853_v52, %v849_v51 }
 0x171   : > { %4699 = vmatpush1.bf16.msra.mxu1 %v4698_v62  ;;  %3933 = vmatprep.subr.bf16.mxu0 %v3932_v63  ;;  %v808_v62 = vld [vmem:[%s5698_s22 + $0x1100] sm:$0xff] }
 0x172   : > { %4701 = vmatprep.subr.bf16.mxu1 %v4700_v3  ;;  %v812_v63 = vld [vmem:[%s5698_s22 + $0x1120] sm:$0xff]  ;;  %v817_v3 = vld [vmem:[%s5698_s22 + $0x1148] sm:$0xff] }
 0x173   : > { %v3954_v7 = vpack.c.bf16 %v812_v63, %v808_v62  ;;  %v854_v62 = vld [vmem:[%s5698_s22 + $0x1270] sm:$0xff]  ;;  %v857_v63 = vld [vmem:[%s5698_s22 + $0x1288] sm:$0xff] }
 0x174   : > { %3935 = vmatpush1.bf16.msra.mxu0 %v3934_v9  ;;  %v3956_v9 = vpack.c.bf16 %v821_v4, %v817_v3  ;;  %v3976_v5 = vpack.c.bf16 %v861_v0, %v857_v63 }
 0x175   : > { %4703 = vmatpush1.bf16.msra.mxu1 %v4702_v10  ;;  %3937 = vmatprep.subr.bf16.mxu0 %v3936_v11  ;;  %v816_v10 = vld [vmem:[%s5698_s22 + $0x1140] sm:$0xff] }
 0x176   : > { %4705 = vmatprep.subr.bf16.mxu1 %v4704_v15  ;;  %v820_v11 = vld [vmem:[%s5698_s22 + $0x1160] sm:$0xff]  ;;  %v825_v15 = vld [vmem:[%s5698_s22 + $0x1188] sm:$0xff] }
 0x177   : > { %2100 = vmatmul.mubr.f32.vlgmr.msra.gmra.mrb[0].mxu0 %v246_v21  ;;  %v3958_v19 = vpack.c.bf16 %v820_v11, %v816_v10  ;;  %v862_v10 = vld [vmem:[%s5698_s22 + $0x12b0] sm:$0xff]  ;;  %v865_v11 = vld [vmem:[%s5698_s22 + $0x12c8] sm:$0xff] }
 0x178   : > { %3939 = vmatpush1.bf16.msra.mxu0 %v3938_v22  ;;  %2952 = vmatmul.mubr.f32.vlgmr.msra.gmra.mrb[0].mxu1 %v246_v21  ;;  %v3960_v21 = vpack.c.bf16 %v829_v16, %v825_v15  ;;  %v824_v22 = vld [vmem:[%s5698_s22 + $0x1180] sm:$0xff]  ;;  %v3980_v17 = vpack.c.bf16 %v869_v12, %v865_v11 }
 0x179   : > { %4707 = vmatpush1.bf16.msra.mxu1 %v4706_v23  ;;  %3941 = vmatprep.subr.bf16.mxu0 %v3940_v24  ;;  %v828_v23 = vld [vmem:[%s5698_s22 + $0x11a0] sm:$0xff]  ;;  %v826_v24 = vld [vmem:[%s5698_s22 + $0x1190] sm:$0xff] }
 0x17a   : > { %4709 = vmatprep.subr.bf16.mxu1 %v4708_v28  ;;  %2170 = vmatprep.mubr.f32.mxu0 %v249_v34  ;;  %v837_v28 = vld [vmem:[%s5698_s22 + $0x11e8] sm:$0xff]  ;;  %v3962_v31 = vpack.c.bf16 %v828_v23, %v824_v22  ;;  %v4730_v32 = vpack.c.bf16 %v830_v26, %v826_v24  ;;  %v870_v22 = vld [vmem:[%s5698_s22 + $0x12f0] sm:$0xff]  ;;  %v879_v26 = vld [vmem:[%s5698_s22 + $0x1338] sm:$0xff] }
 0x17b   : > { %3022 = vmatprep.mubr.f32.mxu1 %v249_v34  ;;  %v3964_v33 = vpack.c.bf16 %v837_v28, %v833_v27  ;;  %v832_v34 = vld [vmem:[%s5698_s22 + $0x11c0] sm:$0xff]  ;;  %v873_v23 = vld [vmem:[%s5698_s22 + $0x1308] sm:$0xff] }
 0x17c   : > { %3943 = vmatpush1.bf16.msra.mxu0 %v3942_v35  ;;  %v836_v35 = vld [vmem:[%s5698_s22 + $0x11e0] sm:$0xff]  ;;  %v877_v24 = vld [vmem:[%s5698_s22 + $0x1328] sm:$0xff] }
 0x17d   : > { %4711 = vmatpush1.bf16.msra.mxu1 %v4710_v36  ;;  %3945 = vmatprep.subr.bf16.mxu0 %v3944_v37  ;;  %v834_v36 = vld [vmem:[%s5698_s22 + $0x11d0] sm:$0xff]  ;;  %v4732_v37 = vpack.c.bf16 %v839_v30, %v835_v29  ;;  %v3966_v43 = vpack.c.bf16 %v836_v35, %v832_v34  ;;  %v3984_v29 = vpack.c.bf16 %v877_v24, %v873_v23  ;;  %v872_v30 = vld [vmem:[%s5698_s22 + $0x1300] sm:$0xff]  ;;  %v881_v35 = vld [vmem:[%s5698_s22 + $0x1348] sm:$0xff] }
 0x17e   : > { %4713 = vmatprep.subr.bf16.mxu1 %v4712_v41  ;;  %v843_v41 = vld [vmem:[%s5698_s22 + $0x1218] sm:$0xff]  ;;  %v4734_v44 = vpack.c.bf16 %v838_v38, %v834_v36  ;;  %v878_v34 = vld [vmem:[%s5698_s22 + $0x1330] sm:$0xff]  ;;  %v885_v36 = vld [vmem:[%s5698_s22 + $0x1368] sm:$0xff] }
 0x17f   : > { %v887_v38 = vld [vmem:[%s5698_s22 + $0x1378] sm:$0xff]  ;;  %v248_v23 = vld [vmem:[#allocation2 + $0x40] sm:$0xff] }
 0x180   : > { %3947 = vmatpush1.bf16.msra.mxu0 %v3946_v47  ;;  %v844_v47 = vld [vmem:[%s5698_s22 + $0x1220] sm:$0xff] }
 0x181   : > { %4715 = vmatpush1.bf16.msra.mxu1 %v4714_v48  ;;  %3949 = vmatprep.subr.bf16.mxu0 %v3948_v49  ;;  %v842_v48 = vld [vmem:[%s5698_s22 + $0x1210] sm:$0xff]  ;;  %v4736_v49 = vpack.c.bf16 %v847_v42, %v843_v41  ;;  %v3970_v55 = vpack.c.bf16 %v844_v47, %v840_v46  ;;  %v3988_v41 = vpack.c.bf16 %v885_v36, %v881_v35  ;;  %v880_v42 = vld [vmem:[%s5698_s22 + $0x1340] sm:$0xff]  ;;  %v889_v47 = vld [vmem:[%s5698_s22 + $0x1388] sm:$0xff] }
 0x182   : > { %4717 = vmatprep.subr.bf16.mxu1 %v4716_v53  ;;  %v851_v53 = vld [vmem:[%s5698_s22 + $0x1258] sm:$0xff]  ;;  %v4738_v56 = vpack.c.bf16 %v846_v50, %v842_v48  ;;  %v886_v46 = vld [vmem:[%s5698_s22 + $0x1370] sm:$0xff]  ;;  %v893_v48 = vld [vmem:[%s5698_s22 + $0x13a8] sm:$0xff] }
 0x183   : > { %v895_v50 = vld [vmem:[%s5698_s22 + $0x13b8] sm:$0xff] }
 0x184   : > { %3951 = vmatpush1.bf16.msra.mxu0 %v3950_v59  ;;  %v852_v59 = vld [vmem:[%s5698_s22 + $0x1260] sm:$0xff]  ;;  %v927_v35 = vld [vmem:[%s5698_s22 + $0x14b8] sm:$0xff] }
 0x185   : > { %4719 = vmatpush1.bf16.msra.mxu1 %v4718_v60  ;;  %3953 = vmatprep.subr.bf16.mxu0 %v3952_v61  ;;  %v850_v60 = vld [vmem:[%s5698_s22 + $0x1250] sm:$0xff]  ;;  %v4740_v61 = vpack.c.bf16 %v855_v54, %v851_v53  ;;  %v3974_v3 = vpack.c.bf16 %v852_v59, %v848_v58  ;;  %v3992_v53 = vpack.c.bf16 %v893_v48, %v889_v47  ;;  %v888_v54 = vld [vmem:[%s5698_s22 + $0x1380] sm:$0xff]  ;;  %v897_v59 = vld [vmem:[%s5698_s22 + $0x13c8] sm:$0xff] }
 0x186   : > { %4721 = vmatprep.subr.bf16.mxu1 %v4720_v1  ;;  %v859_v1 = vld [vmem:[%s5698_s22 + $0x1298] sm:$0xff]  ;;  %v4742_v4 = vpack.c.bf16 %v854_v62, %v850_v60  ;;  %v894_v58 = vld [vmem:[%s5698_s22 + $0x13b0] sm:$0xff]  ;;  %v901_v60 = vld [vmem:[%s5698_s22 + $0x13e8] sm:$0xff] }
 0x187   : > { %v903_v62 = vld [vmem:[%s5698_s22 + $0x13f8] sm:$0xff] }
 0x188   : > { %3955 = vmatpush1.bf16.msra.mxu0 %v3954_v7  ;;  %v860_v7 = vld [vmem:[%s5698_s22 + $0x12a0] sm:$0xff]  ;;  %v251_v36 = vld [vmem:[#allocation2 + $0x58] sm:$0xff] }
 0x189   : > { %4723 = vmatpush1.bf16.msra.mxu1 %v4722_v8  ;;  %3957 = vmatprep.subr.bf16.mxu0 %v3956_v9  ;;  %v858_v8 = vld [vmem:[%s5698_s22 + $0x1290] sm:$0xff]  ;;  %v4744_v9 = vpack.c.bf16 %v863_v2, %v859_v1  ;;  %v3978_v15 = vpack.c.bf16 %v860_v7, %v856_v6  ;;  %v3996_v1 = vpack.c.bf16 %v901_v60, %v897_v59  ;;  %v896_v2 = vld [vmem:[%s5698_s22 + $0x13c0] sm:$0xff]  ;;  %v905_v7 = vld [vmem:[%s5698_s22 + $0x1408] sm:$0xff] }
 0x18a   : > { %4725 = vmatprep.subr.bf16.mxu1 %v4724_v13  ;;  %v867_v13 = vld [vmem:[%s5698_s22 + $0x12d8] sm:$0xff]  ;;  %v4746_v16 = vpack.c.bf16 %v862_v10, %v858_v8  ;;  %v902_v6 = vld [vmem:[%s5698_s22 + $0x13f0] sm:$0xff]  ;;  %v909_v8 = vld [vmem:[%s5698_s22 + $0x1428] sm:$0xff] }
 0x18b   : > { %v911_v10 = vld [vmem:[%s5698_s22 + $0x1438] sm:$0xff] }
 0x18c   : > { %3959 = vmatpush1.bf16.msra.mxu0 %v3958_v19  ;;  %v868_v19 = vld [vmem:[%s5698_s22 + $0x12e0] sm:$0xff]  ;;  %v931_v47 = vld [vmem:[%s5698_s22 + $0x14d8] sm:$0xff] }
 0x18d   : > { %4727 = vmatpush1.bf16.msra.mxu1 %v4726_v20  ;;  %3961 = vmatprep.subr.bf16.mxu0 %v3960_v21  ;;  %v866_v20 = vld [vmem:[%s5698_s22 + $0x12d0] sm:$0xff]  ;;  %v4748_v21 = vpack.c.bf16 %v871_v14, %v867_v13  ;;  %v3982_v27 = vpack.c.bf16 %v868_v19, %v864_v18  ;;  %v4000_v13 = vpack.c.bf16 %v909_v8, %v905_v7  ;;  %v904_v14 = vld [vmem:[%s5698_s22 + $0x1400] sm:$0xff]  ;;  %v913_v19 = vld [vmem:[%s5698_s22 + $0x1448] sm:$0xff] }
 0x18e   : > { %4729 = vmatprep.subr.bf16.mxu1 %v4728_v25  ;;  %v875_v25 = vld [vmem:[%s5698_s22 + $0x1318] sm:$0xff]  ;;  %v4750_v28 = vpack.c.bf16 %v870_v22, %v866_v20  ;;  %v910_v18 = vld [vmem:[%s5698_s22 + $0x1430] sm:$0xff]  ;;  %v917_v20 = vld [vmem:[%s5698_s22 + $0x1468] sm:$0xff] }
 0x18f   : > { %v919_v22 = vld [vmem:[%s5698_s22 + $0x1478] sm:$0xff] }
 0x190   : > { %3963 = vmatpush1.bf16.msra.mxu0 %v3962_v31  ;;  %v876_v31 = vld [vmem:[%s5698_s22 + $0x1320] sm:$0xff]  ;;  %v935_v48 = vld [vmem:[%s5698_s22 + $0x14f8] sm:$0xff] }
 0x191   : > { %4731 = vmatpush1.bf16.msra.mxu1 %v4730_v32  ;;  %3965 = vmatprep.subr.bf16.mxu0 %v3964_v33  ;;  %v874_v32 = vld [vmem:[%s5698_s22 + $0x1310] sm:$0xff]  ;;  %v4752_v33 = vpack.c.bf16 %v879_v26, %v875_v25  ;;  %v3986_v39 = vpack.c.bf16 %v876_v31, %v872_v30  ;;  %v4004_v26 = vpack.c.bf16 %v917_v20, %v913_v19  ;;  %v939_v59 = vld [vmem:[%s5698_s22 + $0x1518] sm:$0xff] }
 0x192   : > { %4733 = vmatprep.subr.bf16.mxu1 %v4732_v37  ;;  %v883_v37 = vld [vmem:[%s5698_s22 + $0x1358] sm:$0xff]  ;;  %v4754_v40 = vpack.c.bf16 %v878_v34, %v874_v32  ;;  %v918_v31 = vld [vmem:[%s5698_s22 + $0x1470] sm:$0xff]  ;;  %v921_v32 = vld [vmem:[%s5698_s22 + $0x1488] sm:$0xff] }
 0x193   : > { %v923_v34 = vld [vmem:[%s5698_s22 + $0x1498] sm:$0xff] }
 0x194   : > { %3967 = vmatpush1.bf16.msra.mxu0 %v3966_v43  ;;  %v884_v43 = vld [vmem:[%s5698_s22 + $0x1360] sm:$0xff]  ;;  %v943_v60 = vld [vmem:[%s5698_s22 + $0x1538] sm:$0xff] }
 0x195   : > { %4735 = vmatpush1.bf16.msra.mxu1 %v4734_v44  ;;  %3969 = vmatprep.subr.bf16.mxu0 %v3968_v45  ;;  %v882_v44 = vld [vmem:[%s5698_s22 + $0x1350] sm:$0xff]  ;;  %v4756_v45 = vpack.c.bf16 %v887_v38, %v883_v37  ;;  %v3990_v51 = vpack.c.bf16 %v884_v43, %v880_v42  ;;  %v4776_v43 = vpack.c.bf16 %v927_v35, %v923_v34  ;;  %v947_v7 = vld [vmem:[%s5698_s22 + $0x1558] sm:$0xff] }
 0x196   : > { %4737 = vmatprep.subr.bf16.mxu1 %v4736_v49  ;;  %v891_v49 = vld [vmem:[%s5698_s22 + $0x1398] sm:$0xff]  ;;  %v4758_v52 = vpack.c.bf16 %v886_v46, %v882_v44  ;;  %v922_v42 = vld [vmem:[%s5698_s22 + $0x1490] sm:$0xff]  ;;  %v933_v46 = vld [vmem:[%s5698_s22 + $0x14e8] sm:$0xff] }
 0x197   : > { %v926_v44 = vld [vmem:[%s5698_s22 + $0x14b0] sm:$0xff]  ;;  %v951_v8 = vld [vmem:[%s5698_s22 + $0x1578] sm:$0xff] }
 0x198   : > { %3971 = vmatpush1.bf16.msra.mxu0 %v3970_v55  ;;  %v892_v55 = vld [vmem:[%s5698_s22 + $0x13a0] sm:$0xff]  ;;  %v955_v19 = vld [vmem:[%s5698_s22 + $0x1598] sm:$0xff] }
 0x199   : > { %4739 = vmatpush1.bf16.msra.mxu1 %v4738_v56  ;;  %3973 = vmatprep.subr.bf16.mxu0 %v3972_v57  ;;  %v890_v56 = vld [vmem:[%s5698_s22 + $0x1390] sm:$0xff]  ;;  %v4760_v57 = vpack.c.bf16 %v895_v50, %v891_v49  ;;  %v3994_v63 = vpack.c.bf16 %v892_v55, %v888_v54  ;;  %v4778_v50 = vpack.c.bf16 %v926_v44, %v922_v42  ;;  %v959_v20 = vld [vmem:[%s5698_s22 + $0x15b8] sm:$0xff]  ;;  %v973_v42 = vld [vmem:[%s5698_s22 + $0x1628] sm:$0xff] }
 0x19a   : > { %4741 = vmatprep.subr.bf16.mxu1 %v4740_v61  ;;  %v899_v61 = vld [vmem:[%s5698_s22 + $0x13d8] sm:$0xff]  ;;  %v4762_v0 = vpack.c.bf16 %v894_v58, %v890_v56  ;;  %v930_v54 = vld [vmem:[%s5698_s22 + $0x14d0] sm:$0xff]  ;;  %v4780_v55 = vpack.c.bf16 %v935_v48, %v931_v47  ;;  %v941_v58 = vld [vmem:[%s5698_s22 + $0x1528] sm:$0xff] }
 0x19b   : > { %v934_v56 = vld [vmem:[%s5698_s22 + $0x14f0] sm:$0xff]  ;;  %v975_v44 = vld [vmem:[%s5698_s22 + $0x1638] sm:$0xff]  ;;  %v968_v48 = vld [vmem:[%s5698_s22 + $0x1600] sm:$0xff] }
 0x19c   : > { %3975 = vmatpush1.bf16.msra.mxu0 %v3974_v3  ;;  %v900_v3 = vld [vmem:[%s5698_s22 + $0x13e0] sm:$0xff] }
 0x19d   : > { %4743 = vmatpush1.bf16.msra.mxu1 %v4742_v4  ;;  %3977 = vmatprep.subr.bf16.mxu0 %v3976_v5  ;;  %v898_v4 = vld [vmem:[%s5698_s22 + $0x13d0] sm:$0xff]  ;;  %v4764_v5 = vpack.c.bf16 %v903_v62, %v899_v61  ;;  %v3998_v11 = vpack.c.bf16 %v900_v3, %v896_v2  ;;  %v4782_v62 = vpack.c.bf16 %v934_v56, %v930_v54  ;;  %v981_v54 = vld [vmem:[%s5698_s22 + $0x1668] sm:$0xff]  ;;  %v983_v56 = vld [vmem:[%s5698_s22 + $0x1678] sm:$0xff] }
 0x19e   : > { %4745 = vmatprep.subr.bf16.mxu1 %v4744_v9  ;;  %v907_v9 = vld [vmem:[%s5698_s22 + $0x1418] sm:$0xff]  ;;  %v4766_v12 = vpack.c.bf16 %v902_v6, %v898_v4  ;;  %v938_v2 = vld [vmem:[%s5698_s22 + $0x1510] sm:$0xff]  ;;  %v4784_v3 = vpack.c.bf16 %v943_v60, %v939_v59  ;;  %v949_v6 = vld [vmem:[%s5698_s22 + $0x1568] sm:$0xff] }
 0x19f   : > { %v942_v4 = vld [vmem:[%s5698_s22 + $0x1530] sm:$0xff]  ;;  %v976_v60 = vld [vmem:[%s5698_s22 + $0x1640] sm:$0xff] }
 0x1a0   : > { %3979 = vmatpush1.bf16.msra.mxu0 %v3978_v15  ;;  %v908_v15 = vld [vmem:[%s5698_s22 + $0x1420] sm:$0xff] }
 0x1a1   : > { %4747 = vmatpush1.bf16.msra.mxu1 %v4746_v16  ;;  %3981 = vmatprep.subr.bf16.mxu0 %v3980_v17  ;;  %v906_v16 = vld [vmem:[%s5698_s22 + $0x1410] sm:$0xff]  ;;  %v4768_v17 = vpack.c.bf16 %v911_v10, %v907_v9  ;;  %v4002_v24 = vpack.c.bf16 %v908_v15, %v904_v14  ;;  %v4786_v10 = vpack.c.bf16 %v942_v4, %v938_v2  ;;  %v989_v2 = vld [vmem:[%s5698_s22 + $0x16a8] sm:$0xff]  ;;  %v991_v4 = vld [vmem:[%s5698_s22 + $0x16b8] sm:$0xff] }
 0x1a2   : > { %4749 = vmatprep.subr.bf16.mxu1 %v4748_v21  ;;  %v915_v21 = vld [vmem:[%s5698_s22 + $0x1458] sm:$0xff]  ;;  %v4770_v25 = vpack.c.bf16 %v910_v18, %v906_v16  ;;  %v946_v14 = vld [vmem:[%s5698_s22 + $0x1550] sm:$0xff]  ;;  %v4788_v15 = vpack.c.bf16 %v951_v8, %v947_v7  ;;  %v957_v18 = vld [vmem:[%s5698_s22 + $0x15a8] sm:$0xff] }
 0x1a3   : > { %v4772_v30 = vpack.c.bf16 %v919_v22, %v915_v21  ;;  %v950_v16 = vld [vmem:[%s5698_s22 + $0x1570] sm:$0xff]  ;;  %v984_v8 = vld [vmem:[%s5698_s22 + $0x1680] sm:$0xff] }
 0x1a4   : > { %3983 = vmatpush1.bf16.msra.mxu0 %v3982_v27  ;;  %v912_v27 = vld [vmem:[%s5698_s22 + $0x1440] sm:$0xff]  ;;  %v4790_v22 = vpack.c.bf16 %v950_v16, %v946_v14  ;;  %v997_v14 = vld [vmem:[%s5698_s22 + $0x16e8] sm:$0xff]  ;;  %v999_v16 = vld [vmem:[%s5698_s22 + $0x16f8] sm:$0xff] }
 0x1a5   : > { %4751 = vmatpush1.bf16.msra.mxu1 %v4750_v28  ;;  %3985 = vmatprep.subr.bf16.mxu0 %v3984_v29  ;;  %v916_v28 = vld [vmem:[%s5698_s22 + $0x1460] sm:$0xff]  ;;  %v914_v29 = vld [vmem:[%s5698_s22 + $0x1450] sm:$0xff] }
 0x1a6   : > { %4753 = vmatprep.subr.bf16.mxu1 %v4752_v33  ;;  %v925_v33 = vld [vmem:[%s5698_s22 + $0x14a8] sm:$0xff]  ;;  %v4006_v37 = vpack.c.bf16 %v916_v28, %v912_v27  ;;  %v4774_v38 = vpack.c.bf16 %v918_v31, %v914_v29  ;;  %v4792_v27 = vpack.c.bf16 %v959_v20, %v955_v19  ;;  %v958_v28 = vld [vmem:[%s5698_s22 + $0x15b0] sm:$0xff]  ;;  %v963_v31 = vld [vmem:[%s5698_s22 + $0x15d8] sm:$0xff] }
 0x1a7   : > { %v961_v29 = vld [vmem:[%s5698_s22 + $0x15c8] sm:$0xff]  ;;  %v992_v20 = vld [vmem:[%s5698_s22 + $0x16c0] sm:$0xff] }
 0x1a8   : > { %3987 = vmatpush1.bf16.msra.mxu0 %v3986_v39  ;;  %v4008_v39 = vpack.c.bf16 %v925_v33, %v921_v32  ;;  %v967_v32 = vld [vmem:[%s5698_s22 + $0x15f8] sm:$0xff] }
 0x1a9   : > { %4755 = vmatpush1.bf16.msra.mxu1 %v4754_v40  ;;  %3989 = vmatprep.subr.bf16.mxu0 %v3988_v41  ;;  %v920_v40 = vld [vmem:[%s5698_s22 + $0x1480] sm:$0xff] }
 0x1aa   : > { %4757 = vmatprep.subr.bf16.mxu1 %v4756_v45  ;;  %v924_v41 = vld [vmem:[%s5698_s22 + $0x14a0] sm:$0xff]  ;;  %v929_v45 = vld [vmem:[%s5698_s22 + $0x14c8] sm:$0xff] }
 0x1ab   : > { %v4010_v49 = vpack.c.bf16 %v924_v41, %v920_v40  ;;  %v966_v40 = vld [vmem:[%s5698_s22 + $0x15f0] sm:$0xff]  ;;  %v969_v41 = vld [vmem:[%s5698_s22 + $0x1608] sm:$0xff] }
 0x1ac   : > { %3991 = vmatpush1.bf16.msra.mxu0 %v3990_v51  ;;  %v4012_v51 = vpack.c.bf16 %v933_v46, %v929_v45  ;;  %v4032_v47 = vpack.c.bf16 %v973_v42, %v969_v41 }
 0x1ad   : > { %4759 = vmatpush1.bf16.msra.mxu1 %v4758_v52  ;;  %3993 = vmatprep.subr.bf16.mxu0 %v3992_v53  ;;  %v928_v52 = vld [vmem:[%s5698_s22 + $0x14c0] sm:$0xff] }
 0x1ae   : > { %4761 = vmatprep.subr.bf16.mxu1 %v4760_v57  ;;  %v932_v53 = vld [vmem:[%s5698_s22 + $0x14e0] sm:$0xff]  ;;  %v937_v57 = vld [vmem:[%s5698_s22 + $0x1508] sm:$0xff] }
 0x1af   : > { %v4014_v61 = vpack.c.bf16 %v932_v53, %v928_v52  ;;  %v974_v52 = vld [vmem:[%s5698_s22 + $0x1630] sm:$0xff]  ;;  %v977_v53 = vld [vmem:[%s5698_s22 + $0x1648] sm:$0xff] }
 0x1b0   : > { %3995 = vmatpush1.bf16.msra.mxu0 %v3994_v63  ;;  %v4016_v63 = vpack.c.bf16 %v941_v58, %v937_v57  ;;  %v4036_v59 = vpack.c.bf16 %v981_v54, %v977_v53 }
 0x1b1   : > { %4763 = vmatpush1.bf16.msra.mxu1 %v4762_v0  ;;  %3997 = vmatprep.subr.bf16.mxu0 %v3996_v1  ;;  %v936_v0 = vld [vmem:[%s5698_s22 + $0x1500] sm:$0xff] }
 0x1b2   : > { %4765 = vmatprep.subr.bf16.mxu1 %v4764_v5  ;;  %v940_v1 = vld [vmem:[%s5698_s22 + $0x1520] sm:$0xff]  ;;  %v945_v5 = vld [vmem:[%s5698_s22 + $0x1548] sm:$0xff] }
 0x1b3   : > { %v4018_v9 = vpack.c.bf16 %v940_v1, %v936_v0  ;;  %v982_v0 = vld [vmem:[%s5698_s22 + $0x1670] sm:$0xff]  ;;  %v985_v1 = vld [vmem:[%s5698_s22 + $0x1688] sm:$0xff] }
 0x1b4   : > { %3999 = vmatpush1.bf16.msra.mxu0 %v3998_v11  ;;  %v4020_v11 = vpack.c.bf16 %v949_v6, %v945_v5  ;;  %v4040_v7 = vpack.c.bf16 %v989_v2, %v985_v1 }
 0x1b5   : > { %4767 = vmatpush1.bf16.msra.mxu1 %v4766_v12  ;;  %4001 = vmatprep.subr.bf16.mxu0 %v4000_v13  ;;  %v944_v12 = vld [vmem:[%s5698_s22 + $0x1540] sm:$0xff] }
 0x1b6   : > { %4769 = vmatprep.subr.bf16.mxu1 %v4768_v17  ;;  %v948_v13 = vld [vmem:[%s5698_s22 + $0x1560] sm:$0xff]  ;;  %v953_v17 = vld [vmem:[%s5698_s22 + $0x1588] sm:$0xff] }
 0x1b7   : > { %2171 = vmatmul.mubr.f32.vlgmr.msra.gmra.mrb[0].mxu0 %v248_v23  ;;  %v4022_v21 = vpack.c.bf16 %v948_v13, %v944_v12  ;;  %v990_v12 = vld [vmem:[%s5698_s22 + $0x16b0] sm:$0xff]  ;;  %v993_v13 = vld [vmem:[%s5698_s22 + $0x16c8] sm:$0xff] }
 0x1b8   : > { %4003 = vmatpush1.bf16.msra.mxu0 %v4002_v24  ;;  %3023 = vmatmul.mubr.f32.vlgmr.msra.gmra.mrb[0].mxu1 %v248_v23  ;;  %v4024_v23 = vpack.c.bf16 %v957_v18, %v953_v17  ;;  %v952_v24 = vld [vmem:[%s5698_s22 + $0x1580] sm:$0xff]  ;;  %v4044_v19 = vpack.c.bf16 %v997_v14, %v993_v13 }
 0x1b9   : > { %4771 = vmatpush1.bf16.msra.mxu1 %v4770_v25  ;;  %4005 = vmatprep.subr.bf16.mxu0 %v4004_v26  ;;  %v956_v25 = vld [vmem:[%s5698_s22 + $0x15a0] sm:$0xff]  ;;  %v954_v26 = vld [vmem:[%s5698_s22 + $0x1590] sm:$0xff] }
 0x1ba   : > { %4773 = vmatprep.subr.bf16.mxu1 %v4772_v30  ;;  %2241 = vmatprep.mubr.f32.mxu0 %v251_v36  ;;  %v965_v30 = vld [vmem:[%s5698_s22 + $0x15e8] sm:$0xff]  ;;  %v4026_v33 = vpack.c.bf16 %v956_v25, %v952_v24  ;;  %v4794_v34 = vpack.c.bf16 %v958_v28, %v954_v26  ;;  %v998_v24 = vld [vmem:[%s5698_s22 + $0x16f0] sm:$0xff]  ;;  %v1007_v28 = vld [vmem:[%s5698_s22 + $0x1738] sm:$0xff] }
 0x1bb   : > { %3093 = vmatprep.mubr.f32.mxu1 %v251_v36  ;;  %v4028_v35 = vpack.c.bf16 %v965_v30, %v961_v29  ;;  %v960_v36 = vld [vmem:[%s5698_s22 + $0x15c0] sm:$0xff]  ;;  %v1001_v25 = vld [vmem:[%s5698_s22 + $0x1708] sm:$0xff] }
 0x1bc   : > { %4007 = vmatpush1.bf16.msra.mxu0 %v4006_v37  ;;  %v964_v37 = vld [vmem:[%s5698_s22 + $0x15e0] sm:$0xff]  ;;  %v1005_v26 = vld [vmem:[%s5698_s22 + $0x1728] sm:$0xff] }
 0x1bd   : > { %4775 = vmatpush1.bf16.msra.mxu1 %v4774_v38  ;;  %4009 = vmatprep.subr.bf16.mxu0 %v4008_v39  ;;  %v962_v38 = vld [vmem:[%s5698_s22 + $0x15d0] sm:$0xff]  ;;  %v4796_v39 = vpack.c.bf16 %v967_v32, %v963_v31  ;;  %v4030_v45 = vpack.c.bf16 %v964_v37, %v960_v36  ;;  %v4048_v31 = vpack.c.bf16 %v1005_v26, %v1001_v25  ;;  %v1000_v32 = vld [vmem:[%s5698_s22 + $0x1700] sm:$0xff]  ;;  %v1009_v37 = vld [vmem:[%s5698_s22 + $0x1748] sm:$0xff] }
 0x1be   : > { %4777 = vmatprep.subr.bf16.mxu1 %v4776_v43  ;;  %v971_v43 = vld [vmem:[%s5698_s22 + $0x1618] sm:$0xff]  ;;  %v4798_v46 = vpack.c.bf16 %v966_v40, %v962_v38  ;;  %v1006_v36 = vld [vmem:[%s5698_s22 + $0x1730] sm:$0xff]  ;;  %v1013_v38 = vld [vmem:[%s5698_s22 + $0x1768] sm:$0xff] }
 0x1bf   : > { %v1015_v40 = vld [vmem:[%s5698_s22 + $0x1778] sm:$0xff]  ;;  %v250_v25 = vld [vmem:[#allocation2 + $0x50] sm:$0xff] }
 0x1c0   : > { %4011 = vmatpush1.bf16.msra.mxu0 %v4010_v49  ;;  %v972_v49 = vld [vmem:[%s5698_s22 + $0x1620] sm:$0xff] }
 0x1c1   : > { %4779 = vmatpush1.bf16.msra.mxu1 %v4778_v50  ;;  %4013 = vmatprep.subr.bf16.mxu0 %v4012_v51  ;;  %v970_v50 = vld [vmem:[%s5698_s22 + $0x1610] sm:$0xff]  ;;  %v4800_v51 = vpack.c.bf16 %v975_v44, %v971_v43  ;;  %v4034_v57 = vpack.c.bf16 %v972_v49, %v968_v48  ;;  %v4052_v43 = vpack.c.bf16 %v1013_v38, %v1009_v37  ;;  %v1008_v44 = vld [vmem:[%s5698_s22 + $0x1740] sm:$0xff]  ;;  %v1017_v49 = vld [vmem:[%s5698_s22 + $0x1788] sm:$0xff] }
 0x1c2   : > { %4781 = vmatprep.subr.bf16.mxu1 %v4780_v55  ;;  %v979_v55 = vld [vmem:[%s5698_s22 + $0x1658] sm:$0xff]  ;;  %v4802_v58 = vpack.c.bf16 %v974_v52, %v970_v50  ;;  %v1014_v48 = vld [vmem:[%s5698_s22 + $0x1770] sm:$0xff]  ;;  %v1021_v50 = vld [vmem:[%s5698_s22 + $0x17a8] sm:$0xff] }
 0x1c3   : > { %v1023_v52 = vld [vmem:[%s5698_s22 + $0x17b8] sm:$0xff]  ;;  %v253_v38 = vld [vmem:[#allocation2 + $0x68] sm:$0xff] }
 0x1c4   : > { %4015 = vmatpush1.bf16.msra.mxu0 %v4014_v61  ;;  %v980_v61 = vld [vmem:[%s5698_s22 + $0x1660] sm:$0xff]  ;;  %v1055_v37 = vld [vmem:[%s5698_s22 + $0x18b8] sm:$0xff] }
 0x1c5   : > { %4783 = vmatpush1.bf16.msra.mxu1 %v4782_v62  ;;  %4017 = vmatprep.subr.bf16.mxu0 %v4016_v63  ;;  %v978_v62 = vld [vmem:[%s5698_s22 + $0x1650] sm:$0xff]  ;;  %v4804_v63 = vpack.c.bf16 %v983_v56, %v979_v55  ;;  %v4038_v5 = vpack.c.bf16 %v980_v61, %v976_v60  ;;  %v4056_v55 = vpack.c.bf16 %v1021_v50, %v1017_v49  ;;  %v1016_v56 = vld [vmem:[%s5698_s22 + $0x1780] sm:$0xff]  ;;  %v1025_v61 = vld [vmem:[%s5698_s22 + $0x17c8] sm:$0xff] }
 0x1c6   : > { %4785 = vmatprep.subr.bf16.mxu1 %v4784_v3  ;;  %v987_v3 = vld [vmem:[%s5698_s22 + $0x1698] sm:$0xff]  ;;  %v4806_v6 = vpack.c.bf16 %v982_v0, %v978_v62  ;;  %v1022_v60 = vld [vmem:[%s5698_s22 + $0x17b0] sm:$0xff]  ;;  %v1029_v62 = vld [vmem:[%s5698_s22 + $0x17e8] sm:$0xff] }
 0x1c7   : > { %v1031_v0 = vld [vmem:[%s5698_s22 + $0x17f8] sm:$0xff] }
 0x1c8   : > { %4019 = vmatpush1.bf16.msra.mxu0 %v4018_v9  ;;  %v988_v9 = vld [vmem:[%s5698_s22 + $0x16a0] sm:$0xff]  ;;  %v1059_v49 = vld [vmem:[%s5698_s22 + $0x18d8] sm:$0xff] }
 0x1c9   : > { %4787 = vmatpush1.bf16.msra.mxu1 %v4786_v10  ;;  %4021 = vmatprep.subr.bf16.mxu0 %v4020_v11  ;;  %v986_v10 = vld [vmem:[%s5698_s22 + $0x1690] sm:$0xff]  ;;  %v4808_v11 = vpack.c.bf16 %v991_v4, %v987_v3  ;;  %v4042_v17 = vpack.c.bf16 %v988_v9, %v984_v8  ;;  %v4060_v3 = vpack.c.bf16 %v1029_v62, %v1025_v61  ;;  %v1024_v4 = vld [vmem:[%s5698_s22 + $0x17c0] sm:$0xff]  ;;  %v1033_v9 = vld [vmem:[%s5698_s22 + $0x1808] sm:$0xff] }
 0x1ca   : > { %4789 = vmatprep.subr.bf16.mxu1 %v4788_v15  ;;  %v995_v15 = vld [vmem:[%s5698_s22 + $0x16d8] sm:$0xff]  ;;  %v4810_v18 = vpack.c.bf16 %v990_v12, %v986_v10  ;;  %v1030_v8 = vld [vmem:[%s5698_s22 + $0x17f0] sm:$0xff]  ;;  %v1037_v10 = vld [vmem:[%s5698_s22 + $0x1828] sm:$0xff] }
 0x1cb   : > { %v1039_v12 = vld [vmem:[%s5698_s22 + $0x1838] sm:$0xff] }
 0x1cc   : > { %4023 = vmatpush1.bf16.msra.mxu0 %v4022_v21  ;;  %v996_v21 = vld [vmem:[%s5698_s22 + $0x16e0] sm:$0xff]  ;;  %v1063_v50 = vld [vmem:[%s5698_s22 + $0x18f8] sm:$0xff] }
 0x1cd   : > { %4791 = vmatpush1.bf16.msra.mxu1 %v4790_v22  ;;  %4025 = vmatprep.subr.bf16.mxu0 %v4024_v23  ;;  %v994_v22 = vld [vmem:[%s5698_s22 + $0x16d0] sm:$0xff]  ;;  %v4812_v23 = vpack.c.bf16 %v999_v16, %v995_v15  ;;  %v4046_v29 = vpack.c.bf16 %v996_v21, %v992_v20  ;;  %v4064_v15 = vpack.c.bf16 %v1037_v10, %v1033_v9  ;;  %v1032_v16 = vld [vmem:[%s5698_s22 + $0x1800] sm:$0xff]  ;;  %v1041_v21 = vld [vmem:[%s5698_s22 + $0x1848] sm:$0xff] }
 0x1ce   : > { %4793 = vmatprep.subr.bf16.mxu1 %v4792_v27  ;;  %v1003_v27 = vld [vmem:[%s5698_s22 + $0x1718] sm:$0xff]  ;;  %v4814_v30 = vpack.c.bf16 %v998_v24, %v994_v22  ;;  %v1038_v20 = vld [vmem:[%s5698_s22 + $0x1830] sm:$0xff]  ;;  %v1045_v22 = vld [vmem:[%s5698_s22 + $0x1868] sm:$0xff] }
 0x1cf   : > { %v1047_v24 = vld [vmem:[%s5698_s22 + $0x1878] sm:$0xff] }
 0x1d0   : > { %4027 = vmatpush1.bf16.msra.mxu0 %v4026_v33  ;;  %v1004_v33 = vld [vmem:[%s5698_s22 + $0x1720] sm:$0xff]  ;;  %v1067_v61 = vld [vmem:[%s5698_s22 + $0x1918] sm:$0xff] }
 0x1d1   : > { %4795 = vmatpush1.bf16.msra.mxu1 %v4794_v34  ;;  %4029 = vmatprep.subr.bf16.mxu0 %v4028_v35  ;;  %v1002_v34 = vld [vmem:[%s5698_s22 + $0x1710] sm:$0xff]  ;;  %v4816_v35 = vpack.c.bf16 %v1007_v28, %v1003_v27  ;;  %v4050_v41 = vpack.c.bf16 %v1004_v33, %v1000_v32  ;;  %v4068_v28 = vpack.c.bf16 %v1045_v22, %v1041_v21  ;;  %v1071_v62 = vld [vmem:[%s5698_s22 + $0x1938] sm:$0xff] }
 0x1d2   : > { %4797 = vmatprep.subr.bf16.mxu1 %v4796_v39  ;;  %v1011_v39 = vld [vmem:[%s5698_s22 + $0x1758] sm:$0xff]  ;;  %v4818_v42 = vpack.c.bf16 %v1006_v36, %v1002_v34  ;;  %v1046_v33 = vld [vmem:[%s5698_s22 + $0x1870] sm:$0xff]  ;;  %v1049_v34 = vld [vmem:[%s5698_s22 + $0x1888] sm:$0xff] }
 0x1d3   : > { %v1051_v36 = vld [vmem:[%s5698_s22 + $0x1898] sm:$0xff] }
 0x1d4   : > { %4031 = vmatpush1.bf16.msra.mxu0 %v4030_v45  ;;  %v1012_v45 = vld [vmem:[%s5698_s22 + $0x1760] sm:$0xff]  ;;  %v1075_v9 = vld [vmem:[%s5698_s22 + $0x1958] sm:$0xff] }
 0x1d5   : > { %4799 = vmatpush1.bf16.msra.mxu1 %v4798_v46  ;;  %4033 = vmatprep.subr.bf16.mxu0 %v4032_v47  ;;  %v1010_v46 = vld [vmem:[%s5698_s22 + $0x1750] sm:$0xff]  ;;  %v4820_v47 = vpack.c.bf16 %v1015_v40, %v1011_v39  ;;  %v4054_v53 = vpack.c.bf16 %v1012_v45, %v1008_v44  ;;  %v4840_v45 = vpack.c.bf16 %v1055_v37, %v1051_v36  ;;  %v1079_v10 = vld [vmem:[%s5698_s22 + $0x1978] sm:$0xff] }
 0x1d6   : > { %4801 = vmatprep.subr.bf16.mxu1 %v4800_v51  ;;  %v1019_v51 = vld [vmem:[%s5698_s22 + $0x1798] sm:$0xff]  ;;  %v4822_v54 = vpack.c.bf16 %v1014_v48, %v1010_v46  ;;  %v1050_v44 = vld [vmem:[%s5698_s22 + $0x1890] sm:$0xff]  ;;  %v1061_v48 = vld [vmem:[%s5698_s22 + $0x18e8] sm:$0xff] }
 0x1d7   : > { %v1054_v46 = vld [vmem:[%s5698_s22 + $0x18b0] sm:$0xff]  ;;  %v1083_v21 = vld [vmem:[%s5698_s22 + $0x1998] sm:$0xff] }
 0x1d8   : > { %4035 = vmatpush1.bf16.msra.mxu0 %v4034_v57  ;;  %v1020_v57 = vld [vmem:[%s5698_s22 + $0x17a0] sm:$0xff]  ;;  %v1087_v22 = vld [vmem:[%s5698_s22 + $0x19b8] sm:$0xff] }
 0x1d9   : > { %4803 = vmatpush1.bf16.msra.mxu1 %v4802_v58  ;;  %4037 = vmatprep.subr.bf16.mxu0 %v4036_v59  ;;  %v1018_v58 = vld [vmem:[%s5698_s22 + $0x1790] sm:$0xff]  ;;  %v4824_v59 = vpack.c.bf16 %v1023_v52, %v1019_v51  ;;  %v4058_v1 = vpack.c.bf16 %v1020_v57, %v1016_v56  ;;  %v4842_v52 = vpack.c.bf16 %v1054_v46, %v1050_v44  ;;  %v1101_v44 = vld [vmem:[%s5698_s22 + $0x1a28] sm:$0xff]  ;;  %v1103_v46 = vld [vmem:[%s5698_s22 + $0x1a38] sm:$0xff] }
 0x1da   : > { %4805 = vmatprep.subr.bf16.mxu1 %v4804_v63  ;;  %v1027_v63 = vld [vmem:[%s5698_s22 + $0x17d8] sm:$0xff]  ;;  %v4826_v2 = vpack.c.bf16 %v1022_v60, %v1018_v58  ;;  %v1058_v56 = vld [vmem:[%s5698_s22 + $0x18d0] sm:$0xff]  ;;  %v4844_v57 = vpack.c.bf16 %v1063_v50, %v1059_v49  ;;  %v1069_v60 = vld [vmem:[%s5698_s22 + $0x1928] sm:$0xff] }
 0x1db   : > { %v1062_v58 = vld [vmem:[%s5698_s22 + $0x18f0] sm:$0xff]  ;;  %v1096_v50 = vld [vmem:[%s5698_s22 + $0x1a00] sm:$0xff] }
 0x1dc   : > { %4039 = vmatpush1.bf16.msra.mxu0 %v4038_v5  ;;  %v1028_v5 = vld [vmem:[%s5698_s22 + $0x17e0] sm:$0xff] }
 0x1dd   : > { %4807 = vmatpush1.bf16.msra.mxu1 %v4806_v6  ;;  %4041 = vmatprep.subr.bf16.mxu0 %v4040_v7  ;;  %v1026_v6 = vld [vmem:[%s5698_s22 + $0x17d0] sm:$0xff]  ;;  %v4828_v7 = vpack.c.bf16 %v1031_v0, %v1027_v63  ;;  %v4062_v13 = vpack.c.bf16 %v1028_v5, %v1024_v4  ;;  %v4846_v0 = vpack.c.bf16 %v1062_v58, %v1058_v56  ;;  %v1109_v56 = vld [vmem:[%s5698_s22 + $0x1a68] sm:$0xff]  ;;  %v1111_v58 = vld [vmem:[%s5698_s22 + $0x1a78] sm:$0xff] }
 0x1de   : > { %4809 = vmatprep.subr.bf16.mxu1 %v4808_v11  ;;  %v1035_v11 = vld [vmem:[%s5698_s22 + $0x1818] sm:$0xff]  ;;  %v4830_v14 = vpack.c.bf16 %v1030_v8, %v1026_v6  ;;  %v1066_v4 = vld [vmem:[%s5698_s22 + $0x1910] sm:$0xff]  ;;  %v4848_v5 = vpack.c.bf16 %v1071_v62, %v1067_v61  ;;  %v1077_v8 = vld [vmem:[%s5698_s22 + $0x1968] sm:$0xff] }
 0x1df   : > { %v1070_v6 = vld [vmem:[%s5698_s22 + $0x1930] sm:$0xff]  ;;  %v1104_v62 = vld [vmem:[%s5698_s22 + $0x1a40] sm:$0xff] }
 0x1e0   : > { %4043 = vmatpush1.bf16.msra.mxu0 %v4042_v17  ;;  %v1036_v17 = vld [vmem:[%s5698_s22 + $0x1820] sm:$0xff] }
 0x1e1   : > { %4811 = vmatpush1.bf16.msra.mxu1 %v4810_v18  ;;  %4045 = vmatprep.subr.bf16.mxu0 %v4044_v19  ;;  %v1034_v18 = vld [vmem:[%s5698_s22 + $0x1810] sm:$0xff]  ;;  %v4832_v19 = vpack.c.bf16 %v1039_v12, %v1035_v11  ;;  %v4066_v26 = vpack.c.bf16 %v1036_v17, %v1032_v16  ;;  %v4850_v12 = vpack.c.bf16 %v1070_v6, %v1066_v4  ;;  %v1117_v4 = vld [vmem:[%s5698_s22 + $0x1aa8] sm:$0xff]  ;;  %v1119_v6 = vld [vmem:[%s5698_s22 + $0x1ab8] sm:$0xff] }
 0x1e2   : > { %4813 = vmatprep.subr.bf16.mxu1 %v4812_v23  ;;  %v1043_v23 = vld [vmem:[%s5698_s22 + $0x1858] sm:$0xff]  ;;  %v4834_v27 = vpack.c.bf16 %v1038_v20, %v1034_v18  ;;  %v1074_v16 = vld [vmem:[%s5698_s22 + $0x1950] sm:$0xff]  ;;  %v4852_v17 = vpack.c.bf16 %v1079_v10, %v1075_v9  ;;  %v1085_v20 = vld [vmem:[%s5698_s22 + $0x19a8] sm:$0xff] }
 0x1e3   : > { %v4836_v32 = vpack.c.bf16 %v1047_v24, %v1043_v23  ;;  %v1078_v18 = vld [vmem:[%s5698_s22 + $0x1970] sm:$0xff]  ;;  %v1112_v10 = vld [vmem:[%s5698_s22 + $0x1a80] sm:$0xff] }
 0x1e4   : > { %4047 = vmatpush1.bf16.msra.mxu0 %v4046_v29  ;;  %v1040_v29 = vld [vmem:[%s5698_s22 + $0x1840] sm:$0xff]  ;;  %v4854_v24 = vpack.c.bf16 %v1078_v18, %v1074_v16  ;;  %v1125_v16 = vld [vmem:[%s5698_s22 + $0x1ae8] sm:$0xff]  ;;  %v1127_v18 = vld [vmem:[%s5698_s22 + $0x1af8] sm:$0xff] }
 0x1e5   : > { %4815 = vmatpush1.bf16.msra.mxu1 %v4814_v30  ;;  %4049 = vmatprep.subr.bf16.mxu0 %v4048_v31  ;;  %v1044_v30 = vld [vmem:[%s5698_s22 + $0x1860] sm:$0xff]  ;;  %v1042_v31 = vld [vmem:[%s5698_s22 + $0x1850] sm:$0xff] }
 0x1e6   : > { %4817 = vmatprep.subr.bf16.mxu1 %v4816_v35  ;;  %v1053_v35 = vld [vmem:[%s5698_s22 + $0x18a8] sm:$0xff]  ;;  %v4070_v39 = vpack.c.bf16 %v1044_v30, %v1040_v29  ;;  %v4838_v40 = vpack.c.bf16 %v1046_v33, %v1042_v31  ;;  %v4856_v29 = vpack.c.bf16 %v1087_v22, %v1083_v21  ;;  %v1086_v30 = vld [vmem:[%s5698_s22 + $0x19b0] sm:$0xff]  ;;  %v1091_v33 = vld [vmem:[%s5698_s22 + $0x19d8] sm:$0xff] }
 0x1e7   : > { %v1089_v31 = vld [vmem:[%s5698_s22 + $0x19c8] sm:$0xff]  ;;  %v1120_v22 = vld [vmem:[%s5698_s22 + $0x1ac0] sm:$0xff] }
 0x1e8   : > { %4051 = vmatpush1.bf16.msra.mxu0 %v4050_v41  ;;  %v4072_v41 = vpack.c.bf16 %v1053_v35, %v1049_v34  ;;  %v1095_v34 = vld [vmem:[%s5698_s22 + $0x19f8] sm:$0xff] }
 0x1e9   : > { %4819 = vmatpush1.bf16.msra.mxu1 %v4818_v42  ;;  %4053 = vmatprep.subr.bf16.mxu0 %v4052_v43  ;;  %v1048_v42 = vld [vmem:[%s5698_s22 + $0x1880] sm:$0xff] }
 0x1ea   : > { %4821 = vmatprep.subr.bf16.mxu1 %v4820_v47  ;;  %v1052_v43 = vld [vmem:[%s5698_s22 + $0x18a0] sm:$0xff]  ;;  %v1057_v47 = vld [vmem:[%s5698_s22 + $0x18c8] sm:$0xff] }
 0x1eb   : > { %v4074_v51 = vpack.c.bf16 %v1052_v43, %v1048_v42  ;;  %v1094_v42 = vld [vmem:[%s5698_s22 + $0x19f0] sm:$0xff]  ;;  %v1097_v43 = vld [vmem:[%s5698_s22 + $0x1a08] sm:$0xff] }
 0x1ec   : > { %4055 = vmatpush1.bf16.msra.mxu0 %v4054_v53  ;;  %v4076_v53 = vpack.c.bf16 %v1061_v48, %v1057_v47  ;;  %v4096_v49 = vpack.c.bf16 %v1101_v44, %v1097_v43 }
 0x1ed   : > { %4823 = vmatpush1.bf16.msra.mxu1 %v4822_v54  ;;  %4057 = vmatprep.subr.bf16.mxu0 %v4056_v55  ;;  %v1056_v54 = vld [vmem:[%s5698_s22 + $0x18c0] sm:$0xff] }
 0x1ee   : > { %4825 = vmatprep.subr.bf16.mxu1 %v4824_v59  ;;  %v1060_v55 = vld [vmem:[%s5698_s22 + $0x18e0] sm:$0xff]  ;;  %v1065_v59 = vld [vmem:[%s5698_s22 + $0x1908] sm:$0xff] }
 0x1ef   : > { %v4078_v63 = vpack.c.bf16 %v1060_v55, %v1056_v54  ;;  %v1102_v54 = vld [vmem:[%s5698_s22 + $0x1a30] sm:$0xff]  ;;  %v1105_v55 = vld [vmem:[%s5698_s22 + $0x1a48] sm:$0xff] }
 0x1f0   : > { %4059 = vmatpush1.bf16.msra.mxu0 %v4058_v1  ;;  %v4080_v1 = vpack.c.bf16 %v1069_v60, %v1065_v59  ;;  %v4100_v61 = vpack.c.bf16 %v1109_v56, %v1105_v55 }
 0x1f1   : > { %4827 = vmatpush1.bf16.msra.mxu1 %v4826_v2  ;;  %4061 = vmatprep.subr.bf16.mxu0 %v4060_v3  ;;  %v1064_v2 = vld [vmem:[%s5698_s22 + $0x1900] sm:$0xff] }
 0x1f2   : > { %4829 = vmatprep.subr.bf16.mxu1 %v4828_v7  ;;  %v1068_v3 = vld [vmem:[%s5698_s22 + $0x1920] sm:$0xff]  ;;  %v1073_v7 = vld [vmem:[%s5698_s22 + $0x1948] sm:$0xff] }
 0x1f3   : > { %v4082_v11 = vpack.c.bf16 %v1068_v3, %v1064_v2  ;;  %v1110_v2 = vld [vmem:[%s5698_s22 + $0x1a70] sm:$0xff]  ;;  %v1113_v3 = vld [vmem:[%s5698_s22 + $0x1a88] sm:$0xff] }
 0x1f4   : > { %4063 = vmatpush1.bf16.msra.mxu0 %v4062_v13  ;;  %v4084_v13 = vpack.c.bf16 %v1077_v8, %v1073_v7  ;;  %v4104_v9 = vpack.c.bf16 %v1117_v4, %v1113_v3 }
 0x1f5   : > { %4831 = vmatpush1.bf16.msra.mxu1 %v4830_v14  ;;  %4065 = vmatprep.subr.bf16.mxu0 %v4064_v15  ;;  %v1072_v14 = vld [vmem:[%s5698_s22 + $0x1940] sm:$0xff] }
 0x1f6   : > { %4833 = vmatprep.subr.bf16.mxu1 %v4832_v19  ;;  %v1076_v15 = vld [vmem:[%s5698_s22 + $0x1960] sm:$0xff]  ;;  %v1081_v19 = vld [vmem:[%s5698_s22 + $0x1988] sm:$0xff] }
 0x1f7   : > { %2242 = vmatmul.mubr.f32.vlgmr.msra.gmra.mrb[0].mxu0 %v250_v25  ;;  %v4086_v23 = vpack.c.bf16 %v1076_v15, %v1072_v14  ;;  %v1118_v14 = vld [vmem:[%s5698_s22 + $0x1ab0] sm:$0xff]  ;;  %v1121_v15 = vld [vmem:[%s5698_s22 + $0x1ac8] sm:$0xff] }
 0x1f8   : > { %4067 = vmatpush1.bf16.msra.mxu0 %v4066_v26  ;;  %3094 = vmatmul.mubr.f32.vlgmr.msra.gmra.mrb[0].mxu1 %v250_v25  ;;  %v4088_v25 = vpack.c.bf16 %v1085_v20, %v1081_v19  ;;  %v1080_v26 = vld [vmem:[%s5698_s22 + $0x1980] sm:$0xff]  ;;  %v4108_v21 = vpack.c.bf16 %v1125_v16, %v1121_v15 }
 0x1f9   : > { %4835 = vmatpush1.bf16.msra.mxu1 %v4834_v27  ;;  %4069 = vmatprep.subr.bf16.mxu0 %v4068_v28  ;;  %v1084_v27 = vld [vmem:[%s5698_s22 + $0x19a0] sm:$0xff]  ;;  %v1082_v28 = vld [vmem:[%s5698_s22 + $0x1990] sm:$0xff] }
 0x1fa   : > { %4837 = vmatprep.subr.bf16.mxu1 %v4836_v32  ;;  %2312 = vmatprep.mubr.f32.mxu0 %v253_v38  ;;  %v1093_v32 = vld [vmem:[%s5698_s22 + $0x19e8] sm:$0xff]  ;;  %v4090_v35 = vpack.c.bf16 %v1084_v27, %v1080_v26  ;;  %v4858_v36 = vpack.c.bf16 %v1086_v30, %v1082_v28  ;;  %v1126_v26 = vld [vmem:[%s5698_s22 + $0x1af0] sm:$0xff]  ;;  %v1135_v30 = vld [vmem:[%s5698_s22 + $0x1b38] sm:$0xff] }
 0x1fb   : > { %3164 = vmatprep.mubr.f32.mxu1 %v253_v38  ;;  %v4092_v37 = vpack.c.bf16 %v1093_v32, %v1089_v31  ;;  %v1088_v38 = vld [vmem:[%s5698_s22 + $0x19c0] sm:$0xff]  ;;  %v1129_v27 = vld [vmem:[%s5698_s22 + $0x1b08] sm:$0xff] }
 0x1fc   : > { %4071 = vmatpush1.bf16.msra.mxu0 %v4070_v39  ;;  %v1092_v39 = vld [vmem:[%s5698_s22 + $0x19e0] sm:$0xff]  ;;  %v1133_v28 = vld [vmem:[%s5698_s22 + $0x1b28] sm:$0xff] }
 0x1fd   : > { %4839 = vmatpush1.bf16.msra.mxu1 %v4838_v40  ;;  %4073 = vmatprep.subr.bf16.mxu0 %v4072_v41  ;;  %v1090_v40 = vld [vmem:[%s5698_s22 + $0x19d0] sm:$0xff]  ;;  %v4860_v41 = vpack.c.bf16 %v1095_v34, %v1091_v33  ;;  %v4094_v47 = vpack.c.bf16 %v1092_v39, %v1088_v38  ;;  %v4112_v33 = vpack.c.bf16 %v1133_v28, %v1129_v27  ;;  %v1128_v34 = vld [vmem:[%s5698_s22 + $0x1b00] sm:$0xff]  ;;  %v1137_v39 = vld [vmem:[%s5698_s22 + $0x1b48] sm:$0xff] }
 0x1fe   : > { %4841 = vmatprep.subr.bf16.mxu1 %v4840_v45  ;;  %v1099_v45 = vld [vmem:[%s5698_s22 + $0x1a18] sm:$0xff]  ;;  %v4862_v48 = vpack.c.bf16 %v1094_v42, %v1090_v40  ;;  %v1134_v38 = vld [vmem:[%s5698_s22 + $0x1b30] sm:$0xff]  ;;  %v1141_v40 = vld [vmem:[%s5698_s22 + $0x1b68] sm:$0xff] }
 0x1ff   : > { %v1143_v42 = vld [vmem:[%s5698_s22 + $0x1b78] sm:$0xff]  ;;  %v252_v27 = vld [vmem:[#allocation2 + $0x60] sm:$0xff] }
 0x200   : > { %4075 = vmatpush1.bf16.msra.mxu0 %v4074_v51  ;;  %v1100_v51 = vld [vmem:[%s5698_s22 + $0x1a20] sm:$0xff] }
 0x201   : > { %4843 = vmatpush1.bf16.msra.mxu1 %v4842_v52  ;;  %4077 = vmatprep.subr.bf16.mxu0 %v4076_v53  ;;  %v1098_v52 = vld [vmem:[%s5698_s22 + $0x1a10] sm:$0xff]  ;;  %v4864_v53 = vpack.c.bf16 %v1103_v46, %v1099_v45  ;;  %v4098_v59 = vpack.c.bf16 %v1100_v51, %v1096_v50  ;;  %v4116_v45 = vpack.c.bf16 %v1141_v40, %v1137_v39  ;;  %v1136_v46 = vld [vmem:[%s5698_s22 + $0x1b40] sm:$0xff]  ;;  %v1145_v51 = vld [vmem:[%s5698_s22 + $0x1b88] sm:$0xff] }
 0x202   : > { %4845 = vmatprep.subr.bf16.mxu1 %v4844_v57  ;;  %v1107_v57 = vld [vmem:[%s5698_s22 + $0x1a58] sm:$0xff]  ;;  %v4866_v60 = vpack.c.bf16 %v1102_v54, %v1098_v52  ;;  %v1142_v50 = vld [vmem:[%s5698_s22 + $0x1b70] sm:$0xff]  ;;  %v1149_v52 = vld [vmem:[%s5698_s22 + $0x1ba8] sm:$0xff] }
 0x203   : > { %v1151_v54 = vld [vmem:[%s5698_s22 + $0x1bb8] sm:$0xff] }
 0x204   : > { %4079 = vmatpush1.bf16.msra.mxu0 %v4078_v63  ;;  %v1108_v63 = vld [vmem:[%s5698_s22 + $0x1a60] sm:$0xff]  ;;  %v1183_v39 = vld [vmem:[%s5698_s22 + $0x1cb8] sm:$0xff] }
 0x205   : > { %4847 = vmatpush1.bf16.msra.mxu1 %v4846_v0  ;;  %4081 = vmatprep.subr.bf16.mxu0 %v4080_v1  ;;  %v1106_v0 = vld [vmem:[%s5698_s22 + $0x1a50] sm:$0xff]  ;;  %v4868_v1 = vpack.c.bf16 %v1111_v58, %v1107_v57  ;;  %v4102_v7 = vpack.c.bf16 %v1108_v63, %v1104_v62  ;;  %v4120_v57 = vpack.c.bf16 %v1149_v52, %v1145_v51  ;;  %v1144_v58 = vld [vmem:[%s5698_s22 + $0x1b80] sm:$0xff]  ;;  %v1153_v63 = vld [vmem:[%s5698_s22 + $0x1bc8] sm:$0xff] }
 0x206   : > { %4849 = vmatprep.subr.bf16.mxu1 %v4848_v5  ;;  %v1115_v5 = vld [vmem:[%s5698_s22 + $0x1a98] sm:$0xff]  ;;  %v4870_v8 = vpack.c.bf16 %v1110_v2, %v1106_v0  ;;  %v1150_v62 = vld [vmem:[%s5698_s22 + $0x1bb0] sm:$0xff]  ;;  %v1157_v0 = vld [vmem:[%s5698_s22 + $0x1be8] sm:$0xff] }
 0x207   : > { %v1159_v2 = vld [vmem:[%s5698_s22 + $0x1bf8] sm:$0xff] }
 0x208   : > { %4083 = vmatpush1.bf16.msra.mxu0 %v4082_v11  ;;  %v1116_v11 = vld [vmem:[%s5698_s22 + $0x1aa0] sm:$0xff]  ;;  %v255_v40 = vld [vmem:[#allocation2 + $0x78] sm:$0xff] }
 0x209   : > { %4851 = vmatpush1.bf16.msra.mxu1 %v4850_v12  ;;  %4085 = vmatprep.subr.bf16.mxu0 %v4084_v13  ;;  %v1114_v12 = vld [vmem:[%s5698_s22 + $0x1a90] sm:$0xff]  ;;  %v4872_v13 = vpack.c.bf16 %v1119_v6, %v1115_v5  ;;  %v4106_v19 = vpack.c.bf16 %v1116_v11, %v1112_v10  ;;  %v4124_v5 = vpack.c.bf16 %v1157_v0, %v1153_v63  ;;  %v1152_v6 = vld [vmem:[%s5698_s22 + $0x1bc0] sm:$0xff]  ;;  %v1161_v11 = vld [vmem:[%s5698_s22 + $0x1c08] sm:$0xff] }
 0x20a   : > { %4853 = vmatprep.subr.bf16.mxu1 %v4852_v17  ;;  %v1123_v17 = vld [vmem:[%s5698_s22 + $0x1ad8] sm:$0xff]  ;;  %v4874_v20 = vpack.c.bf16 %v1118_v14, %v1114_v12  ;;  %v1158_v10 = vld [vmem:[%s5698_s22 + $0x1bf0] sm:$0xff]  ;;  %v1165_v12 = vld [vmem:[%s5698_s22 + $0x1c28] sm:$0xff] }
 0x20b   : > { %v1167_v14 = vld [vmem:[%s5698_s22 + $0x1c38] sm:$0xff] }
 0x20c   : > { %4087 = vmatpush1.bf16.msra.mxu0 %v4086_v23  ;;  %v1124_v23 = vld [vmem:[%s5698_s22 + $0x1ae0] sm:$0xff]  ;;  %v1187_v51 = vld [vmem:[%s5698_s22 + $0x1cd8] sm:$0xff] }
 0x20d   : > { %4855 = vmatpush1.bf16.msra.mxu1 %v4854_v24  ;;  %4089 = vmatprep.subr.bf16.mxu0 %v4088_v25  ;;  %v1122_v24 = vld [vmem:[%s5698_s22 + $0x1ad0] sm:$0xff]  ;;  %v4876_v25 = vpack.c.bf16 %v1127_v18, %v1123_v17  ;;  %v4110_v31 = vpack.c.bf16 %v1124_v23, %v1120_v22  ;;  %v4128_v17 = vpack.c.bf16 %v1165_v12, %v1161_v11  ;;  %v1160_v18 = vld [vmem:[%s5698_s22 + $0x1c00] sm:$0xff]  ;;  %v1169_v23 = vld [vmem:[%s5698_s22 + $0x1c48] sm:$0xff] }
 0x20e   : > { %4857 = vmatprep.subr.bf16.mxu1 %v4856_v29  ;;  %v1131_v29 = vld [vmem:[%s5698_s22 + $0x1b18] sm:$0xff]  ;;  %v4878_v32 = vpack.c.bf16 %v1126_v26, %v1122_v24  ;;  %v1166_v22 = vld [vmem:[%s5698_s22 + $0x1c30] sm:$0xff]  ;;  %v1173_v24 = vld [vmem:[%s5698_s22 + $0x1c68] sm:$0xff] }
 0x20f   : > { %v1175_v26 = vld [vmem:[%s5698_s22 + $0x1c78] sm:$0xff] }
 0x210   : > { %4091 = vmatpush1.bf16.msra.mxu0 %v4090_v35  ;;  %v1132_v35 = vld [vmem:[%s5698_s22 + $0x1b20] sm:$0xff]  ;;  %v1191_v52 = vld [vmem:[%s5698_s22 + $0x1cf8] sm:$0xff] }
 0x211   : > { %4859 = vmatpush1.bf16.msra.mxu1 %v4858_v36  ;;  %4093 = vmatprep.subr.bf16.mxu0 %v4092_v37  ;;  %v1130_v36 = vld [vmem:[%s5698_s22 + $0x1b10] sm:$0xff]  ;;  %v4880_v37 = vpack.c.bf16 %v1135_v30, %v1131_v29  ;;  %v4114_v43 = vpack.c.bf16 %v1132_v35, %v1128_v34  ;;  %v4132_v30 = vpack.c.bf16 %v1173_v24, %v1169_v23  ;;  %v1195_v63 = vld [vmem:[%s5698_s22 + $0x1d18] sm:$0xff] }
 0x212   : > { %4861 = vmatprep.subr.bf16.mxu1 %v4860_v41  ;;  %v1139_v41 = vld [vmem:[%s5698_s22 + $0x1b58] sm:$0xff]  ;;  %v4882_v44 = vpack.c.bf16 %v1134_v38, %v1130_v36  ;;  %v1174_v35 = vld [vmem:[%s5698_s22 + $0x1c70] sm:$0xff]  ;;  %v1177_v36 = vld [vmem:[%s5698_s22 + $0x1c88] sm:$0xff] }
 0x213   : > { %v1179_v38 = vld [vmem:[%s5698_s22 + $0x1c98] sm:$0xff] }
 0x214   : > { %4095 = vmatpush1.bf16.msra.mxu0 %v4094_v47  ;;  %v1140_v47 = vld [vmem:[%s5698_s22 + $0x1b60] sm:$0xff]  ;;  %v1199_v0 = vld [vmem:[%s5698_s22 + $0x1d38] sm:$0xff] }
 0x215   : > { %4863 = vmatpush1.bf16.msra.mxu1 %v4862_v48  ;;  %4097 = vmatprep.subr.bf16.mxu0 %v4096_v49  ;;  %v1138_v48 = vld [vmem:[%s5698_s22 + $0x1b50] sm:$0xff]  ;;  %v4884_v49 = vpack.c.bf16 %v1143_v42, %v1139_v41  ;;  %v4118_v55 = vpack.c.bf16 %v1140_v47, %v1136_v46  ;;  %v4904_v47 = vpack.c.bf16 %v1183_v39, %v1179_v38  ;;  %v1203_v11 = vld [vmem:[%s5698_s22 + $0x1d58] sm:$0xff] }
 0x216   : > { %4865 = vmatprep.subr.bf16.mxu1 %v4864_v53  ;;  %v1147_v53 = vld [vmem:[%s5698_s22 + $0x1b98] sm:$0xff]  ;;  %v4886_v56 = vpack.c.bf16 %v1142_v50, %v1138_v48  ;;  %v1178_v46 = vld [vmem:[%s5698_s22 + $0x1c90] sm:$0xff]  ;;  %v1189_v50 = vld [vmem:[%s5698_s22 + $0x1ce8] sm:$0xff] }
 0x217   : > { %v1182_v48 = vld [vmem:[%s5698_s22 + $0x1cb0] sm:$0xff]  ;;  %v1207_v12 = vld [vmem:[%s5698_s22 + $0x1d78] sm:$0xff] }
 0x218   : > { %4099 = vmatpush1.bf16.msra.mxu0 %v4098_v59  ;;  %v1148_v59 = vld [vmem:[%s5698_s22 + $0x1ba0] sm:$0xff]  ;;  %v1211_v23 = vld [vmem:[%s5698_s22 + $0x1d98] sm:$0xff] }
 0x219   : > { %4867 = vmatpush1.bf16.msra.mxu1 %v4866_v60  ;;  %4101 = vmatprep.subr.bf16.mxu0 %v4100_v61  ;;  %v1146_v60 = vld [vmem:[%s5698_s22 + $0x1b90] sm:$0xff]  ;;  %v4888_v61 = vpack.c.bf16 %v1151_v54, %v1147_v53  ;;  %v4122_v3 = vpack.c.bf16 %v1148_v59, %v1144_v58  ;;  %v4906_v54 = vpack.c.bf16 %v1182_v48, %v1178_v46  ;;  %v1215_v24 = vld [vmem:[%s5698_s22 + $0x1db8] sm:$0xff]  ;;  %v1229_v46 = vld [vmem:[%s5698_s22 + $0x1e28] sm:$0xff] }
 0x21a   : > { %4869 = vmatprep.subr.bf16.mxu1 %v4868_v1  ;;  %v1155_v1 = vld [vmem:[%s5698_s22 + $0x1bd8] sm:$0xff]  ;;  %v4890_v4 = vpack.c.bf16 %v1150_v62, %v1146_v60  ;;  %v1186_v58 = vld [vmem:[%s5698_s22 + $0x1cd0] sm:$0xff]  ;;  %v4908_v59 = vpack.c.bf16 %v1191_v52, %v1187_v51  ;;  %v1197_v62 = vld [vmem:[%s5698_s22 + $0x1d28] sm:$0xff] }
 0x21b   : > { %v1190_v60 = vld [vmem:[%s5698_s22 + $0x1cf0] sm:$0xff]  ;;  %v1231_v48 = vld [vmem:[%s5698_s22 + $0x1e38] sm:$0xff]  ;;  %v1224_v52 = vld [vmem:[%s5698_s22 + $0x1e00] sm:$0xff] }
 0x21c   : > { %4103 = vmatpush1.bf16.msra.mxu0 %v4102_v7  ;;  %v1156_v7 = vld [vmem:[%s5698_s22 + $0x1be0] sm:$0xff] }
 0x21d   : > { %4871 = vmatpush1.bf16.msra.mxu1 %v4870_v8  ;;  %4105 = vmatprep.subr.bf16.mxu0 %v4104_v9  ;;  %v1154_v8 = vld [vmem:[%s5698_s22 + $0x1bd0] sm:$0xff]  ;;  %v4892_v9 = vpack.c.bf16 %v1159_v2, %v1155_v1  ;;  %v4126_v15 = vpack.c.bf16 %v1156_v7, %v1152_v6  ;;  %v4910_v2 = vpack.c.bf16 %v1190_v60, %v1186_v58  ;;  %v1237_v58 = vld [vmem:[%s5698_s22 + $0x1e68] sm:$0xff]  ;;  %v1239_v60 = vld [vmem:[%s5698_s22 + $0x1e78] sm:$0xff] }
 0x21e   : > { %4873 = vmatprep.subr.bf16.mxu1 %v4872_v13  ;;  %v1163_v13 = vld [vmem:[%s5698_s22 + $0x1c18] sm:$0xff]  ;;  %v4894_v16 = vpack.c.bf16 %v1158_v10, %v1154_v8  ;;  %v1194_v6 = vld [vmem:[%s5698_s22 + $0x1d10] sm:$0xff]  ;;  %v4912_v7 = vpack.c.bf16 %v1199_v0, %v1195_v63  ;;  %v1205_v10 = vld [vmem:[%s5698_s22 + $0x1d68] sm:$0xff] }
 0x21f   : > { %v1198_v8 = vld [vmem:[%s5698_s22 + $0x1d30] sm:$0xff]  ;;  %v1232_v0 = vld [vmem:[%s5698_s22 + $0x1e40] sm:$0xff] }
 0x220   : > { %4107 = vmatpush1.bf16.msra.mxu0 %v4106_v19  ;;  %v1164_v19 = vld [vmem:[%s5698_s22 + $0x1c20] sm:$0xff] }
 0x221   : > { %4875 = vmatpush1.bf16.msra.mxu1 %v4874_v20  ;;  %4109 = vmatprep.subr.bf16.mxu0 %v4108_v21  ;;  %v1162_v20 = vld [vmem:[%s5698_s22 + $0x1c10] sm:$0xff]  ;;  %v4896_v21 = vpack.c.bf16 %v1167_v14, %v1163_v13  ;;  %v4130_v28 = vpack.c.bf16 %v1164_v19, %v1160_v18  ;;  %v4914_v14 = vpack.c.bf16 %v1198_v8, %v1194_v6  ;;  %v1245_v6 = vld [vmem:[%s5698_s22 + $0x1ea8] sm:$0xff]  ;;  %v1247_v8 = vld [vmem:[%s5698_s22 + $0x1eb8] sm:$0xff] }
 0x222   : > { %4877 = vmatprep.subr.bf16.mxu1 %v4876_v25  ;;  %v1171_v25 = vld [vmem:[%s5698_s22 + $0x1c58] sm:$0xff]  ;;  %v4898_v29 = vpack.c.bf16 %v1166_v22, %v1162_v20  ;;  %v1202_v18 = vld [vmem:[%s5698_s22 + $0x1d50] sm:$0xff]  ;;  %v4916_v19 = vpack.c.bf16 %v1207_v12, %v1203_v11  ;;  %v1213_v22 = vld [vmem:[%s5698_s22 + $0x1da8] sm:$0xff] }
 0x223   : > { %v4900_v34 = vpack.c.bf16 %v1175_v26, %v1171_v25  ;;  %v1206_v20 = vld [vmem:[%s5698_s22 + $0x1d70] sm:$0xff]  ;;  %v1240_v12 = vld [vmem:[%s5698_s22 + $0x1e80] sm:$0xff] }
 0x224   : > { %4111 = vmatpush1.bf16.msra.mxu0 %v4110_v31  ;;  %v1168_v31 = vld [vmem:[%s5698_s22 + $0x1c40] sm:$0xff]  ;;  %v4918_v26 = vpack.c.bf16 %v1206_v20, %v1202_v18  ;;  %v1253_v18 = vld [vmem:[%s5698_s22 + $0x1ee8] sm:$0xff]  ;;  %v1255_v20 = vld [vmem:[%s5698_s22 + $0x1ef8] sm:$0xff] }
 0x225   : > { %4879 = vmatpush1.bf16.msra.mxu1 %v4878_v32  ;;  %4113 = vmatprep.subr.bf16.mxu0 %v4112_v33  ;;  %v1172_v32 = vld [vmem:[%s5698_s22 + $0x1c60] sm:$0xff]  ;;  %v1170_v33 = vld [vmem:[%s5698_s22 + $0x1c50] sm:$0xff] }
 0x226   : > { %4881 = vmatprep.subr.bf16.mxu1 %v4880_v37  ;;  %v1181_v37 = vld [vmem:[%s5698_s22 + $0x1ca8] sm:$0xff]  ;;  %v4134_v41 = vpack.c.bf16 %v1172_v32, %v1168_v31  ;;  %v4902_v42 = vpack.c.bf16 %v1174_v35, %v1170_v33  ;;  %v4920_v31 = vpack.c.bf16 %v1215_v24, %v1211_v23  ;;  %v1214_v32 = vld [vmem:[%s5698_s22 + $0x1db0] sm:$0xff]  ;;  %v1219_v35 = vld [vmem:[%s5698_s22 + $0x1dd8] sm:$0xff] }
 0x227   : > { %v1217_v33 = vld [vmem:[%s5698_s22 + $0x1dc8] sm:$0xff]  ;;  %v1248_v24 = vld [vmem:[%s5698_s22 + $0x1ec0] sm:$0xff] }
 0x228   : > { %4115 = vmatpush1.bf16.msra.mxu0 %v4114_v43  ;;  %v4136_v43 = vpack.c.bf16 %v1181_v37, %v1177_v36  ;;  %v1223_v36 = vld [vmem:[%s5698_s22 + $0x1df8] sm:$0xff] }
 0x229   : > { %4883 = vmatpush1.bf16.msra.mxu1 %v4882_v44  ;;  %4117 = vmatprep.subr.bf16.mxu0 %v4116_v45  ;;  %v1176_v44 = vld [vmem:[%s5698_s22 + $0x1c80] sm:$0xff] }
 0x22a   : > { %4885 = vmatprep.subr.bf16.mxu1 %v4884_v49  ;;  %v1180_v45 = vld [vmem:[%s5698_s22 + $0x1ca0] sm:$0xff]  ;;  %v1185_v49 = vld [vmem:[%s5698_s22 + $0x1cc8] sm:$0xff] }
 0x22b   : > { %v4138_v53 = vpack.c.bf16 %v1180_v45, %v1176_v44  ;;  %v1222_v44 = vld [vmem:[%s5698_s22 + $0x1df0] sm:$0xff]  ;;  %v1225_v45 = vld [vmem:[%s5698_s22 + $0x1e08] sm:$0xff] }
 0x22c   : > { %4119 = vmatpush1.bf16.msra.mxu0 %v4118_v55  ;;  %v4140_v55 = vpack.c.bf16 %v1189_v50, %v1185_v49  ;;  %v4160_v51 = vpack.c.bf16 %v1229_v46, %v1225_v45 }
 0x22d   : > { %4887 = vmatpush1.bf16.msra.mxu1 %v4886_v56  ;;  %4121 = vmatprep.subr.bf16.mxu0 %v4120_v57  ;;  %v1184_v56 = vld [vmem:[%s5698_s22 + $0x1cc0] sm:$0xff] }
 0x22e   : > { %4889 = vmatprep.subr.bf16.mxu1 %v4888_v61  ;;  %v1188_v57 = vld [vmem:[%s5698_s22 + $0x1ce0] sm:$0xff]  ;;  %v1193_v61 = vld [vmem:[%s5698_s22 + $0x1d08] sm:$0xff] }
 0x22f   : > { %v4142_v1 = vpack.c.bf16 %v1188_v57, %v1184_v56  ;;  %v1230_v56 = vld [vmem:[%s5698_s22 + $0x1e30] sm:$0xff]  ;;  %v1233_v57 = vld [vmem:[%s5698_s22 + $0x1e48] sm:$0xff] }
 0x230   : > { %4123 = vmatpush1.bf16.msra.mxu0 %v4122_v3  ;;  %v4144_v3 = vpack.c.bf16 %v1197_v62, %v1193_v61  ;;  %v4164_v63 = vpack.c.bf16 %v1237_v58, %v1233_v57 }
 0x231   : > { %4891 = vmatpush1.bf16.msra.mxu1 %v4890_v4  ;;  %4125 = vmatprep.subr.bf16.mxu0 %v4124_v5  ;;  %v1192_v4 = vld [vmem:[%s5698_s22 + $0x1d00] sm:$0xff] }
 0x232   : > { %4893 = vmatprep.subr.bf16.mxu1 %v4892_v9  ;;  %v1196_v5 = vld [vmem:[%s5698_s22 + $0x1d20] sm:$0xff]  ;;  %v1201_v9 = vld [vmem:[%s5698_s22 + $0x1d48] sm:$0xff] }
 0x233   : > { %v4146_v13 = vpack.c.bf16 %v1196_v5, %v1192_v4  ;;  %v1238_v4 = vld [vmem:[%s5698_s22 + $0x1e70] sm:$0xff]  ;;  %v1241_v5 = vld [vmem:[%s5698_s22 + $0x1e88] sm:$0xff] }
 0x234   : > { %4127 = vmatpush1.bf16.msra.mxu0 %v4126_v15  ;;  %v4148_v15 = vpack.c.bf16 %v1205_v10, %v1201_v9  ;;  %v4168_v11 = vpack.c.bf16 %v1245_v6, %v1241_v5 }
 0x235   : > { %4895 = vmatpush1.bf16.msra.mxu1 %v4894_v16  ;;  %4129 = vmatprep.subr.bf16.mxu0 %v4128_v17  ;;  %v1200_v16 = vld [vmem:[%s5698_s22 + $0x1d40] sm:$0xff] }
 0x236   : > { %4897 = vmatprep.subr.bf16.mxu1 %v4896_v21  ;;  %v1204_v17 = vld [vmem:[%s5698_s22 + $0x1d60] sm:$0xff]  ;;  %v1209_v21 = vld [vmem:[%s5698_s22 + $0x1d88] sm:$0xff] }
 0x237   : > { %2313 = vmatmul.mubr.f32.vlgmr.msra.gmra.mrb[0].mxu0 %v252_v27  ;;  %v4150_v25 = vpack.c.bf16 %v1204_v17, %v1200_v16  ;;  %v1246_v16 = vld [vmem:[%s5698_s22 + $0x1eb0] sm:$0xff]  ;;  %v1249_v17 = vld [vmem:[%s5698_s22 + $0x1ec8] sm:$0xff] }
 0x238   : > { %4131 = vmatpush1.bf16.msra.mxu0 %v4130_v28  ;;  %3165 = vmatmul.mubr.f32.vlgmr.msra.gmra.mrb[0].mxu1 %v252_v27  ;;  %v4152_v27 = vpack.c.bf16 %v1213_v22, %v1209_v21  ;;  %v1208_v28 = vld [vmem:[%s5698_s22 + $0x1d80] sm:$0xff]  ;;  %v4172_v23 = vpack.c.bf16 %v1253_v18, %v1249_v17 }
 0x239   : > { %4899 = vmatpush1.bf16.msra.mxu1 %v4898_v29  ;;  %4133 = vmatprep.subr.bf16.mxu0 %v4132_v30  ;;  %v1212_v29 = vld [vmem:[%s5698_s22 + $0x1da0] sm:$0xff]  ;;  %v1210_v30 = vld [vmem:[%s5698_s22 + $0x1d90] sm:$0xff] }
 0x23a   : > { %4901 = vmatprep.subr.bf16.mxu1 %v4900_v34  ;;  %2383 = vmatprep.mubr.f32.mxu0 %v255_v40  ;;  %v1221_v34 = vld [vmem:[%s5698_s22 + $0x1de8] sm:$0xff]  ;;  %v4154_v37 = vpack.c.bf16 %v1212_v29, %v1208_v28  ;;  %v4922_v38 = vpack.c.bf16 %v1214_v32, %v1210_v30  ;;  %v1254_v28 = vld [vmem:[%s5698_s22 + $0x1ef0] sm:$0xff]  ;;  %v1263_v32 = vld [vmem:[%s5698_s22 + $0x1f38] sm:$0xff] }
 0x23b   : > { %3235 = vmatprep.mubr.f32.mxu1 %v255_v40  ;;  %v4156_v39 = vpack.c.bf16 %v1221_v34, %v1217_v33  ;;  %v1216_v40 = vld [vmem:[%s5698_s22 + $0x1dc0] sm:$0xff]  ;;  %v1257_v29 = vld [vmem:[%s5698_s22 + $0x1f08] sm:$0xff] }
 0x23c   : > { %4135 = vmatpush1.bf16.msra.mxu0 %v4134_v41  ;;  %v1220_v41 = vld [vmem:[%s5698_s22 + $0x1de0] sm:$0xff]  ;;  %v1261_v30 = vld [vmem:[%s5698_s22 + $0x1f28] sm:$0xff] }
 0x23d   : > { %4903 = vmatpush1.bf16.msra.mxu1 %v4902_v42  ;;  %4137 = vmatprep.subr.bf16.mxu0 %v4136_v43  ;;  %v1218_v42 = vld [vmem:[%s5698_s22 + $0x1dd0] sm:$0xff]  ;;  %v4924_v43 = vpack.c.bf16 %v1223_v36, %v1219_v35  ;;  %v4158_v49 = vpack.c.bf16 %v1220_v41, %v1216_v40  ;;  %v4176_v35 = vpack.c.bf16 %v1261_v30, %v1257_v29  ;;  %v1256_v36 = vld [vmem:[%s5698_s22 + $0x1f00] sm:$0xff]  ;;  %v1265_v41 = vld [vmem:[%s5698_s22 + $0x1f48] sm:$0xff] }
 0x23e   : > { %4905 = vmatprep.subr.bf16.mxu1 %v4904_v47  ;;  %v1227_v47 = vld [vmem:[%s5698_s22 + $0x1e18] sm:$0xff]  ;;  %v4926_v50 = vpack.c.bf16 %v1222_v44, %v1218_v42  ;;  %v1262_v40 = vld [vmem:[%s5698_s22 + $0x1f30] sm:$0xff]  ;;  %v1269_v42 = vld [vmem:[%s5698_s22 + $0x1f68] sm:$0xff] }
 0x23f   : > { %v1271_v44 = vld [vmem:[%s5698_s22 + $0x1f78] sm:$0xff]  ;;  %v254_v29 = vld [vmem:[#allocation2 + $0x70] sm:$0xff] }
 0x240   : > { %4139 = vmatpush1.bf16.msra.mxu0 %v4138_v53  ;;  %v1228_v53 = vld [vmem:[%s5698_s22 + $0x1e20] sm:$0xff] }
 0x241   : > { %4907 = vmatpush1.bf16.msra.mxu1 %v4906_v54  ;;  %4141 = vmatprep.subr.bf16.mxu0 %v4140_v55  ;;  %v1226_v54 = vld [vmem:[%s5698_s22 + $0x1e10] sm:$0xff]  ;;  %v4928_v55 = vpack.c.bf16 %v1231_v48, %v1227_v47  ;;  %v4162_v61 = vpack.c.bf16 %v1228_v53, %v1224_v52  ;;  %v4180_v47 = vpack.c.bf16 %v1269_v42, %v1265_v41  ;;  %v1264_v48 = vld [vmem:[%s5698_s22 + $0x1f40] sm:$0xff]  ;;  %v1273_v53 = vld [vmem:[%s5698_s22 + $0x1f88] sm:$0xff] }
 0x242   : > { %4909 = vmatprep.subr.bf16.mxu1 %v4908_v59  ;;  %v1235_v59 = vld [vmem:[%s5698_s22 + $0x1e58] sm:$0xff]  ;;  %v4930_v62 = vpack.c.bf16 %v1230_v56, %v1226_v54  ;;  %v1270_v52 = vld [vmem:[%s5698_s22 + $0x1f70] sm:$0xff]  ;;  %v1277_v54 = vld [vmem:[%s5698_s22 + $0x1fa8] sm:$0xff] }
 0x243   : > { %v1279_v56 = vld [vmem:[%s5698_s22 + $0x1fb8] sm:$0xff]  ;;  %v257_v42 = vld [vmem:[#allocation2 + $0x88] sm:$0xff] }
 0x244   : > { %4143 = vmatpush1.bf16.msra.mxu0 %v4142_v1  ;;  %v1236_v1 = vld [vmem:[%s5698_s22 + $0x1e60] sm:$0xff]  ;;  %v1311_v41 = vld [vmem:[%s5698_s22 + $0x20b8] sm:$0xff] }
 0x245   : > { %4911 = vmatpush1.bf16.msra.mxu1 %v4910_v2  ;;  %4145 = vmatprep.subr.bf16.mxu0 %v4144_v3  ;;  %v1234_v2 = vld [vmem:[%s5698_s22 + $0x1e50] sm:$0xff]  ;;  %v4932_v3 = vpack.c.bf16 %v1239_v60, %v1235_v59  ;;  %v4166_v9 = vpack.c.bf16 %v1236_v1, %v1232_v0  ;;  %v4184_v59 = vpack.c.bf16 %v1277_v54, %v1273_v53  ;;  %v1272_v60 = vld [vmem:[%s5698_s22 + $0x1f80] sm:$0xff]  ;;  %v1281_v1 = vld [vmem:[%s5698_s22 + $0x1fc8] sm:$0xff] }
 0x246   : > { %4913 = vmatprep.subr.bf16.mxu1 %v4912_v7  ;;  %v1243_v7 = vld [vmem:[%s5698_s22 + $0x1e98] sm:$0xff]  ;;  %v4934_v10 = vpack.c.bf16 %v1238_v4, %v1234_v2  ;;  %v1278_v0 = vld [vmem:[%s5698_s22 + $0x1fb0] sm:$0xff]  ;;  %v1285_v2 = vld [vmem:[%s5698_s22 + $0x1fe8] sm:$0xff] }
 0x247   : > { %v1287_v4 = vld [vmem:[%s5698_s22 + $0x1ff8] sm:$0xff] }
 0x248   : > { %4147 = vmatpush1.bf16.msra.mxu0 %v4146_v13  ;;  %v1244_v13 = vld [vmem:[%s5698_s22 + $0x1ea0] sm:$0xff]  ;;  %v1315_v53 = vld [vmem:[%s5698_s22 + $0x20d8] sm:$0xff] }
 0x249   : > { %4915 = vmatpush1.bf16.msra.mxu1 %v4914_v14  ;;  %4149 = vmatprep.subr.bf16.mxu0 %v4148_v15  ;;  %v1242_v14 = vld [vmem:[%s5698_s22 + $0x1e90] sm:$0xff]  ;;  %v4936_v15 = vpack.c.bf16 %v1247_v8, %v1243_v7  ;;  %v4170_v21 = vpack.c.bf16 %v1244_v13, %v1240_v12  ;;  %v4188_v7 = vpack.c.bf16 %v1285_v2, %v1281_v1  ;;  %v1280_v8 = vld [vmem:[%s5698_s22 + $0x1fc0] sm:$0xff]  ;;  %v1289_v13 = vld [vmem:[%s5698_s22 + $0x2008] sm:$0xff] }
 0x24a   : > { %4917 = vmatprep.subr.bf16.mxu1 %v4916_v19  ;;  %v1251_v19 = vld [vmem:[%s5698_s22 + $0x1ed8] sm:$0xff]  ;;  %v4938_v22 = vpack.c.bf16 %v1246_v16, %v1242_v14  ;;  %v1286_v12 = vld [vmem:[%s5698_s22 + $0x1ff0] sm:$0xff]  ;;  %v1293_v14 = vld [vmem:[%s5698_s22 + $0x2028] sm:$0xff] }
 0x24b   : > { %v1295_v16 = vld [vmem:[%s5698_s22 + $0x2038] sm:$0xff] }
 0x24c   : > { %4151 = vmatpush1.bf16.msra.mxu0 %v4150_v25  ;;  %v1252_v25 = vld [vmem:[%s5698_s22 + $0x1ee0] sm:$0xff]  ;;  %v1319_v54 = vld [vmem:[%s5698_s22 + $0x20f8] sm:$0xff] }
 0x24d   : > { %4919 = vmatpush1.bf16.msra.mxu1 %v4918_v26  ;;  %4153 = vmatprep.subr.bf16.mxu0 %v4152_v27  ;;  %v1250_v26 = vld [vmem:[%s5698_s22 + $0x1ed0] sm:$0xff]  ;;  %v4940_v27 = vpack.c.bf16 %v1255_v20, %v1251_v19  ;;  %v4174_v33 = vpack.c.bf16 %v1252_v25, %v1248_v24  ;;  %v4192_v19 = vpack.c.bf16 %v1293_v14, %v1289_v13  ;;  %v1288_v20 = vld [vmem:[%s5698_s22 + $0x2000] sm:$0xff]  ;;  %v1297_v25 = vld [vmem:[%s5698_s22 + $0x2048] sm:$0xff] }
 0x24e   : > { %4921 = vmatprep.subr.bf16.mxu1 %v4920_v31  ;;  %v1259_v31 = vld [vmem:[%s5698_s22 + $0x1f18] sm:$0xff]  ;;  %v4942_v34 = vpack.c.bf16 %v1254_v28, %v1250_v26  ;;  %v1294_v24 = vld [vmem:[%s5698_s22 + $0x2030] sm:$0xff]  ;;  %v1301_v26 = vld [vmem:[%s5698_s22 + $0x2068] sm:$0xff] }
 0x24f   : > { %v1303_v28 = vld [vmem:[%s5698_s22 + $0x2078] sm:$0xff] }
 0x250   : > { %4155 = vmatpush1.bf16.msra.mxu0 %v4154_v37  ;;  %v1260_v37 = vld [vmem:[%s5698_s22 + $0x1f20] sm:$0xff]  ;;  %v1323_v1 = vld [vmem:[%s5698_s22 + $0x2118] sm:$0xff] }
 0x251   : > { %4923 = vmatpush1.bf16.msra.mxu1 %v4922_v38  ;;  %4157 = vmatprep.subr.bf16.mxu0 %v4156_v39  ;;  %v1258_v38 = vld [vmem:[%s5698_s22 + $0x1f10] sm:$0xff]  ;;  %v4944_v39 = vpack.c.bf16 %v1263_v32, %v1259_v31  ;;  %v4178_v45 = vpack.c.bf16 %v1260_v37, %v1256_v36  ;;  %v4196_v32 = vpack.c.bf16 %v1301_v26, %v1297_v25  ;;  %v1327_v2 = vld [vmem:[%s5698_s22 + $0x2138] sm:$0xff] }
 0x252   : > { %4925 = vmatprep.subr.bf16.mxu1 %v4924_v43  ;;  %v1267_v43 = vld [vmem:[%s5698_s22 + $0x1f58] sm:$0xff]  ;;  %v4946_v46 = vpack.c.bf16 %v1262_v40, %v1258_v38  ;;  %v1302_v37 = vld [vmem:[%s5698_s22 + $0x2070] sm:$0xff]  ;;  %v1305_v38 = vld [vmem:[%s5698_s22 + $0x2088] sm:$0xff] }
 0x253   : > { %v1307_v40 = vld [vmem:[%s5698_s22 + $0x2098] sm:$0xff] }
 0x254   : > { %4159 = vmatpush1.bf16.msra.mxu0 %v4158_v49  ;;  %v1268_v49 = vld [vmem:[%s5698_s22 + $0x1f60] sm:$0xff]  ;;  %v1331_v13 = vld [vmem:[%s5698_s22 + $0x2158] sm:$0xff] }
 0x255   : > { %4927 = vmatpush1.bf16.msra.mxu1 %v4926_v50  ;;  %4161 = vmatprep.subr.bf16.mxu0 %v4160_v51  ;;  %v1266_v50 = vld [vmem:[%s5698_s22 + $0x1f50] sm:$0xff]  ;;  %v4948_v51 = vpack.c.bf16 %v1271_v44, %v1267_v43  ;;  %v4182_v57 = vpack.c.bf16 %v1268_v49, %v1264_v48  ;;  %v4968_v49 = vpack.c.bf16 %v1311_v41, %v1307_v40  ;;  %v1335_v14 = vld [vmem:[%s5698_s22 + $0x2178] sm:$0xff] }
 0x256   : > { %4929 = vmatprep.subr.bf16.mxu1 %v4928_v55  ;;  %v1275_v55 = vld [vmem:[%s5698_s22 + $0x1f98] sm:$0xff]  ;;  %v4950_v58 = vpack.c.bf16 %v1270_v52, %v1266_v50  ;;  %v1306_v48 = vld [vmem:[%s5698_s22 + $0x2090] sm:$0xff]  ;;  %v1317_v52 = vld [vmem:[%s5698_s22 + $0x20e8] sm:$0xff] }
 0x257   : > { %v1310_v50 = vld [vmem:[%s5698_s22 + $0x20b0] sm:$0xff]  ;;  %v1339_v25 = vld [vmem:[%s5698_s22 + $0x2198] sm:$0xff] }
 0x258   : > { %4163 = vmatpush1.bf16.msra.mxu0 %v4162_v61  ;;  %v1276_v61 = vld [vmem:[%s5698_s22 + $0x1fa0] sm:$0xff]  ;;  %v1343_v26 = vld [vmem:[%s5698_s22 + $0x21b8] sm:$0xff] }
 0x259   : > { %4931 = vmatpush1.bf16.msra.mxu1 %v4930_v62  ;;  %4165 = vmatprep.subr.bf16.mxu0 %v4164_v63  ;;  %v1274_v62 = vld [vmem:[%s5698_s22 + $0x1f90] sm:$0xff]  ;;  %v4952_v63 = vpack.c.bf16 %v1279_v56, %v1275_v55  ;;  %v4186_v5 = vpack.c.bf16 %v1276_v61, %v1272_v60  ;;  %v4970_v56 = vpack.c.bf16 %v1310_v50, %v1306_v48  ;;  %v1357_v48 = vld [vmem:[%s5698_s22 + $0x2228] sm:$0xff]  ;;  %v1359_v50 = vld [vmem:[%s5698_s22 + $0x2238] sm:$0xff] }
 0x25a   : > { %4933 = vmatprep.subr.bf16.mxu1 %v4932_v3  ;;  %v1283_v3 = vld [vmem:[%s5698_s22 + $0x1fd8] sm:$0xff]  ;;  %v4954_v6 = vpack.c.bf16 %v1278_v0, %v1274_v62  ;;  %v1314_v60 = vld [vmem:[%s5698_s22 + $0x20d0] sm:$0xff]  ;;  %v4972_v61 = vpack.c.bf16 %v1319_v54, %v1315_v53  ;;  %v1325_v0 = vld [vmem:[%s5698_s22 + $0x2128] sm:$0xff] }
 0x25b   : > { %v1318_v62 = vld [vmem:[%s5698_s22 + $0x20f0] sm:$0xff]  ;;  %v1352_v54 = vld [vmem:[%s5698_s22 + $0x2200] sm:$0xff] }
 0x25c   : > { %4167 = vmatpush1.bf16.msra.mxu0 %v4166_v9  ;;  %v1284_v9 = vld [vmem:[%s5698_s22 + $0x1fe0] sm:$0xff] }
 0x25d   : > { %4935 = vmatpush1.bf16.msra.mxu1 %v4934_v10  ;;  %4169 = vmatprep.subr.bf16.mxu0 %v4168_v11  ;;  %v1282_v10 = vld [vmem:[%s5698_s22 + $0x1fd0] sm:$0xff]  ;;  %v4956_v11 = vpack.c.bf16 %v1287_v4, %v1283_v3  ;;  %v4190_v17 = vpack.c.bf16 %v1284_v9, %v1280_v8  ;;  %v4974_v4 = vpack.c.bf16 %v1318_v62, %v1314_v60  ;;  %v1365_v60 = vld [vmem:[%s5698_s22 + $0x2268] sm:$0xff]  ;;  %v1367_v62 = vld [vmem:[%s5698_s22 + $0x2278] sm:$0xff] }
 0x25e   : > { %4937 = vmatprep.subr.bf16.mxu1 %v4936_v15  ;;  %v1291_v15 = vld [vmem:[%s5698_s22 + $0x2018] sm:$0xff]  ;;  %v4958_v18 = vpack.c.bf16 %v1286_v12, %v1282_v10  ;;  %v1322_v8 = vld [vmem:[%s5698_s22 + $0x2110] sm:$0xff]  ;;  %v4976_v9 = vpack.c.bf16 %v1327_v2, %v1323_v1  ;;  %v1333_v12 = vld [vmem:[%s5698_s22 + $0x2168] sm:$0xff] }
 0x25f   : > { %v1326_v10 = vld [vmem:[%s5698_s22 + $0x2130] sm:$0xff]  ;;  %v1360_v2 = vld [vmem:[%s5698_s22 + $0x2240] sm:$0xff] }
 0x260   : > { %4171 = vmatpush1.bf16.msra.mxu0 %v4170_v21  ;;  %v1292_v21 = vld [vmem:[%s5698_s22 + $0x2020] sm:$0xff] }
 0x261   : > { %4939 = vmatpush1.bf16.msra.mxu1 %v4938_v22  ;;  %4173 = vmatprep.subr.bf16.mxu0 %v4172_v23  ;;  %v1290_v22 = vld [vmem:[%s5698_s22 + $0x2010] sm:$0xff]  ;;  %v4960_v23 = vpack.c.bf16 %v1295_v16, %v1291_v15  ;;  %v4194_v30 = vpack.c.bf16 %v1292_v21, %v1288_v20  ;;  %v4978_v16 = vpack.c.bf16 %v1326_v10, %v1322_v8  ;;  %v1373_v8 = vld [vmem:[%s5698_s22 + $0x22a8] sm:$0xff]  ;;  %v1375_v10 = vld [vmem:[%s5698_s22 + $0x22b8] sm:$0xff] }
 0x262   : > { %4941 = vmatprep.subr.bf16.mxu1 %v4940_v27  ;;  %v1299_v27 = vld [vmem:[%s5698_s22 + $0x2058] sm:$0xff]  ;;  %v4962_v31 = vpack.c.bf16 %v1294_v24, %v1290_v22  ;;  %v1330_v20 = vld [vmem:[%s5698_s22 + $0x2150] sm:$0xff]  ;;  %v4980_v21 = vpack.c.bf16 %v1335_v14, %v1331_v13  ;;  %v1341_v24 = vld [vmem:[%s5698_s22 + $0x21a8] sm:$0xff] }
 0x263   : > { %v4964_v36 = vpack.c.bf16 %v1303_v28, %v1299_v27  ;;  %v1334_v22 = vld [vmem:[%s5698_s22 + $0x2170] sm:$0xff]  ;;  %v1368_v14 = vld [vmem:[%s5698_s22 + $0x2280] sm:$0xff] }
 0x264   : > { %4175 = vmatpush1.bf16.msra.mxu0 %v4174_v33  ;;  %v1296_v33 = vld [vmem:[%s5698_s22 + $0x2040] sm:$0xff]  ;;  %v4982_v28 = vpack.c.bf16 %v1334_v22, %v1330_v20  ;;  %v1381_v20 = vld [vmem:[%s5698_s22 + $0x22e8] sm:$0xff]  ;;  %v1383_v22 = vld [vmem:[%s5698_s22 + $0x22f8] sm:$0xff] }
 0x265   : > { %4943 = vmatpush1.bf16.msra.mxu1 %v4942_v34  ;;  %4177 = vmatprep.subr.bf16.mxu0 %v4176_v35  ;;  %v1300_v34 = vld [vmem:[%s5698_s22 + $0x2060] sm:$0xff]  ;;  %v1298_v35 = vld [vmem:[%s5698_s22 + $0x2050] sm:$0xff] }
 0x266   : > { %4945 = vmatprep.subr.bf16.mxu1 %v4944_v39  ;;  %v1309_v39 = vld [vmem:[%s5698_s22 + $0x20a8] sm:$0xff]  ;;  %v4198_v43 = vpack.c.bf16 %v1300_v34, %v1296_v33  ;;  %v4966_v44 = vpack.c.bf16 %v1302_v37, %v1298_v35  ;;  %v4984_v33 = vpack.c.bf16 %v1343_v26, %v1339_v25  ;;  %v1342_v34 = vld [vmem:[%s5698_s22 + $0x21b0] sm:$0xff]  ;;  %v1347_v37 = vld [vmem:[%s5698_s22 + $0x21d8] sm:$0xff] }
 0x267   : > { %v1345_v35 = vld [vmem:[%s5698_s22 + $0x21c8] sm:$0xff]  ;;  %v1376_v26 = vld [vmem:[%s5698_s22 + $0x22c0] sm:$0xff] }
 0x268   : > { %4179 = vmatpush1.bf16.msra.mxu0 %v4178_v45  ;;  %v4200_v45 = vpack.c.bf16 %v1309_v39, %v1305_v38  ;;  %v1351_v38 = vld [vmem:[%s5698_s22 + $0x21f8] sm:$0xff] }
 0x269   : > { %4947 = vmatpush1.bf16.msra.mxu1 %v4946_v46  ;;  %4181 = vmatprep.subr.bf16.mxu0 %v4180_v47  ;;  %v1304_v46 = vld [vmem:[%s5698_s22 + $0x2080] sm:$0xff] }
 0x26a   : > { %4949 = vmatprep.subr.bf16.mxu1 %v4948_v51  ;;  %v1308_v47 = vld [vmem:[%s5698_s22 + $0x20a0] sm:$0xff]  ;;  %v1313_v51 = vld [vmem:[%s5698_s22 + $0x20c8] sm:$0xff] }
 0x26b   : > { %v4202_v55 = vpack.c.bf16 %v1308_v47, %v1304_v46  ;;  %v1350_v46 = vld [vmem:[%s5698_s22 + $0x21f0] sm:$0xff]  ;;  %v1353_v47 = vld [vmem:[%s5698_s22 + $0x2208] sm:$0xff] }
 0x26c   : > { %4183 = vmatpush1.bf16.msra.mxu0 %v4182_v57  ;;  %v4204_v57 = vpack.c.bf16 %v1317_v52, %v1313_v51  ;;  %v4224_v53 = vpack.c.bf16 %v1357_v48, %v1353_v47 }
 0x26d   : > { %4951 = vmatpush1.bf16.msra.mxu1 %v4950_v58  ;;  %4185 = vmatprep.subr.bf16.mxu0 %v4184_v59  ;;  %v1312_v58 = vld [vmem:[%s5698_s22 + $0x20c0] sm:$0xff] }
 0x26e   : > { %4953 = vmatprep.subr.bf16.mxu1 %v4952_v63  ;;  %v1316_v59 = vld [vmem:[%s5698_s22 + $0x20e0] sm:$0xff]  ;;  %v1321_v63 = vld [vmem:[%s5698_s22 + $0x2108] sm:$0xff] }
 0x26f   : > { %v4206_v3 = vpack.c.bf16 %v1316_v59, %v1312_v58  ;;  %v1358_v58 = vld [vmem:[%s5698_s22 + $0x2230] sm:$0xff]  ;;  %v1361_v59 = vld [vmem:[%s5698_s22 + $0x2248] sm:$0xff] }
 0x270   : > { %4187 = vmatpush1.bf16.msra.mxu0 %v4186_v5  ;;  %v4208_v5 = vpack.c.bf16 %v1325_v0, %v1321_v63  ;;  %v4228_v1 = vpack.c.bf16 %v1365_v60, %v1361_v59 }
 0x271   : > { %4955 = vmatpush1.bf16.msra.mxu1 %v4954_v6  ;;  %4189 = vmatprep.subr.bf16.mxu0 %v4188_v7  ;;  %v1320_v6 = vld [vmem:[%s5698_s22 + $0x2100] sm:$0xff] }
 0x272   : > { %4957 = vmatprep.subr.bf16.mxu1 %v4956_v11  ;;  %v1324_v7 = vld [vmem:[%s5698_s22 + $0x2120] sm:$0xff]  ;;  %v1329_v11 = vld [vmem:[%s5698_s22 + $0x2148] sm:$0xff] }
 0x273   : > { %v4210_v15 = vpack.c.bf16 %v1324_v7, %v1320_v6  ;;  %v1366_v6 = vld [vmem:[%s5698_s22 + $0x2270] sm:$0xff]  ;;  %v1369_v7 = vld [vmem:[%s5698_s22 + $0x2288] sm:$0xff] }
 0x274   : > { %4191 = vmatpush1.bf16.msra.mxu0 %v4190_v17  ;;  %v4212_v17 = vpack.c.bf16 %v1333_v12, %v1329_v11  ;;  %v4232_v13 = vpack.c.bf16 %v1373_v8, %v1369_v7 }
 0x275   : > { %4959 = vmatpush1.bf16.msra.mxu1 %v4958_v18  ;;  %4193 = vmatprep.subr.bf16.mxu0 %v4192_v19  ;;  %v1328_v18 = vld [vmem:[%s5698_s22 + $0x2140] sm:$0xff] }
 0x276   : > { %4961 = vmatprep.subr.bf16.mxu1 %v4960_v23  ;;  %v1332_v19 = vld [vmem:[%s5698_s22 + $0x2160] sm:$0xff]  ;;  %v1337_v23 = vld [vmem:[%s5698_s22 + $0x2188] sm:$0xff] }
 0x277   : > { %2384 = vmatmul.mubr.f32.vlgmr.msra.gmra.mrb[0].mxu0 %v254_v29  ;;  %v4214_v27 = vpack.c.bf16 %v1332_v19, %v1328_v18  ;;  %v1374_v18 = vld [vmem:[%s5698_s22 + $0x22b0] sm:$0xff]  ;;  %v1377_v19 = vld [vmem:[%s5698_s22 + $0x22c8] sm:$0xff] }
 0x278   : > { %4195 = vmatpush1.bf16.msra.mxu0 %v4194_v30  ;;  %3236 = vmatmul.mubr.f32.vlgmr.msra.gmra.mrb[0].mxu1 %v254_v29  ;;  %v4216_v29 = vpack.c.bf16 %v1341_v24, %v1337_v23  ;;  %v1336_v30 = vld [vmem:[%s5698_s22 + $0x2180] sm:$0xff]  ;;  %v4236_v25 = vpack.c.bf16 %v1381_v20, %v1377_v19 }
 0x279   : > { %4963 = vmatpush1.bf16.msra.mxu1 %v4962_v31  ;;  %4197 = vmatprep.subr.bf16.mxu0 %v4196_v32  ;;  %v1340_v31 = vld [vmem:[%s5698_s22 + $0x21a0] sm:$0xff]  ;;  %v1338_v32 = vld [vmem:[%s5698_s22 + $0x2190] sm:$0xff] }
 0x27a   : > { %4965 = vmatprep.subr.bf16.mxu1 %v4964_v36  ;;  %2454 = vmatprep.mubr.f32.mxu0 %v257_v42  ;;  %v1349_v36 = vld [vmem:[%s5698_s22 + $0x21e8] sm:$0xff]  ;;  %v4218_v39 = vpack.c.bf16 %v1340_v31, %v1336_v30  ;;  %v4986_v40 = vpack.c.bf16 %v1342_v34, %v1338_v32  ;;  %v1382_v30 = vld [vmem:[%s5698_s22 + $0x22f0] sm:$0xff]  ;;  %v1391_v34 = vld [vmem:[%s5698_s22 + $0x2338] sm:$0xff] }
 0x27b   : > { %3306 = vmatprep.mubr.f32.mxu1 %v257_v42  ;;  %v4220_v41 = vpack.c.bf16 %v1349_v36, %v1345_v35  ;;  %v1344_v42 = vld [vmem:[%s5698_s22 + $0x21c0] sm:$0xff]  ;;  %v1385_v31 = vld [vmem:[%s5698_s22 + $0x2308] sm:$0xff] }
 0x27c   : > { %4199 = vmatpush1.bf16.msra.mxu0 %v4198_v43  ;;  %v1348_v43 = vld [vmem:[%s5698_s22 + $0x21e0] sm:$0xff]  ;;  %v1389_v32 = vld [vmem:[%s5698_s22 + $0x2328] sm:$0xff] }
 0x27d   : > { %4967 = vmatpush1.bf16.msra.mxu1 %v4966_v44  ;;  %4201 = vmatprep.subr.bf16.mxu0 %v4200_v45  ;;  %v1346_v44 = vld [vmem:[%s5698_s22 + $0x21d0] sm:$0xff]  ;;  %v4988_v45 = vpack.c.bf16 %v1351_v38, %v1347_v37  ;;  %v4222_v51 = vpack.c.bf16 %v1348_v43, %v1344_v42  ;;  %v4240_v37 = vpack.c.bf16 %v1389_v32, %v1385_v31  ;;  %v1384_v38 = vld [vmem:[%s5698_s22 + $0x2300] sm:$0xff]  ;;  %v1393_v43 = vld [vmem:[%s5698_s22 + $0x2348] sm:$0xff] }
 0x27e   : > { %4969 = vmatprep.subr.bf16.mxu1 %v4968_v49  ;;  %v1355_v49 = vld [vmem:[%s5698_s22 + $0x2218] sm:$0xff]  ;;  %v4990_v52 = vpack.c.bf16 %v1350_v46, %v1346_v44  ;;  %v1390_v42 = vld [vmem:[%s5698_s22 + $0x2330] sm:$0xff]  ;;  %v1397_v44 = vld [vmem:[%s5698_s22 + $0x2368] sm:$0xff] }
 0x27f   : > { %v1399_v46 = vld [vmem:[%s5698_s22 + $0x2378] sm:$0xff]  ;;  %v256_v31 = vld [vmem:[#allocation2 + $0x80] sm:$0xff] }
 0x280   : > { %4203 = vmatpush1.bf16.msra.mxu0 %v4202_v55  ;;  %v1356_v55 = vld [vmem:[%s5698_s22 + $0x2220] sm:$0xff] }
 0x281   : > { %4971 = vmatpush1.bf16.msra.mxu1 %v4970_v56  ;;  %4205 = vmatprep.subr.bf16.mxu0 %v4204_v57  ;;  %v1354_v56 = vld [vmem:[%s5698_s22 + $0x2210] sm:$0xff]  ;;  %v4992_v57 = vpack.c.bf16 %v1359_v50, %v1355_v49  ;;  %v4226_v63 = vpack.c.bf16 %v1356_v55, %v1352_v54  ;;  %v4244_v49 = vpack.c.bf16 %v1397_v44, %v1393_v43  ;;  %v1392_v50 = vld [vmem:[%s5698_s22 + $0x2340] sm:$0xff]  ;;  %v1401_v55 = vld [vmem:[%s5698_s22 + $0x2388] sm:$0xff] }
 0x282   : > { %4973 = vmatprep.subr.bf16.mxu1 %v4972_v61  ;;  %v1363_v61 = vld [vmem:[%s5698_s22 + $0x2258] sm:$0xff]  ;;  %v4994_v0 = vpack.c.bf16 %v1358_v58, %v1354_v56  ;;  %v1398_v54 = vld [vmem:[%s5698_s22 + $0x2370] sm:$0xff]  ;;  %v1405_v56 = vld [vmem:[%s5698_s22 + $0x23a8] sm:$0xff] }
 0x283   : > { %v1407_v58 = vld [vmem:[%s5698_s22 + $0x23b8] sm:$0xff] }
 0x284   : > { %4207 = vmatpush1.bf16.msra.mxu0 %v4206_v3  ;;  %v1364_v3 = vld [vmem:[%s5698_s22 + $0x2260] sm:$0xff]  ;;  %v1439_v43 = vld [vmem:[%s5698_s22 + $0x24b8] sm:$0xff] }
 0x285   : > { %4975 = vmatpush1.bf16.msra.mxu1 %v4974_v4  ;;  %4209 = vmatprep.subr.bf16.mxu0 %v4208_v5  ;;  %v1362_v4 = vld [vmem:[%s5698_s22 + $0x2250] sm:$0xff]  ;;  %v4996_v5 = vpack.c.bf16 %v1367_v62, %v1363_v61  ;;  %v4230_v11 = vpack.c.bf16 %v1364_v3, %v1360_v2  ;;  %v4248_v61 = vpack.c.bf16 %v1405_v56, %v1401_v55  ;;  %v1400_v62 = vld [vmem:[%s5698_s22 + $0x2380] sm:$0xff]  ;;  %v1409_v3 = vld [vmem:[%s5698_s22 + $0x23c8] sm:$0xff] }
 0x286   : > { %4977 = vmatprep.subr.bf16.mxu1 %v4976_v9  ;;  %v1371_v9 = vld [vmem:[%s5698_s22 + $0x2298] sm:$0xff]  ;;  %v4998_v12 = vpack.c.bf16 %v1366_v6, %v1362_v4  ;;  %v1406_v2 = vld [vmem:[%s5698_s22 + $0x23b0] sm:$0xff]  ;;  %v1413_v4 = vld [vmem:[%s5698_s22 + $0x23e8] sm:$0xff] }
 0x287   : > { %v1415_v6 = vld [vmem:[%s5698_s22 + $0x23f8] sm:$0xff] }
 0x288   : > { %4211 = vmatpush1.bf16.msra.mxu0 %v4210_v15  ;;  %v1372_v15 = vld [vmem:[%s5698_s22 + $0x22a0] sm:$0xff]  ;;  %v259_v44 = vld [vmem:[#allocation2 + $0x98] sm:$0xff] }
 0x289   : > { %4979 = vmatpush1.bf16.msra.mxu1 %v4978_v16  ;;  %4213 = vmatprep.subr.bf16.mxu0 %v4212_v17  ;;  %v1370_v16 = vld [vmem:[%s5698_s22 + $0x2290] sm:$0xff]  ;;  %v5000_v17 = vpack.c.bf16 %v1375_v10, %v1371_v9  ;;  %v4234_v23 = vpack.c.bf16 %v1372_v15, %v1368_v14  ;;  %v4252_v9 = vpack.c.bf16 %v1413_v4, %v1409_v3  ;;  %v1408_v10 = vld [vmem:[%s5698_s22 + $0x23c0] sm:$0xff]  ;;  %v1417_v15 = vld [vmem:[%s5698_s22 + $0x2408] sm:$0xff] }
 0x28a   : > { %4981 = vmatprep.subr.bf16.mxu1 %v4980_v21  ;;  %v1379_v21 = vld [vmem:[%s5698_s22 + $0x22d8] sm:$0xff]  ;;  %v5002_v24 = vpack.c.bf16 %v1374_v18, %v1370_v16  ;;  %v1414_v14 = vld [vmem:[%s5698_s22 + $0x23f0] sm:$0xff]  ;;  %v1421_v16 = vld [vmem:[%s5698_s22 + $0x2428] sm:$0xff] }
 0x28b   : > { %v1423_v18 = vld [vmem:[%s5698_s22 + $0x2438] sm:$0xff] }
 0x28c   : > { %4215 = vmatpush1.bf16.msra.mxu0 %v4214_v27  ;;  %v1380_v27 = vld [vmem:[%s5698_s22 + $0x22e0] sm:$0xff]  ;;  %v1443_v55 = vld [vmem:[%s5698_s22 + $0x24d8] sm:$0xff] }
 0x28d   : > { %4983 = vmatpush1.bf16.msra.mxu1 %v4982_v28  ;;  %4217 = vmatprep.subr.bf16.mxu0 %v4216_v29  ;;  %v1378_v28 = vld [vmem:[%s5698_s22 + $0x22d0] sm:$0xff]  ;;  %v5004_v29 = vpack.c.bf16 %v1383_v22, %v1379_v21  ;;  %v4238_v35 = vpack.c.bf16 %v1380_v27, %v1376_v26  ;;  %v4256_v21 = vpack.c.bf16 %v1421_v16, %v1417_v15  ;;  %v1416_v22 = vld [vmem:[%s5698_s22 + $0x2400] sm:$0xff]  ;;  %v1425_v27 = vld [vmem:[%s5698_s22 + $0x2448] sm:$0xff] }
 0x28e   : > { %4985 = vmatprep.subr.bf16.mxu1 %v4984_v33  ;;  %v1387_v33 = vld [vmem:[%s5698_s22 + $0x2318] sm:$0xff]  ;;  %v5006_v36 = vpack.c.bf16 %v1382_v30, %v1378_v28  ;;  %v1422_v26 = vld [vmem:[%s5698_s22 + $0x2430] sm:$0xff]  ;;  %v1429_v28 = vld [vmem:[%s5698_s22 + $0x2468] sm:$0xff] }
 0x28f   : > { %v1431_v30 = vld [vmem:[%s5698_s22 + $0x2478] sm:$0xff] }
 0x290   : > { %4219 = vmatpush1.bf16.msra.mxu0 %v4218_v39  ;;  %v1388_v39 = vld [vmem:[%s5698_s22 + $0x2320] sm:$0xff]  ;;  %v1447_v56 = vld [vmem:[%s5698_s22 + $0x24f8] sm:$0xff] }
 0x291   : > { %4987 = vmatpush1.bf16.msra.mxu1 %v4986_v40  ;;  %4221 = vmatprep.subr.bf16.mxu0 %v4220_v41  ;;  %v1386_v40 = vld [vmem:[%s5698_s22 + $0x2310] sm:$0xff]  ;;  %v5008_v41 = vpack.c.bf16 %v1391_v34, %v1387_v33  ;;  %v4242_v47 = vpack.c.bf16 %v1388_v39, %v1384_v38  ;;  %v4260_v34 = vpack.c.bf16 %v1429_v28, %v1425_v27  ;;  %v1451_v3 = vld [vmem:[%s5698_s22 + $0x2518] sm:$0xff] }
 0x292   : > { %4989 = vmatprep.subr.bf16.mxu1 %v4988_v45  ;;  %v1395_v45 = vld [vmem:[%s5698_s22 + $0x2358] sm:$0xff]  ;;  %v5010_v48 = vpack.c.bf16 %v1390_v42, %v1386_v40  ;;  %v1430_v39 = vld [vmem:[%s5698_s22 + $0x2470] sm:$0xff]  ;;  %v1433_v40 = vld [vmem:[%s5698_s22 + $0x2488] sm:$0xff] }
 0x293   : > { %v1435_v42 = vld [vmem:[%s5698_s22 + $0x2498] sm:$0xff] }
 0x294   : > { %4223 = vmatpush1.bf16.msra.mxu0 %v4222_v51  ;;  %v1396_v51 = vld [vmem:[%s5698_s22 + $0x2360] sm:$0xff]  ;;  %v1455_v4 = vld [vmem:[%s5698_s22 + $0x2538] sm:$0xff] }
 0x295   : > { %4991 = vmatpush1.bf16.msra.mxu1 %v4990_v52  ;;  %4225 = vmatprep.subr.bf16.mxu0 %v4224_v53  ;;  %v1394_v52 = vld [vmem:[%s5698_s22 + $0x2350] sm:$0xff]  ;;  %v5012_v53 = vpack.c.bf16 %v1399_v46, %v1395_v45  ;;  %v4246_v59 = vpack.c.bf16 %v1396_v51, %v1392_v50  ;;  %v5032_v51 = vpack.c.bf16 %v1439_v43, %v1435_v42  ;;  %v1459_v15 = vld [vmem:[%s5698_s22 + $0x2558] sm:$0xff] }
 0x296   : > { %4993 = vmatprep.subr.bf16.mxu1 %v4992_v57  ;;  %v1403_v57 = vld [vmem:[%s5698_s22 + $0x2398] sm:$0xff]  ;;  %v5014_v60 = vpack.c.bf16 %v1398_v54, %v1394_v52  ;;  %v1434_v50 = vld [vmem:[%s5698_s22 + $0x2490] sm:$0xff]  ;;  %v1445_v54 = vld [vmem:[%s5698_s22 + $0x24e8] sm:$0xff] }
 0x297   : > { %v1438_v52 = vld [vmem:[%s5698_s22 + $0x24b0] sm:$0xff]  ;;  %v1463_v16 = vld [vmem:[%s5698_s22 + $0x2578] sm:$0xff] }
 0x298   : > { %4227 = vmatpush1.bf16.msra.mxu0 %v4226_v63  ;;  %v1404_v63 = vld [vmem:[%s5698_s22 + $0x23a0] sm:$0xff]  ;;  %v1467_v27 = vld [vmem:[%s5698_s22 + $0x2598] sm:$0xff] }
 0x299   : > { %4995 = vmatpush1.bf16.msra.mxu1 %v4994_v0  ;;  %4229 = vmatprep.subr.bf16.mxu0 %v4228_v1  ;;  %v1402_v0 = vld [vmem:[%s5698_s22 + $0x2390] sm:$0xff]  ;;  %v5016_v1 = vpack.c.bf16 %v1407_v58, %v1403_v57  ;;  %v4250_v7 = vpack.c.bf16 %v1404_v63, %v1400_v62  ;;  %v5034_v58 = vpack.c.bf16 %v1438_v52, %v1434_v50  ;;  %v1471_v28 = vld [vmem:[%s5698_s22 + $0x25b8] sm:$0xff]  ;;  %v1485_v50 = vld [vmem:[%s5698_s22 + $0x2628] sm:$0xff] }
 0x29a   : > { %4997 = vmatprep.subr.bf16.mxu1 %v4996_v5  ;;  %v1411_v5 = vld [vmem:[%s5698_s22 + $0x23d8] sm:$0xff]  ;;  %v5018_v8 = vpack.c.bf16 %v1406_v2, %v1402_v0  ;;  %v1442_v62 = vld [vmem:[%s5698_s22 + $0x24d0] sm:$0xff]  ;;  %v5036_v63 = vpack.c.bf16 %v1447_v56, %v1443_v55  ;;  %v1453_v2 = vld [vmem:[%s5698_s22 + $0x2528] sm:$0xff] }
 0x29b   : > { %v1446_v0 = vld [vmem:[%s5698_s22 + $0x24f0] sm:$0xff]  ;;  %v1487_v52 = vld [vmem:[%s5698_s22 + $0x2638] sm:$0xff]  ;;  %v1480_v56 = vld [vmem:[%s5698_s22 + $0x2600] sm:$0xff] }
 0x29c   : > { %4231 = vmatpush1.bf16.msra.mxu0 %v4230_v11  ;;  %v1412_v11 = vld [vmem:[%s5698_s22 + $0x23e0] sm:$0xff] }
 0x29d   : > { %4999 = vmatpush1.bf16.msra.mxu1 %v4998_v12  ;;  %4233 = vmatprep.subr.bf16.mxu0 %v4232_v13  ;;  %v1410_v12 = vld [vmem:[%s5698_s22 + $0x23d0] sm:$0xff]  ;;  %v5020_v13 = vpack.c.bf16 %v1415_v6, %v1411_v5  ;;  %v4254_v19 = vpack.c.bf16 %v1412_v11, %v1408_v10  ;;  %v5038_v6 = vpack.c.bf16 %v1446_v0, %v1442_v62  ;;  %v1493_v62 = vld [vmem:[%s5698_s22 + $0x2668] sm:$0xff]  ;;  %v1495_v0 = vld [vmem:[%s5698_s22 + $0x2678] sm:$0xff] }
 0x29e   : > { %5001 = vmatprep.subr.bf16.mxu1 %v5000_v17  ;;  %v1419_v17 = vld [vmem:[%s5698_s22 + $0x2418] sm:$0xff]  ;;  %v5022_v20 = vpack.c.bf16 %v1414_v14, %v1410_v12  ;;  %v1450_v10 = vld [vmem:[%s5698_s22 + $0x2510] sm:$0xff]  ;;  %v5040_v11 = vpack.c.bf16 %v1455_v4, %v1451_v3  ;;  %v1461_v14 = vld [vmem:[%s5698_s22 + $0x2568] sm:$0xff] }
 0x29f   : > { %v1454_v12 = vld [vmem:[%s5698_s22 + $0x2530] sm:$0xff]  ;;  %v1488_v4 = vld [vmem:[%s5698_s22 + $0x2640] sm:$0xff] }
 0x2a0   : > { %4235 = vmatpush1.bf16.msra.mxu0 %v4234_v23  ;;  %v1420_v23 = vld [vmem:[%s5698_s22 + $0x2420] sm:$0xff] }
 0x2a1   : > { %5003 = vmatpush1.bf16.msra.mxu1 %v5002_v24  ;;  %4237 = vmatprep.subr.bf16.mxu0 %v4236_v25  ;;  %v1418_v24 = vld [vmem:[%s5698_s22 + $0x2410] sm:$0xff]  ;;  %v5024_v25 = vpack.c.bf16 %v1423_v18, %v1419_v17  ;;  %v4258_v32 = vpack.c.bf16 %v1420_v23, %v1416_v22  ;;  %v5042_v18 = vpack.c.bf16 %v1454_v12, %v1450_v10  ;;  %v1501_v10 = vld [vmem:[%s5698_s22 + $0x26a8] sm:$0xff]  ;;  %v1503_v12 = vld [vmem:[%s5698_s22 + $0x26b8] sm:$0xff] }
 0x2a2   : > { %5005 = vmatprep.subr.bf16.mxu1 %v5004_v29  ;;  %v1427_v29 = vld [vmem:[%s5698_s22 + $0x2458] sm:$0xff]  ;;  %v5026_v33 = vpack.c.bf16 %v1422_v26, %v1418_v24  ;;  %v1458_v22 = vld [vmem:[%s5698_s22 + $0x2550] sm:$0xff]  ;;  %v5044_v23 = vpack.c.bf16 %v1463_v16, %v1459_v15  ;;  %v1469_v26 = vld [vmem:[%s5698_s22 + $0x25a8] sm:$0xff] }
 0x2a3   : > { %v5028_v38 = vpack.c.bf16 %v1431_v30, %v1427_v29  ;;  %v1462_v24 = vld [vmem:[%s5698_s22 + $0x2570] sm:$0xff]  ;;  %v1496_v16 = vld [vmem:[%s5698_s22 + $0x2680] sm:$0xff] }
 0x2a4   : > { %4239 = vmatpush1.bf16.msra.mxu0 %v4238_v35  ;;  %v1424_v35 = vld [vmem:[%s5698_s22 + $0x2440] sm:$0xff]  ;;  %v5046_v30 = vpack.c.bf16 %v1462_v24, %v1458_v22  ;;  %v1509_v22 = vld [vmem:[%s5698_s22 + $0x26e8] sm:$0xff]  ;;  %v1511_v24 = vld [vmem:[%s5698_s22 + $0x26f8] sm:$0xff] }
 0x2a5   : > { %5007 = vmatpush1.bf16.msra.mxu1 %v5006_v36  ;;  %4241 = vmatprep.subr.bf16.mxu0 %v4240_v37  ;;  %v1428_v36 = vld [vmem:[%s5698_s22 + $0x2460] sm:$0xff]  ;;  %v1426_v37 = vld [vmem:[%s5698_s22 + $0x2450] sm:$0xff] }
 0x2a6   : > { %5009 = vmatprep.subr.bf16.mxu1 %v5008_v41  ;;  %v1437_v41 = vld [vmem:[%s5698_s22 + $0x24a8] sm:$0xff]  ;;  %v4262_v45 = vpack.c.bf16 %v1428_v36, %v1424_v35  ;;  %v5030_v46 = vpack.c.bf16 %v1430_v39, %v1426_v37  ;;  %v5048_v35 = vpack.c.bf16 %v1471_v28, %v1467_v27  ;;  %v1470_v36 = vld [vmem:[%s5698_s22 + $0x25b0] sm:$0xff]  ;;  %v1475_v39 = vld [vmem:[%s5698_s22 + $0x25d8] sm:$0xff] }
 0x2a7   : > { %v1473_v37 = vld [vmem:[%s5698_s22 + $0x25c8] sm:$0xff]  ;;  %v1504_v28 = vld [vmem:[%s5698_s22 + $0x26c0] sm:$0xff] }
 0x2a8   : > { %4243 = vmatpush1.bf16.msra.mxu0 %v4242_v47  ;;  %v4264_v47 = vpack.c.bf16 %v1437_v41, %v1433_v40  ;;  %v1479_v40 = vld [vmem:[%s5698_s22 + $0x25f8] sm:$0xff] }
 0x2a9   : > { %5011 = vmatpush1.bf16.msra.mxu1 %v5010_v48  ;;  %4245 = vmatprep.subr.bf16.mxu0 %v4244_v49  ;;  %v1432_v48 = vld [vmem:[%s5698_s22 + $0x2480] sm:$0xff] }
 0x2aa   : > { %5013 = vmatprep.subr.bf16.mxu1 %v5012_v53  ;;  %v1436_v49 = vld [vmem:[%s5698_s22 + $0x24a0] sm:$0xff]  ;;  %v1441_v53 = vld [vmem:[%s5698_s22 + $0x24c8] sm:$0xff] }
 0x2ab   : > { %v4266_v57 = vpack.c.bf16 %v1436_v49, %v1432_v48  ;;  %v1478_v48 = vld [vmem:[%s5698_s22 + $0x25f0] sm:$0xff]  ;;  %v1481_v49 = vld [vmem:[%s5698_s22 + $0x2608] sm:$0xff] }
 0x2ac   : > { %4247 = vmatpush1.bf16.msra.mxu0 %v4246_v59  ;;  %v4268_v59 = vpack.c.bf16 %v1445_v54, %v1441_v53  ;;  %v4288_v55 = vpack.c.bf16 %v1485_v50, %v1481_v49 }
 0x2ad   : > { %5015 = vmatpush1.bf16.msra.mxu1 %v5014_v60  ;;  %4249 = vmatprep.subr.bf16.mxu0 %v4248_v61  ;;  %v1440_v60 = vld [vmem:[%s5698_s22 + $0x24c0] sm:$0xff] }
 0x2ae   : > { %5017 = vmatprep.subr.bf16.mxu1 %v5016_v1  ;;  %v1444_v61 = vld [vmem:[%s5698_s22 + $0x24e0] sm:$0xff]  ;;  %v1449_v1 = vld [vmem:[%s5698_s22 + $0x2508] sm:$0xff] }
 0x2af   : > { %v4270_v5 = vpack.c.bf16 %v1444_v61, %v1440_v60  ;;  %v1486_v60 = vld [vmem:[%s5698_s22 + $0x2630] sm:$0xff]  ;;  %v1489_v61 = vld [vmem:[%s5698_s22 + $0x2648] sm:$0xff] }
 0x2b0   : > { %4251 = vmatpush1.bf16.msra.mxu0 %v4250_v7  ;;  %v4272_v7 = vpack.c.bf16 %v1453_v2, %v1449_v1  ;;  %v4292_v3 = vpack.c.bf16 %v1493_v62, %v1489_v61 }
 0x2b1   : > { %5019 = vmatpush1.bf16.msra.mxu1 %v5018_v8  ;;  %4253 = vmatprep.subr.bf16.mxu0 %v4252_v9  ;;  %v1448_v8 = vld [vmem:[%s5698_s22 + $0x2500] sm:$0xff] }
 0x2b2   : > { %5021 = vmatprep.subr.bf16.mxu1 %v5020_v13  ;;  %v1452_v9 = vld [vmem:[%s5698_s22 + $0x2520] sm:$0xff]  ;;  %v1457_v13 = vld [vmem:[%s5698_s22 + $0x2548] sm:$0xff] }
 0x2b3   : > { %v4274_v17 = vpack.c.bf16 %v1452_v9, %v1448_v8  ;;  %v1494_v8 = vld [vmem:[%s5698_s22 + $0x2670] sm:$0xff]  ;;  %v1497_v9 = vld [vmem:[%s5698_s22 + $0x2688] sm:$0xff] }
 0x2b4   : > { %4255 = vmatpush1.bf16.msra.mxu0 %v4254_v19  ;;  %v4276_v19 = vpack.c.bf16 %v1461_v14, %v1457_v13  ;;  %v4296_v15 = vpack.c.bf16 %v1501_v10, %v1497_v9 }
 0x2b5   : > { %5023 = vmatpush1.bf16.msra.mxu1 %v5022_v20  ;;  %4257 = vmatprep.subr.bf16.mxu0 %v4256_v21  ;;  %v1456_v20 = vld [vmem:[%s5698_s22 + $0x2540] sm:$0xff] }
 0x2b6   : > { %5025 = vmatprep.subr.bf16.mxu1 %v5024_v25  ;;  %v1460_v21 = vld [vmem:[%s5698_s22 + $0x2560] sm:$0xff]  ;;  %v1465_v25 = vld [vmem:[%s5698_s22 + $0x2588] sm:$0xff] }
 0x2b7   : > { %2455 = vmatmul.mubr.f32.vlgmr.msra.gmra.mrb[0].mxu0 %v256_v31  ;;  %v4278_v29 = vpack.c.bf16 %v1460_v21, %v1456_v20  ;;  %v1502_v20 = vld [vmem:[%s5698_s22 + $0x26b0] sm:$0xff]  ;;  %v1505_v21 = vld [vmem:[%s5698_s22 + $0x26c8] sm:$0xff] }
 0x2b8   : > { %4259 = vmatpush1.bf16.msra.mxu0 %v4258_v32  ;;  %3307 = vmatmul.mubr.f32.vlgmr.msra.gmra.mrb[0].mxu1 %v256_v31  ;;  %v4280_v31 = vpack.c.bf16 %v1469_v26, %v1465_v25  ;;  %v1464_v32 = vld [vmem:[%s5698_s22 + $0x2580] sm:$0xff]  ;;  %v4300_v27 = vpack.c.bf16 %v1509_v22, %v1505_v21 }
 0x2b9   : > { %5027 = vmatpush1.bf16.msra.mxu1 %v5026_v33  ;;  %4261 = vmatprep.subr.bf16.mxu0 %v4260_v34  ;;  %v1468_v33 = vld [vmem:[%s5698_s22 + $0x25a0] sm:$0xff]  ;;  %v1466_v34 = vld [vmem:[%s5698_s22 + $0x2590] sm:$0xff] }
 0x2ba   : > { %5029 = vmatprep.subr.bf16.mxu1 %v5028_v38  ;;  %2525 = vmatprep.mubr.f32.mxu0 %v259_v44  ;;  %v1477_v38 = vld [vmem:[%s5698_s22 + $0x25e8] sm:$0xff]  ;;  %v4282_v41 = vpack.c.bf16 %v1468_v33, %v1464_v32  ;;  %v5050_v42 = vpack.c.bf16 %v1470_v36, %v1466_v34  ;;  %v1510_v32 = vld [vmem:[%s5698_s22 + $0x26f0] sm:$0xff]  ;;  %v1519_v36 = vld [vmem:[%s5698_s22 + $0x2738] sm:$0xff] }
 0x2bb   : > { %3377 = vmatprep.mubr.f32.mxu1 %v259_v44  ;;  %v4284_v43 = vpack.c.bf16 %v1477_v38, %v1473_v37  ;;  %v1472_v44 = vld [vmem:[%s5698_s22 + $0x25c0] sm:$0xff]  ;;  %v1513_v33 = vld [vmem:[%s5698_s22 + $0x2708] sm:$0xff] }
 0x2bc   : > { %4263 = vmatpush1.bf16.msra.mxu0 %v4262_v45  ;;  %v1476_v45 = vld [vmem:[%s5698_s22 + $0x25e0] sm:$0xff]  ;;  %v1517_v34 = vld [vmem:[%s5698_s22 + $0x2728] sm:$0xff] }
 0x2bd   : > { %5031 = vmatpush1.bf16.msra.mxu1 %v5030_v46  ;;  %4265 = vmatprep.subr.bf16.mxu0 %v4264_v47  ;;  %v1474_v46 = vld [vmem:[%s5698_s22 + $0x25d0] sm:$0xff]  ;;  %v5052_v47 = vpack.c.bf16 %v1479_v40, %v1475_v39  ;;  %v4286_v53 = vpack.c.bf16 %v1476_v45, %v1472_v44  ;;  %v4304_v39 = vpack.c.bf16 %v1517_v34, %v1513_v33  ;;  %v1512_v40 = vld [vmem:[%s5698_s22 + $0x2700] sm:$0xff]  ;;  %v1521_v45 = vld [vmem:[%s5698_s22 + $0x2748] sm:$0xff] }
 0x2be   : > { %5033 = vmatprep.subr.bf16.mxu1 %v5032_v51  ;;  %v1483_v51 = vld [vmem:[%s5698_s22 + $0x2618] sm:$0xff]  ;;  %v5054_v54 = vpack.c.bf16 %v1478_v48, %v1474_v46  ;;  %v1518_v44 = vld [vmem:[%s5698_s22 + $0x2730] sm:$0xff]  ;;  %v1525_v46 = vld [vmem:[%s5698_s22 + $0x2768] sm:$0xff] }
 0x2bf   : > { %v1527_v48 = vld [vmem:[%s5698_s22 + $0x2778] sm:$0xff]  ;;  %v258_v33 = vld [vmem:[#allocation2 + $0x90] sm:$0xff] }
 0x2c0   : > { %4267 = vmatpush1.bf16.msra.mxu0 %v4266_v57  ;;  %v1484_v57 = vld [vmem:[%s5698_s22 + $0x2620] sm:$0xff] }
 0x2c1   : > { %5035 = vmatpush1.bf16.msra.mxu1 %v5034_v58  ;;  %4269 = vmatprep.subr.bf16.mxu0 %v4268_v59  ;;  %v1482_v58 = vld [vmem:[%s5698_s22 + $0x2610] sm:$0xff]  ;;  %v5056_v59 = vpack.c.bf16 %v1487_v52, %v1483_v51  ;;  %v4290_v1 = vpack.c.bf16 %v1484_v57, %v1480_v56  ;;  %v4308_v51 = vpack.c.bf16 %v1525_v46, %v1521_v45  ;;  %v1520_v52 = vld [vmem:[%s5698_s22 + $0x2740] sm:$0xff]  ;;  %v1529_v57 = vld [vmem:[%s5698_s22 + $0x2788] sm:$0xff] }
 0x2c2   : > { %5037 = vmatprep.subr.bf16.mxu1 %v5036_v63  ;;  %v1491_v63 = vld [vmem:[%s5698_s22 + $0x2658] sm:$0xff]  ;;  %v5058_v2 = vpack.c.bf16 %v1486_v60, %v1482_v58  ;;  %v1526_v56 = vld [vmem:[%s5698_s22 + $0x2770] sm:$0xff]  ;;  %v1533_v58 = vld [vmem:[%s5698_s22 + $0x27a8] sm:$0xff] }
 0x2c3   : > { %v1535_v60 = vld [vmem:[%s5698_s22 + $0x27b8] sm:$0xff]  ;;  %v261_v46 = vld [vmem:[#allocation2 + $0xa8] sm:$0xff] }
 0x2c4   : > { %4271 = vmatpush1.bf16.msra.mxu0 %v4270_v5  ;;  %v1492_v5 = vld [vmem:[%s5698_s22 + $0x2660] sm:$0xff]  ;;  %v1567_v45 = vld [vmem:[%s5698_s22 + $0x28b8] sm:$0xff] }
 0x2c5   : > { %5039 = vmatpush1.bf16.msra.mxu1 %v5038_v6  ;;  %4273 = vmatprep.subr.bf16.mxu0 %v4272_v7  ;;  %v1490_v6 = vld [vmem:[%s5698_s22 + $0x2650] sm:$0xff]  ;;  %v5060_v7 = vpack.c.bf16 %v1495_v0, %v1491_v63  ;;  %v4294_v13 = vpack.c.bf16 %v1492_v5, %v1488_v4  ;;  %v4312_v63 = vpack.c.bf16 %v1533_v58, %v1529_v57  ;;  %v1528_v0 = vld [vmem:[%s5698_s22 + $0x2780] sm:$0xff]  ;;  %v1537_v5 = vld [vmem:[%s5698_s22 + $0x27c8] sm:$0xff] }
 0x2c6   : > { %5041 = vmatprep.subr.bf16.mxu1 %v5040_v11  ;;  %v1499_v11 = vld [vmem:[%s5698_s22 + $0x2698] sm:$0xff]  ;;  %v5062_v14 = vpack.c.bf16 %v1494_v8, %v1490_v6  ;;  %v1534_v4 = vld [vmem:[%s5698_s22 + $0x27b0] sm:$0xff]  ;;  %v1541_v6 = vld [vmem:[%s5698_s22 + $0x27e8] sm:$0xff] }
 0x2c7   : > { %v1543_v8 = vld [vmem:[%s5698_s22 + $0x27f8] sm:$0xff] }
 0x2c8   : > { %4275 = vmatpush1.bf16.msra.mxu0 %v4274_v17  ;;  %v1500_v17 = vld [vmem:[%s5698_s22 + $0x26a0] sm:$0xff]  ;;  %v1571_v57 = vld [vmem:[%s5698_s22 + $0x28d8] sm:$0xff] }
 0x2c9   : > { %5043 = vmatpush1.bf16.msra.mxu1 %v5042_v18  ;;  %4277 = vmatprep.subr.bf16.mxu0 %v4276_v19  ;;  %v1498_v18 = vld [vmem:[%s5698_s22 + $0x2690] sm:$0xff]  ;;  %v5064_v19 = vpack.c.bf16 %v1503_v12, %v1499_v11  ;;  %v4298_v25 = vpack.c.bf16 %v1500_v17, %v1496_v16  ;;  %v4316_v11 = vpack.c.bf16 %v1541_v6, %v1537_v5  ;;  %v1536_v12 = vld [vmem:[%s5698_s22 + $0x27c0] sm:$0xff]  ;;  %v1545_v17 = vld [vmem:[%s5698_s22 + $0x2808] sm:$0xff] }
 0x2ca   : > { %5045 = vmatprep.subr.bf16.mxu1 %v5044_v23  ;;  %v1507_v23 = vld [vmem:[%s5698_s22 + $0x26d8] sm:$0xff]  ;;  %v5066_v26 = vpack.c.bf16 %v1502_v20, %v1498_v18  ;;  %v1542_v16 = vld [vmem:[%s5698_s22 + $0x27f0] sm:$0xff]  ;;  %v1549_v18 = vld [vmem:[%s5698_s22 + $0x2828] sm:$0xff] }
 0x2cb   : > { %v1551_v20 = vld [vmem:[%s5698_s22 + $0x2838] sm:$0xff] }
 0x2cc   : > { %4279 = vmatpush1.bf16.msra.mxu0 %v4278_v29  ;;  %v1508_v29 = vld [vmem:[%s5698_s22 + $0x26e0] sm:$0xff]  ;;  %v1575_v58 = vld [vmem:[%s5698_s22 + $0x28f8] sm:$0xff] }
 0x2cd   : > { %5047 = vmatpush1.bf16.msra.mxu1 %v5046_v30  ;;  %4281 = vmatprep.subr.bf16.mxu0 %v4280_v31  ;;  %v1506_v30 = vld [vmem:[%s5698_s22 + $0x26d0] sm:$0xff]  ;;  %v5068_v31 = vpack.c.bf16 %v1511_v24, %v1507_v23  ;;  %v4302_v37 = vpack.c.bf16 %v1508_v29, %v1504_v28  ;;  %v4320_v23 = vpack.c.bf16 %v1549_v18, %v1545_v17  ;;  %v1544_v24 = vld [vmem:[%s5698_s22 + $0x2800] sm:$0xff]  ;;  %v1553_v29 = vld [vmem:[%s5698_s22 + $0x2848] sm:$0xff] }
 0x2ce   : > { %5049 = vmatprep.subr.bf16.mxu1 %v5048_v35  ;;  %v1515_v35 = vld [vmem:[%s5698_s22 + $0x2718] sm:$0xff]  ;;  %v5070_v38 = vpack.c.bf16 %v1510_v32, %v1506_v30  ;;  %v1550_v28 = vld [vmem:[%s5698_s22 + $0x2830] sm:$0xff]  ;;  %v1557_v30 = vld [vmem:[%s5698_s22 + $0x2868] sm:$0xff] }
 0x2cf   : > { %v1559_v32 = vld [vmem:[%s5698_s22 + $0x2878] sm:$0xff] }
 0x2d0   : > { %4283 = vmatpush1.bf16.msra.mxu0 %v4282_v41  ;;  %v1516_v41 = vld [vmem:[%s5698_s22 + $0x2720] sm:$0xff]  ;;  %v1579_v5 = vld [vmem:[%s5698_s22 + $0x2918] sm:$0xff] }
 0x2d1   : > { %5051 = vmatpush1.bf16.msra.mxu1 %v5050_v42  ;;  %4285 = vmatprep.subr.bf16.mxu0 %v4284_v43  ;;  %v1514_v42 = vld [vmem:[%s5698_s22 + $0x2710] sm:$0xff]  ;;  %v5072_v43 = vpack.c.bf16 %v1519_v36, %v1515_v35  ;;  %v4306_v49 = vpack.c.bf16 %v1516_v41, %v1512_v40  ;;  %v4324_v36 = vpack.c.bf16 %v1557_v30, %v1553_v29  ;;  %v1583_v6 = vld [vmem:[%s5698_s22 + $0x2938] sm:$0xff] }
 0x2d2   : > { %5053 = vmatprep.subr.bf16.mxu1 %v5052_v47  ;;  %v1523_v47 = vld [vmem:[%s5698_s22 + $0x2758] sm:$0xff]  ;;  %v5074_v50 = vpack.c.bf16 %v1518_v44, %v1514_v42  ;;  %v1558_v41 = vld [vmem:[%s5698_s22 + $0x2870] sm:$0xff]  ;;  %v1561_v42 = vld [vmem:[%s5698_s22 + $0x2888] sm:$0xff] }
 0x2d3   : > { %v1563_v44 = vld [vmem:[%s5698_s22 + $0x2898] sm:$0xff] }
 0x2d4   : > { %4287 = vmatpush1.bf16.msra.mxu0 %v4286_v53  ;;  %v1524_v53 = vld [vmem:[%s5698_s22 + $0x2760] sm:$0xff]  ;;  %v1587_v17 = vld [vmem:[%s5698_s22 + $0x2958] sm:$0xff] }
 0x2d5   : > { %5055 = vmatpush1.bf16.msra.mxu1 %v5054_v54  ;;  %4289 = vmatprep.subr.bf16.mxu0 %v4288_v55  ;;  %v1522_v54 = vld [vmem:[%s5698_s22 + $0x2750] sm:$0xff]  ;;  %v5076_v55 = vpack.c.bf16 %v1527_v48, %v1523_v47  ;;  %v4310_v61 = vpack.c.bf16 %v1524_v53, %v1520_v52  ;;  %v5096_v53 = vpack.c.bf16 %v1567_v45, %v1563_v44  ;;  %v1591_v18 = vld [vmem:[%s5698_s22 + $0x2978] sm:$0xff] }
 0x2d6   : > { %5057 = vmatprep.subr.bf16.mxu1 %v5056_v59  ;;  %v1531_v59 = vld [vmem:[%s5698_s22 + $0x2798] sm:$0xff]  ;;  %v5078_v62 = vpack.c.bf16 %v1526_v56, %v1522_v54  ;;  %v1562_v52 = vld [vmem:[%s5698_s22 + $0x2890] sm:$0xff]  ;;  %v1573_v56 = vld [vmem:[%s5698_s22 + $0x28e8] sm:$0xff] }
 0x2d7   : > { %v1566_v54 = vld [vmem:[%s5698_s22 + $0x28b0] sm:$0xff]  ;;  %v1595_v29 = vld [vmem:[%s5698_s22 + $0x2998] sm:$0xff] }
 0x2d8   : > { %4291 = vmatpush1.bf16.msra.mxu0 %v4290_v1  ;;  %v1532_v1 = vld [vmem:[%s5698_s22 + $0x27a0] sm:$0xff]  ;;  %v1599_v30 = vld [vmem:[%s5698_s22 + $0x29b8] sm:$0xff] }
 0x2d9   : > { %5059 = vmatpush1.bf16.msra.mxu1 %v5058_v2  ;;  %4293 = vmatprep.subr.bf16.mxu0 %v4292_v3  ;;  %v1530_v2 = vld [vmem:[%s5698_s22 + $0x2790] sm:$0xff]  ;;  %v5080_v3 = vpack.c.bf16 %v1535_v60, %v1531_v59  ;;  %v4314_v9 = vpack.c.bf16 %v1532_v1, %v1528_v0  ;;  %v5098_v60 = vpack.c.bf16 %v1566_v54, %v1562_v52  ;;  %v1613_v52 = vld [vmem:[%s5698_s22 + $0x2a28] sm:$0xff]  ;;  %v1615_v54 = vld [vmem:[%s5698_s22 + $0x2a38] sm:$0xff] }
 0x2da   : > { %5061 = vmatprep.subr.bf16.mxu1 %v5060_v7  ;;  %v1539_v7 = vld [vmem:[%s5698_s22 + $0x27d8] sm:$0xff]  ;;  %v5082_v10 = vpack.c.bf16 %v1534_v4, %v1530_v2  ;;  %v1570_v0 = vld [vmem:[%s5698_s22 + $0x28d0] sm:$0xff]  ;;  %v5100_v1 = vpack.c.bf16 %v1575_v58, %v1571_v57  ;;  %v1581_v4 = vld [vmem:[%s5698_s22 + $0x2928] sm:$0xff] }
 0x2db   : > { %v1574_v2 = vld [vmem:[%s5698_s22 + $0x28f0] sm:$0xff]  ;;  %v1608_v58 = vld [vmem:[%s5698_s22 + $0x2a00] sm:$0xff] }
 0x2dc   : > { %4295 = vmatpush1.bf16.msra.mxu0 %v4294_v13  ;;  %v1540_v13 = vld [vmem:[%s5698_s22 + $0x27e0] sm:$0xff] }
 0x2dd   : > { %5063 = vmatpush1.bf16.msra.mxu1 %v5062_v14  ;;  %4297 = vmatprep.subr.bf16.mxu0 %v4296_v15  ;;  %v1538_v14 = vld [vmem:[%s5698_s22 + $0x27d0] sm:$0xff]  ;;  %v5084_v15 = vpack.c.bf16 %v1543_v8, %v1539_v7  ;;  %v4318_v21 = vpack.c.bf16 %v1540_v13, %v1536_v12  ;;  %v5102_v8 = vpack.c.bf16 %v1574_v2, %v1570_v0  ;;  %v1621_v0 = vld [vmem:[%s5698_s22 + $0x2a68] sm:$0xff]  ;;  %v1623_v2 = vld [vmem:[%s5698_s22 + $0x2a78] sm:$0xff] }
 0x2de   : > { %5065 = vmatprep.subr.bf16.mxu1 %v5064_v19  ;;  %v1547_v19 = vld [vmem:[%s5698_s22 + $0x2818] sm:$0xff]  ;;  %v5086_v22 = vpack.c.bf16 %v1542_v16, %v1538_v14  ;;  %v1578_v12 = vld [vmem:[%s5698_s22 + $0x2910] sm:$0xff]  ;;  %v5104_v13 = vpack.c.bf16 %v1583_v6, %v1579_v5  ;;  %v1589_v16 = vld [vmem:[%s5698_s22 + $0x2968] sm:$0xff] }
 0x2df   : > { %v1582_v14 = vld [vmem:[%s5698_s22 + $0x2930] sm:$0xff]  ;;  %v1616_v6 = vld [vmem:[%s5698_s22 + $0x2a40] sm:$0xff] }
 0x2e0   : > { %4299 = vmatpush1.bf16.msra.mxu0 %v4298_v25  ;;  %v1548_v25 = vld [vmem:[%s5698_s22 + $0x2820] sm:$0xff] }
 0x2e1   : > { %5067 = vmatpush1.bf16.msra.mxu1 %v5066_v26  ;;  %4301 = vmatprep.subr.bf16.mxu0 %v4300_v27  ;;  %v1546_v26 = vld [vmem:[%s5698_s22 + $0x2810] sm:$0xff]  ;;  %v5088_v27 = vpack.c.bf16 %v1551_v20, %v1547_v19  ;;  %v4322_v34 = vpack.c.bf16 %v1548_v25, %v1544_v24  ;;  %v5106_v20 = vpack.c.bf16 %v1582_v14, %v1578_v12  ;;  %v1629_v12 = vld [vmem:[%s5698_s22 + $0x2aa8] sm:$0xff]  ;;  %v1631_v14 = vld [vmem:[%s5698_s22 + $0x2ab8] sm:$0xff] }
 0x2e2   : > { %5069 = vmatprep.subr.bf16.mxu1 %v5068_v31  ;;  %v1555_v31 = vld [vmem:[%s5698_s22 + $0x2858] sm:$0xff]  ;;  %v5090_v35 = vpack.c.bf16 %v1550_v28, %v1546_v26  ;;  %v1586_v24 = vld [vmem:[%s5698_s22 + $0x2950] sm:$0xff]  ;;  %v5108_v25 = vpack.c.bf16 %v1591_v18, %v1587_v17  ;;  %v1597_v28 = vld [vmem:[%s5698_s22 + $0x29a8] sm:$0xff] }
 0x2e3   : > { %v5092_v40 = vpack.c.bf16 %v1559_v32, %v1555_v31  ;;  %v1590_v26 = vld [vmem:[%s5698_s22 + $0x2970] sm:$0xff]  ;;  %v1624_v18 = vld [vmem:[%s5698_s22 + $0x2a80] sm:$0xff] }
 0x2e4   : > { %4303 = vmatpush1.bf16.msra.mxu0 %v4302_v37  ;;  %v1552_v37 = vld [vmem:[%s5698_s22 + $0x2840] sm:$0xff]  ;;  %v5110_v32 = vpack.c.bf16 %v1590_v26, %v1586_v24  ;;  %v1637_v24 = vld [vmem:[%s5698_s22 + $0x2ae8] sm:$0xff]  ;;  %v1639_v26 = vld [vmem:[%s5698_s22 + $0x2af8] sm:$0xff] }
 0x2e5   : > { %5071 = vmatpush1.bf16.msra.mxu1 %v5070_v38  ;;  %4305 = vmatprep.subr.bf16.mxu0 %v4304_v39  ;;  %v1556_v38 = vld [vmem:[%s5698_s22 + $0x2860] sm:$0xff]  ;;  %v1554_v39 = vld [vmem:[%s5698_s22 + $0x2850] sm:$0xff] }
 0x2e6   : > { %5073 = vmatprep.subr.bf16.mxu1 %v5072_v43  ;;  %v1565_v43 = vld [vmem:[%s5698_s22 + $0x28a8] sm:$0xff]  ;;  %v4326_v47 = vpack.c.bf16 %v1556_v38, %v1552_v37  ;;  %v5094_v48 = vpack.c.bf16 %v1558_v41, %v1554_v39  ;;  %v5112_v37 = vpack.c.bf16 %v1599_v30, %v1595_v29  ;;  %v1598_v38 = vld [vmem:[%s5698_s22 + $0x29b0] sm:$0xff]  ;;  %v1603_v41 = vld [vmem:[%s5698_s22 + $0x29d8] sm:$0xff] }
 0x2e7   : > { %v1601_v39 = vld [vmem:[%s5698_s22 + $0x29c8] sm:$0xff]  ;;  %v1632_v30 = vld [vmem:[%s5698_s22 + $0x2ac0] sm:$0xff] }
 0x2e8   : > { %4307 = vmatpush1.bf16.msra.mxu0 %v4306_v49  ;;  %v4328_v49 = vpack.c.bf16 %v1565_v43, %v1561_v42  ;;  %v1607_v42 = vld [vmem:[%s5698_s22 + $0x29f8] sm:$0xff] }
 0x2e9   : > { %5075 = vmatpush1.bf16.msra.mxu1 %v5074_v50  ;;  %4309 = vmatprep.subr.bf16.mxu0 %v4308_v51  ;;  %v1560_v50 = vld [vmem:[%s5698_s22 + $0x2880] sm:$0xff] }
 0x2ea   : > { %5077 = vmatprep.subr.bf16.mxu1 %v5076_v55  ;;  %v1564_v51 = vld [vmem:[%s5698_s22 + $0x28a0] sm:$0xff]  ;;  %v1569_v55 = vld [vmem:[%s5698_s22 + $0x28c8] sm:$0xff] }
 0x2eb   : > { %v4330_v59 = vpack.c.bf16 %v1564_v51, %v1560_v50  ;;  %v1606_v50 = vld [vmem:[%s5698_s22 + $0x29f0] sm:$0xff]  ;;  %v1609_v51 = vld [vmem:[%s5698_s22 + $0x2a08] sm:$0xff] }
 0x2ec   : > { %4311 = vmatpush1.bf16.msra.mxu0 %v4310_v61  ;;  %v4332_v61 = vpack.c.bf16 %v1573_v56, %v1569_v55  ;;  %v4352_v57 = vpack.c.bf16 %v1613_v52, %v1609_v51 }
 0x2ed   : > { %5079 = vmatpush1.bf16.msra.mxu1 %v5078_v62  ;;  %4313 = vmatprep.subr.bf16.mxu0 %v4312_v63  ;;  %v1568_v62 = vld [vmem:[%s5698_s22 + $0x28c0] sm:$0xff] }
 0x2ee   : > { %5081 = vmatprep.subr.bf16.mxu1 %v5080_v3  ;;  %v1572_v63 = vld [vmem:[%s5698_s22 + $0x28e0] sm:$0xff]  ;;  %v1577_v3 = vld [vmem:[%s5698_s22 + $0x2908] sm:$0xff] }
 0x2ef   : > { %v4334_v7 = vpack.c.bf16 %v1572_v63, %v1568_v62  ;;  %v1614_v62 = vld [vmem:[%s5698_s22 + $0x2a30] sm:$0xff]  ;;  %v1617_v63 = vld [vmem:[%s5698_s22 + $0x2a48] sm:$0xff] }
 0x2f0   : > { %4315 = vmatpush1.bf16.msra.mxu0 %v4314_v9  ;;  %v4336_v9 = vpack.c.bf16 %v1581_v4, %v1577_v3  ;;  %v4356_v5 = vpack.c.bf16 %v1621_v0, %v1617_v63 }
 0x2f1   : > { %5083 = vmatpush1.bf16.msra.mxu1 %v5082_v10  ;;  %4317 = vmatprep.subr.bf16.mxu0 %v4316_v11  ;;  %v1576_v10 = vld [vmem:[%s5698_s22 + $0x2900] sm:$0xff] }
 0x2f2   : > { %5085 = vmatprep.subr.bf16.mxu1 %v5084_v15  ;;  %v1580_v11 = vld [vmem:[%s5698_s22 + $0x2920] sm:$0xff]  ;;  %v1585_v15 = vld [vmem:[%s5698_s22 + $0x2948] sm:$0xff] }
 0x2f3   : > { %v4338_v19 = vpack.c.bf16 %v1580_v11, %v1576_v10  ;;  %v1622_v10 = vld [vmem:[%s5698_s22 + $0x2a70] sm:$0xff]  ;;  %v1625_v11 = vld [vmem:[%s5698_s22 + $0x2a88] sm:$0xff] }
 0x2f4   : > { %4319 = vmatpush1.bf16.msra.mxu0 %v4318_v21  ;;  %v4340_v21 = vpack.c.bf16 %v1589_v16, %v1585_v15  ;;  %v4360_v17 = vpack.c.bf16 %v1629_v12, %v1625_v11 }
 0x2f5   : > { %5087 = vmatpush1.bf16.msra.mxu1 %v5086_v22  ;;  %4321 = vmatprep.subr.bf16.mxu0 %v4320_v23  ;;  %v1584_v22 = vld [vmem:[%s5698_s22 + $0x2940] sm:$0xff] }
 0x2f6   : > { %5089 = vmatprep.subr.bf16.mxu1 %v5088_v27  ;;  %v1588_v23 = vld [vmem:[%s5698_s22 + $0x2960] sm:$0xff]  ;;  %v1593_v27 = vld [vmem:[%s5698_s22 + $0x2988] sm:$0xff] }
 0x2f7   : > { %2526 = vmatmul.mubr.f32.vlgmr.msra.gmra.mrb[0].mxu0 %v258_v33  ;;  %v4342_v31 = vpack.c.bf16 %v1588_v23, %v1584_v22  ;;  %v1630_v22 = vld [vmem:[%s5698_s22 + $0x2ab0] sm:$0xff]  ;;  %v1633_v23 = vld [vmem:[%s5698_s22 + $0x2ac8] sm:$0xff] }
 0x2f8   : > { %4323 = vmatpush1.bf16.msra.mxu0 %v4322_v34  ;;  %3378 = vmatmul.mubr.f32.vlgmr.msra.gmra.mrb[0].mxu1 %v258_v33  ;;  %v4344_v33 = vpack.c.bf16 %v1597_v28, %v1593_v27  ;;  %v1592_v34 = vld [vmem:[%s5698_s22 + $0x2980] sm:$0xff]  ;;  %v4364_v29 = vpack.c.bf16 %v1637_v24, %v1633_v23 }
 0x2f9   : > { %5091 = vmatpush1.bf16.msra.mxu1 %v5090_v35  ;;  %4325 = vmatprep.subr.bf16.mxu0 %v4324_v36  ;;  %v1596_v35 = vld [vmem:[%s5698_s22 + $0x29a0] sm:$0xff]  ;;  %v1594_v36 = vld [vmem:[%s5698_s22 + $0x2990] sm:$0xff] }
 0x2fa   : > { %5093 = vmatprep.subr.bf16.mxu1 %v5092_v40  ;;  %2596 = vmatprep.mubr.f32.mxu0 %v261_v46  ;;  %v1605_v40 = vld [vmem:[%s5698_s22 + $0x29e8] sm:$0xff]  ;;  %v4346_v43 = vpack.c.bf16 %v1596_v35, %v1592_v34  ;;  %v5114_v44 = vpack.c.bf16 %v1598_v38, %v1594_v36  ;;  %v1638_v34 = vld [vmem:[%s5698_s22 + $0x2af0] sm:$0xff]  ;;  %v1647_v38 = vld [vmem:[%s5698_s22 + $0x2b38] sm:$0xff] }
 0x2fb   : > { %3448 = vmatprep.mubr.f32.mxu1 %v261_v46  ;;  %v4348_v45 = vpack.c.bf16 %v1605_v40, %v1601_v39  ;;  %v1600_v46 = vld [vmem:[%s5698_s22 + $0x29c0] sm:$0xff]  ;;  %v1641_v35 = vld [vmem:[%s5698_s22 + $0x2b08] sm:$0xff] }
 0x2fc   : > { %4327 = vmatpush1.bf16.msra.mxu0 %v4326_v47  ;;  %v1604_v47 = vld [vmem:[%s5698_s22 + $0x29e0] sm:$0xff]  ;;  %v1645_v36 = vld [vmem:[%s5698_s22 + $0x2b28] sm:$0xff] }
 0x2fd   : > { %5095 = vmatpush1.bf16.msra.mxu1 %v5094_v48  ;;  %4329 = vmatprep.subr.bf16.mxu0 %v4328_v49  ;;  %v1602_v48 = vld [vmem:[%s5698_s22 + $0x29d0] sm:$0xff]  ;;  %v5116_v49 = vpack.c.bf16 %v1607_v42, %v1603_v41  ;;  %v4350_v55 = vpack.c.bf16 %v1604_v47, %v1600_v46  ;;  %v4368_v41 = vpack.c.bf16 %v1645_v36, %v1641_v35  ;;  %v1640_v42 = vld [vmem:[%s5698_s22 + $0x2b00] sm:$0xff]  ;;  %v1649_v47 = vld [vmem:[%s5698_s22 + $0x2b48] sm:$0xff] }
 0x2fe   : > { %5097 = vmatprep.subr.bf16.mxu1 %v5096_v53  ;;  %v1611_v53 = vld [vmem:[%s5698_s22 + $0x2a18] sm:$0xff]  ;;  %v5118_v56 = vpack.c.bf16 %v1606_v50, %v1602_v48  ;;  %v1646_v46 = vld [vmem:[%s5698_s22 + $0x2b30] sm:$0xff]  ;;  %v1653_v48 = vld [vmem:[%s5698_s22 + $0x2b68] sm:$0xff] }
 0x2ff   : > { %v1655_v50 = vld [vmem:[%s5698_s22 + $0x2b78] sm:$0xff]  ;;  %v260_v35 = vld [vmem:[#allocation2 + $0xa0] sm:$0xff] }
 0x300   : > { %4331 = vmatpush1.bf16.msra.mxu0 %v4330_v59  ;;  %v1612_v59 = vld [vmem:[%s5698_s22 + $0x2a20] sm:$0xff] }
 0x301   : > { %5099 = vmatpush1.bf16.msra.mxu1 %v5098_v60  ;;  %4333 = vmatprep.subr.bf16.mxu0 %v4332_v61  ;;  %v1610_v60 = vld [vmem:[%s5698_s22 + $0x2a10] sm:$0xff]  ;;  %v5120_v61 = vpack.c.bf16 %v1615_v54, %v1611_v53  ;;  %v4354_v3 = vpack.c.bf16 %v1612_v59, %v1608_v58  ;;  %v4372_v53 = vpack.c.bf16 %v1653_v48, %v1649_v47  ;;  %v1648_v54 = vld [vmem:[%s5698_s22 + $0x2b40] sm:$0xff]  ;;  %v1657_v59 = vld [vmem:[%s5698_s22 + $0x2b88] sm:$0xff] }
 0x302   : > { %5101 = vmatprep.subr.bf16.mxu1 %v5100_v1  ;;  %v1619_v1 = vld [vmem:[%s5698_s22 + $0x2a58] sm:$0xff]  ;;  %v5122_v4 = vpack.c.bf16 %v1614_v62, %v1610_v60  ;;  %v1654_v58 = vld [vmem:[%s5698_s22 + $0x2b70] sm:$0xff]  ;;  %v1661_v60 = vld [vmem:[%s5698_s22 + $0x2ba8] sm:$0xff] }
 0x303   : > { %v1663_v62 = vld [vmem:[%s5698_s22 + $0x2bb8] sm:$0xff] }
 0x304   : > { %4335 = vmatpush1.bf16.msra.mxu0 %v4334_v7  ;;  %v1620_v7 = vld [vmem:[%s5698_s22 + $0x2a60] sm:$0xff]  ;;  %v1695_v47 = vld [vmem:[%s5698_s22 + $0x2cb8] sm:$0xff] }
 0x305   : > { %5103 = vmatpush1.bf16.msra.mxu1 %v5102_v8  ;;  %4337 = vmatprep.subr.bf16.mxu0 %v4336_v9  ;;  %v1618_v8 = vld [vmem:[%s5698_s22 + $0x2a50] sm:$0xff]  ;;  %v5124_v9 = vpack.c.bf16 %v1623_v2, %v1619_v1  ;;  %v4358_v15 = vpack.c.bf16 %v1620_v7, %v1616_v6  ;;  %v4376_v1 = vpack.c.bf16 %v1661_v60, %v1657_v59  ;;  %v1656_v2 = vld [vmem:[%s5698_s22 + $0x2b80] sm:$0xff]  ;;  %v1665_v7 = vld [vmem:[%s5698_s22 + $0x2bc8] sm:$0xff] }
 0x306   : > { %5105 = vmatprep.subr.bf16.mxu1 %v5104_v13  ;;  %v1627_v13 = vld [vmem:[%s5698_s22 + $0x2a98] sm:$0xff]  ;;  %v5126_v16 = vpack.c.bf16 %v1622_v10, %v1618_v8  ;;  %v1662_v6 = vld [vmem:[%s5698_s22 + $0x2bb0] sm:$0xff]  ;;  %v1669_v8 = vld [vmem:[%s5698_s22 + $0x2be8] sm:$0xff] }
 0x307   : > { %v1671_v10 = vld [vmem:[%s5698_s22 + $0x2bf8] sm:$0xff] }
 0x308   : > { %4339 = vmatpush1.bf16.msra.mxu0 %v4338_v19  ;;  %v1628_v19 = vld [vmem:[%s5698_s22 + $0x2aa0] sm:$0xff]  ;;  %v263_v48 = vld [vmem:[#allocation2 + $0xb8] sm:$0xff] }
 0x309   : > { %5107 = vmatpush1.bf16.msra.mxu1 %v5106_v20  ;;  %4341 = vmatprep.subr.bf16.mxu0 %v4340_v21  ;;  %v1626_v20 = vld [vmem:[%s5698_s22 + $0x2a90] sm:$0xff]  ;;  %v5128_v21 = vpack.c.bf16 %v1631_v14, %v1627_v13  ;;  %v4362_v27 = vpack.c.bf16 %v1628_v19, %v1624_v18  ;;  %v4380_v13 = vpack.c.bf16 %v1669_v8, %v1665_v7  ;;  %v1664_v14 = vld [vmem:[%s5698_s22 + $0x2bc0] sm:$0xff]  ;;  %v1673_v19 = vld [vmem:[%s5698_s22 + $0x2c08] sm:$0xff] }
 0x30a   : > { %5109 = vmatprep.subr.bf16.mxu1 %v5108_v25  ;;  %v1635_v25 = vld [vmem:[%s5698_s22 + $0x2ad8] sm:$0xff]  ;;  %v5130_v28 = vpack.c.bf16 %v1630_v22, %v1626_v20  ;;  %v1670_v18 = vld [vmem:[%s5698_s22 + $0x2bf0] sm:$0xff]  ;;  %v1677_v20 = vld [vmem:[%s5698_s22 + $0x2c28] sm:$0xff] }
 0x30b   : > { %v1679_v22 = vld [vmem:[%s5698_s22 + $0x2c38] sm:$0xff] }
 0x30c   : > { %4343 = vmatpush1.bf16.msra.mxu0 %v4342_v31  ;;  %v1636_v31 = vld [vmem:[%s5698_s22 + $0x2ae0] sm:$0xff]  ;;  %v1699_v59 = vld [vmem:[%s5698_s22 + $0x2cd8] sm:$0xff] }
 0x30d   : > { %5111 = vmatpush1.bf16.msra.mxu1 %v5110_v32  ;;  %4345 = vmatprep.subr.bf16.mxu0 %v4344_v33  ;;  %v1634_v32 = vld [vmem:[%s5698_s22 + $0x2ad0] sm:$0xff]  ;;  %v5132_v33 = vpack.c.bf16 %v1639_v26, %v1635_v25  ;;  %v4366_v39 = vpack.c.bf16 %v1636_v31, %v1632_v30  ;;  %v4384_v25 = vpack.c.bf16 %v1677_v20, %v1673_v19  ;;  %v1672_v26 = vld [vmem:[%s5698_s22 + $0x2c00] sm:$0xff]  ;;  %v1681_v31 = vld [vmem:[%s5698_s22 + $0x2c48] sm:$0xff] }
 0x30e   : > { %5113 = vmatprep.subr.bf16.mxu1 %v5112_v37  ;;  %v1643_v37 = vld [vmem:[%s5698_s22 + $0x2b18] sm:$0xff]  ;;  %v5134_v40 = vpack.c.bf16 %v1638_v34, %v1634_v32  ;;  %v1678_v30 = vld [vmem:[%s5698_s22 + $0x2c30] sm:$0xff]  ;;  %v1685_v32 = vld [vmem:[%s5698_s22 + $0x2c68] sm:$0xff] }
 0x30f   : > { %v1687_v34 = vld [vmem:[%s5698_s22 + $0x2c78] sm:$0xff] }
 0x310   : > { %4347 = vmatpush1.bf16.msra.mxu0 %v4346_v43  ;;  %v1644_v43 = vld [vmem:[%s5698_s22 + $0x2b20] sm:$0xff]  ;;  %v1703_v60 = vld [vmem:[%s5698_s22 + $0x2cf8] sm:$0xff] }
 0x311   : > { %5115 = vmatpush1.bf16.msra.mxu1 %v5114_v44  ;;  %4349 = vmatprep.subr.bf16.mxu0 %v4348_v45  ;;  %v1642_v44 = vld [vmem:[%s5698_s22 + $0x2b10] sm:$0xff]  ;;  %v5136_v45 = vpack.c.bf16 %v1647_v38, %v1643_v37  ;;  %v4370_v51 = vpack.c.bf16 %v1644_v43, %v1640_v42  ;;  %v4388_v38 = vpack.c.bf16 %v1685_v32, %v1681_v31  ;;  %v1707_v7 = vld [vmem:[%s5698_s22 + $0x2d18] sm:$0xff] }
 0x312   : > { %5117 = vmatprep.subr.bf16.mxu1 %v5116_v49  ;;  %v1651_v49 = vld [vmem:[%s5698_s22 + $0x2b58] sm:$0xff]  ;;  %v5138_v52 = vpack.c.bf16 %v1646_v46, %v1642_v44  ;;  %v1686_v43 = vld [vmem:[%s5698_s22 + $0x2c70] sm:$0xff]  ;;  %v1689_v44 = vld [vmem:[%s5698_s22 + $0x2c88] sm:$0xff] }
 0x313   : > { %v1691_v46 = vld [vmem:[%s5698_s22 + $0x2c98] sm:$0xff] }
 0x314   : > { %4351 = vmatpush1.bf16.msra.mxu0 %v4350_v55  ;;  %v1652_v55 = vld [vmem:[%s5698_s22 + $0x2b60] sm:$0xff]  ;;  %v1711_v8 = vld [vmem:[%s5698_s22 + $0x2d38] sm:$0xff] }
 0x315   : > { %5119 = vmatpush1.bf16.msra.mxu1 %v5118_v56  ;;  %4353 = vmatprep.subr.bf16.mxu0 %v4352_v57  ;;  %v1650_v56 = vld [vmem:[%s5698_s22 + $0x2b50] sm:$0xff]  ;;  %v5140_v57 = vpack.c.bf16 %v1655_v50, %v1651_v49  ;;  %v4374_v63 = vpack.c.bf16 %v1652_v55, %v1648_v54  ;;  %v5160_v55 = vpack.c.bf16 %v1695_v47, %v1691_v46  ;;  %v1715_v19 = vld [vmem:[%s5698_s22 + $0x2d58] sm:$0xff] }
 0x316   : > { %5121 = vmatprep.subr.bf16.mxu1 %v5120_v61  ;;  %v1659_v61 = vld [vmem:[%s5698_s22 + $0x2b98] sm:$0xff]  ;;  %v5142_v0 = vpack.c.bf16 %v1654_v58, %v1650_v56  ;;  %v1690_v54 = vld [vmem:[%s5698_s22 + $0x2c90] sm:$0xff]  ;;  %v1701_v58 = vld [vmem:[%s5698_s22 + $0x2ce8] sm:$0xff] }
 0x317   : > { %v1694_v56 = vld [vmem:[%s5698_s22 + $0x2cb0] sm:$0xff]  ;;  %v1719_v20 = vld [vmem:[%s5698_s22 + $0x2d78] sm:$0xff] }
 0x318   : > { %4355 = vmatpush1.bf16.msra.mxu0 %v4354_v3  ;;  %v1660_v3 = vld [vmem:[%s5698_s22 + $0x2ba0] sm:$0xff]  ;;  %v1723_v31 = vld [vmem:[%s5698_s22 + $0x2d98] sm:$0xff] }
 0x319   : > { %5123 = vmatpush1.bf16.msra.mxu1 %v5122_v4  ;;  %4357 = vmatprep.subr.bf16.mxu0 %v4356_v5  ;;  %v1658_v4 = vld [vmem:[%s5698_s22 + $0x2b90] sm:$0xff]  ;;  %v5144_v5 = vpack.c.bf16 %v1663_v62, %v1659_v61  ;;  %v4378_v11 = vpack.c.bf16 %v1660_v3, %v1656_v2  ;;  %v5162_v62 = vpack.c.bf16 %v1694_v56, %v1690_v54  ;;  %v1727_v32 = vld [vmem:[%s5698_s22 + $0x2db8] sm:$0xff]  ;;  %v1741_v54 = vld [vmem:[%s5698_s22 + $0x2e28] sm:$0xff] }
 0x31a   : > { %5125 = vmatprep.subr.bf16.mxu1 %v5124_v9  ;;  %v1667_v9 = vld [vmem:[%s5698_s22 + $0x2bd8] sm:$0xff]  ;;  %v5146_v12 = vpack.c.bf16 %v1662_v6, %v1658_v4  ;;  %v1698_v2 = vld [vmem:[%s5698_s22 + $0x2cd0] sm:$0xff]  ;;  %v5164_v3 = vpack.c.bf16 %v1703_v60, %v1699_v59  ;;  %v1709_v6 = vld [vmem:[%s5698_s22 + $0x2d28] sm:$0xff] }
 0x31b   : > { %v1702_v4 = vld [vmem:[%s5698_s22 + $0x2cf0] sm:$0xff]  ;;  %v1743_v56 = vld [vmem:[%s5698_s22 + $0x2e38] sm:$0xff]  ;;  %v1736_v60 = vld [vmem:[%s5698_s22 + $0x2e00] sm:$0xff] }
 0x31c   : > { %4359 = vmatpush1.bf16.msra.mxu0 %v4358_v15  ;;  %v1668_v15 = vld [vmem:[%s5698_s22 + $0x2be0] sm:$0xff] }
 0x31d   : > { %5127 = vmatpush1.bf16.msra.mxu1 %v5126_v16  ;;  %4361 = vmatprep.subr.bf16.mxu0 %v4360_v17  ;;  %v1666_v16 = vld [vmem:[%s5698_s22 + $0x2bd0] sm:$0xff]  ;;  %v5148_v17 = vpack.c.bf16 %v1671_v10, %v1667_v9  ;;  %v4382_v23 = vpack.c.bf16 %v1668_v15, %v1664_v14  ;;  %v5166_v10 = vpack.c.bf16 %v1702_v4, %v1698_v2  ;;  %v1749_v2 = vld [vmem:[%s5698_s22 + $0x2e68] sm:$0xff]  ;;  %v1751_v4 = vld [vmem:[%s5698_s22 + $0x2e78] sm:$0xff] }
 0x31e   : > { %5129 = vmatprep.subr.bf16.mxu1 %v5128_v21  ;;  %v1675_v21 = vld [vmem:[%s5698_s22 + $0x2c18] sm:$0xff]  ;;  %v5150_v24 = vpack.c.bf16 %v1670_v18, %v1666_v16  ;;  %v1706_v14 = vld [vmem:[%s5698_s22 + $0x2d10] sm:$0xff]  ;;  %v5168_v15 = vpack.c.bf16 %v1711_v8, %v1707_v7  ;;  %v1717_v18 = vld [vmem:[%s5698_s22 + $0x2d68] sm:$0xff] }
 0x31f   : > { %v1710_v16 = vld [vmem:[%s5698_s22 + $0x2d30] sm:$0xff]  ;;  %v1744_v8 = vld [vmem:[%s5698_s22 + $0x2e40] sm:$0xff] }
 0x320   : > { %4363 = vmatpush1.bf16.msra.mxu0 %v4362_v27  ;;  %v1676_v27 = vld [vmem:[%s5698_s22 + $0x2c20] sm:$0xff] }
 0x321   : > { %5131 = vmatpush1.bf16.msra.mxu1 %v5130_v28  ;;  %4365 = vmatprep.subr.bf16.mxu0 %v4364_v29  ;;  %v1674_v28 = vld [vmem:[%s5698_s22 + $0x2c10] sm:$0xff]  ;;  %v5152_v29 = vpack.c.bf16 %v1679_v22, %v1675_v21  ;;  %v4386_v36 = vpack.c.bf16 %v1676_v27, %v1672_v26  ;;  %v5170_v22 = vpack.c.bf16 %v1710_v16, %v1706_v14  ;;  %v1757_v14 = vld [vmem:[%s5698_s22 + $0x2ea8] sm:$0xff]  ;;  %v1759_v16 = vld [vmem:[%s5698_s22 + $0x2eb8] sm:$0xff] }
 0x322   : > { %5133 = vmatprep.subr.bf16.mxu1 %v5132_v33  ;;  %v1683_v33 = vld [vmem:[%s5698_s22 + $0x2c58] sm:$0xff]  ;;  %v5154_v37 = vpack.c.bf16 %v1678_v30, %v1674_v28  ;;  %v1714_v26 = vld [vmem:[%s5698_s22 + $0x2d50] sm:$0xff]  ;;  %v5172_v27 = vpack.c.bf16 %v1719_v20, %v1715_v19  ;;  %v1725_v30 = vld [vmem:[%s5698_s22 + $0x2da8] sm:$0xff] }
 0x323   : > { %v5156_v42 = vpack.c.bf16 %v1687_v34, %v1683_v33  ;;  %v1718_v28 = vld [vmem:[%s5698_s22 + $0x2d70] sm:$0xff]  ;;  %v1752_v20 = vld [vmem:[%s5698_s22 + $0x2e80] sm:$0xff] }
 0x324   : > { %4367 = vmatpush1.bf16.msra.mxu0 %v4366_v39  ;;  %v1680_v39 = vld [vmem:[%s5698_s22 + $0x2c40] sm:$0xff]  ;;  %v5174_v34 = vpack.c.bf16 %v1718_v28, %v1714_v26  ;;  %v1765_v26 = vld [vmem:[%s5698_s22 + $0x2ee8] sm:$0xff]  ;;  %v1767_v28 = vld [vmem:[%s5698_s22 + $0x2ef8] sm:$0xff] }
 0x325   : > { %5135 = vmatpush1.bf16.msra.mxu1 %v5134_v40  ;;  %4369 = vmatprep.subr.bf16.mxu0 %v4368_v41  ;;  %v1684_v40 = vld [vmem:[%s5698_s22 + $0x2c60] sm:$0xff]  ;;  %v1682_v41 = vld [vmem:[%s5698_s22 + $0x2c50] sm:$0xff] }
 0x326   : > { %5137 = vmatprep.subr.bf16.mxu1 %v5136_v45  ;;  %v1693_v45 = vld [vmem:[%s5698_s22 + $0x2ca8] sm:$0xff]  ;;  %v4390_v49 = vpack.c.bf16 %v1684_v40, %v1680_v39  ;;  %v5158_v50 = vpack.c.bf16 %v1686_v43, %v1682_v41  ;;  %v5176_v39 = vpack.c.bf16 %v1727_v32, %v1723_v31  ;;  %v1726_v40 = vld [vmem:[%s5698_s22 + $0x2db0] sm:$0xff]  ;;  %v1731_v43 = vld [vmem:[%s5698_s22 + $0x2dd8] sm:$0xff] }
 0x327   : > { %v1729_v41 = vld [vmem:[%s5698_s22 + $0x2dc8] sm:$0xff]  ;;  %v1760_v32 = vld [vmem:[%s5698_s22 + $0x2ec0] sm:$0xff] }
 0x328   : > { %4371 = vmatpush1.bf16.msra.mxu0 %v4370_v51  ;;  %v4392_v51 = vpack.c.bf16 %v1693_v45, %v1689_v44  ;;  %v1735_v44 = vld [vmem:[%s5698_s22 + $0x2df8] sm:$0xff] }
 0x329   : > { %5139 = vmatpush1.bf16.msra.mxu1 %v5138_v52  ;;  %4373 = vmatprep.subr.bf16.mxu0 %v4372_v53  ;;  %v1688_v52 = vld [vmem:[%s5698_s22 + $0x2c80] sm:$0xff] }
 0x32a   : > { %5141 = vmatprep.subr.bf16.mxu1 %v5140_v57  ;;  %v1692_v53 = vld [vmem:[%s5698_s22 + $0x2ca0] sm:$0xff]  ;;  %v1697_v57 = vld [vmem:[%s5698_s22 + $0x2cc8] sm:$0xff] }
 0x32b   : > { %v4394_v61 = vpack.c.bf16 %v1692_v53, %v1688_v52  ;;  %v1734_v52 = vld [vmem:[%s5698_s22 + $0x2df0] sm:$0xff]  ;;  %v1737_v53 = vld [vmem:[%s5698_s22 + $0x2e08] sm:$0xff] }
 0x32c   : > { %4375 = vmatpush1.bf16.msra.mxu0 %v4374_v63  ;;  %v4396_v63 = vpack.c.bf16 %v1701_v58, %v1697_v57  ;;  %v4416_v59 = vpack.c.bf16 %v1741_v54, %v1737_v53 }
 0x32d   : > { %5143 = vmatpush1.bf16.msra.mxu1 %v5142_v0  ;;  %4377 = vmatprep.subr.bf16.mxu0 %v4376_v1  ;;  %v1696_v0 = vld [vmem:[%s5698_s22 + $0x2cc0] sm:$0xff] }
 0x32e   : > { %5145 = vmatprep.subr.bf16.mxu1 %v5144_v5  ;;  %v1700_v1 = vld [vmem:[%s5698_s22 + $0x2ce0] sm:$0xff]  ;;  %v1705_v5 = vld [vmem:[%s5698_s22 + $0x2d08] sm:$0xff] }
 0x32f   : > { %v4398_v9 = vpack.c.bf16 %v1700_v1, %v1696_v0  ;;  %v1742_v0 = vld [vmem:[%s5698_s22 + $0x2e30] sm:$0xff]  ;;  %v1745_v1 = vld [vmem:[%s5698_s22 + $0x2e48] sm:$0xff] }
 0x330   : > { %4379 = vmatpush1.bf16.msra.mxu0 %v4378_v11  ;;  %v4400_v11 = vpack.c.bf16 %v1709_v6, %v1705_v5  ;;  %v4420_v7 = vpack.c.bf16 %v1749_v2, %v1745_v1 }
 0x331   : > { %5147 = vmatpush1.bf16.msra.mxu1 %v5146_v12  ;;  %4381 = vmatprep.subr.bf16.mxu0 %v4380_v13  ;;  %v1704_v12 = vld [vmem:[%s5698_s22 + $0x2d00] sm:$0xff] }
 0x332   : > { %5149 = vmatprep.subr.bf16.mxu1 %v5148_v17  ;;  %v1708_v13 = vld [vmem:[%s5698_s22 + $0x2d20] sm:$0xff]  ;;  %v1713_v17 = vld [vmem:[%s5698_s22 + $0x2d48] sm:$0xff] }
 0x333   : > { %v4402_v21 = vpack.c.bf16 %v1708_v13, %v1704_v12  ;;  %v1750_v12 = vld [vmem:[%s5698_s22 + $0x2e70] sm:$0xff]  ;;  %v1753_v13 = vld [vmem:[%s5698_s22 + $0x2e88] sm:$0xff] }
 0x334   : > { %4383 = vmatpush1.bf16.msra.mxu0 %v4382_v23  ;;  %v4404_v23 = vpack.c.bf16 %v1717_v18, %v1713_v17  ;;  %v4424_v19 = vpack.c.bf16 %v1757_v14, %v1753_v13 }
 0x335   : > { %5151 = vmatpush1.bf16.msra.mxu1 %v5150_v24  ;;  %4385 = vmatprep.subr.bf16.mxu0 %v4384_v25  ;;  %v1712_v24 = vld [vmem:[%s5698_s22 + $0x2d40] sm:$0xff] }
 0x336   : > { %5153 = vmatprep.subr.bf16.mxu1 %v5152_v29  ;;  %v1716_v25 = vld [vmem:[%s5698_s22 + $0x2d60] sm:$0xff]  ;;  %v1721_v29 = vld [vmem:[%s5698_s22 + $0x2d88] sm:$0xff] }
 0x337   : > { %2597 = vmatmul.mubr.f32.vlgmr.msra.gmra.mrb[0].mxu0 %v260_v35  ;;  %v4406_v33 = vpack.c.bf16 %v1716_v25, %v1712_v24  ;;  %v1758_v24 = vld [vmem:[%s5698_s22 + $0x2eb0] sm:$0xff]  ;;  %v1761_v25 = vld [vmem:[%s5698_s22 + $0x2ec8] sm:$0xff] }
 0x338   : > { %4387 = vmatpush1.bf16.msra.mxu0 %v4386_v36  ;;  %3449 = vmatmul.mubr.f32.vlgmr.msra.gmra.mrb[0].mxu1 %v260_v35  ;;  %v4408_v35 = vpack.c.bf16 %v1725_v30, %v1721_v29  ;;  %v1720_v36 = vld [vmem:[%s5698_s22 + $0x2d80] sm:$0xff]  ;;  %v4428_v31 = vpack.c.bf16 %v1765_v26, %v1761_v25 }
 0x339   : > { %5155 = vmatpush1.bf16.msra.mxu1 %v5154_v37  ;;  %4389 = vmatprep.subr.bf16.mxu0 %v4388_v38  ;;  %v1724_v37 = vld [vmem:[%s5698_s22 + $0x2da0] sm:$0xff]  ;;  %v1722_v38 = vld [vmem:[%s5698_s22 + $0x2d90] sm:$0xff] }
 0x33a   : > { %5157 = vmatprep.subr.bf16.mxu1 %v5156_v42  ;;  %2667 = vmatprep.mubr.f32.mxu0 %v263_v48  ;;  %v1733_v42 = vld [vmem:[%s5698_s22 + $0x2de8] sm:$0xff]  ;;  %v4410_v45 = vpack.c.bf16 %v1724_v37, %v1720_v36  ;;  %v5178_v46 = vpack.c.bf16 %v1726_v40, %v1722_v38  ;;  %v1766_v36 = vld [vmem:[%s5698_s22 + $0x2ef0] sm:$0xff]  ;;  %v1775_v40 = vld [vmem:[%s5698_s22 + $0x2f38] sm:$0xff] }
 0x33b   : > { %3519 = vmatprep.mubr.f32.mxu1 %v263_v48  ;;  %v4412_v47 = vpack.c.bf16 %v1733_v42, %v1729_v41  ;;  %v1728_v48 = vld [vmem:[%s5698_s22 + $0x2dc0] sm:$0xff]  ;;  %v1769_v37 = vld [vmem:[%s5698_s22 + $0x2f08] sm:$0xff] }
 0x33c   : > { %4391 = vmatpush1.bf16.msra.mxu0 %v4390_v49  ;;  %v1732_v49 = vld [vmem:[%s5698_s22 + $0x2de0] sm:$0xff]  ;;  %v1773_v38 = vld [vmem:[%s5698_s22 + $0x2f28] sm:$0xff] }
 0x33d   : > { %5159 = vmatpush1.bf16.msra.mxu1 %v5158_v50  ;;  %4393 = vmatprep.subr.bf16.mxu0 %v4392_v51  ;;  %v1730_v50 = vld [vmem:[%s5698_s22 + $0x2dd0] sm:$0xff]  ;;  %v5180_v51 = vpack.c.bf16 %v1735_v44, %v1731_v43  ;;  %v4414_v57 = vpack.c.bf16 %v1732_v49, %v1728_v48  ;;  %v4432_v43 = vpack.c.bf16 %v1773_v38, %v1769_v37  ;;  %v1768_v44 = vld [vmem:[%s5698_s22 + $0x2f00] sm:$0xff]  ;;  %v1777_v49 = vld [vmem:[%s5698_s22 + $0x2f48] sm:$0xff] }
 0x33e   : > { %5161 = vmatprep.subr.bf16.mxu1 %v5160_v55  ;;  %v1739_v55 = vld [vmem:[%s5698_s22 + $0x2e18] sm:$0xff]  ;;  %v5182_v58 = vpack.c.bf16 %v1734_v52, %v1730_v50  ;;  %v1774_v48 = vld [vmem:[%s5698_s22 + $0x2f30] sm:$0xff]  ;;  %v1781_v50 = vld [vmem:[%s5698_s22 + $0x2f68] sm:$0xff] }
 0x33f   : > { %v1783_v52 = vld [vmem:[%s5698_s22 + $0x2f78] sm:$0xff] }
 0x340   : > { %4395 = vmatpush1.bf16.msra.mxu0 %v4394_v61  ;;  %v1740_v61 = vld [vmem:[%s5698_s22 + $0x2e20] sm:$0xff] }
 0x341   : > { %5163 = vmatpush1.bf16.msra.mxu1 %v5162_v62  ;;  %4397 = vmatprep.subr.bf16.mxu0 %v4396_v63  ;;  %v1738_v62 = vld [vmem:[%s5698_s22 + $0x2e10] sm:$0xff]  ;;  %v5184_v63 = vpack.c.bf16 %v1743_v56, %v1739_v55  ;;  %v4418_v5 = vpack.c.bf16 %v1740_v61, %v1736_v60  ;;  %v4436_v55 = vpack.c.bf16 %v1781_v50, %v1777_v49  ;;  %v1776_v56 = vld [vmem:[%s5698_s22 + $0x2f40] sm:$0xff]  ;;  %v1785_v61 = vld [vmem:[%s5698_s22 + $0x2f88] sm:$0xff] }
 0x342   : > { %5165 = vmatprep.subr.bf16.mxu1 %v5164_v3  ;;  %v1747_v3 = vld [vmem:[%s5698_s22 + $0x2e58] sm:$0xff]  ;;  %v5186_v6 = vpack.c.bf16 %v1742_v0, %v1738_v62  ;;  %v1782_v60 = vld [vmem:[%s5698_s22 + $0x2f70] sm:$0xff]  ;;  %v1789_v62 = vld [vmem:[%s5698_s22 + $0x2fa8] sm:$0xff] }
 0x343   : > { %v1791_v0 = vld [vmem:[%s5698_s22 + $0x2fb8] sm:$0xff] }
 0x344   : > { %4399 = vmatpush1.bf16.msra.mxu0 %v4398_v9  ;;  %v1748_v9 = vld [vmem:[%s5698_s22 + $0x2e60] sm:$0xff] }
 0x345   : > { %5167 = vmatpush1.bf16.msra.mxu1 %v5166_v10  ;;  %4401 = vmatprep.subr.bf16.mxu0 %v4400_v11  ;;  %v1746_v10 = vld [vmem:[%s5698_s22 + $0x2e50] sm:$0xff]  ;;  %v5188_v11 = vpack.c.bf16 %v1751_v4, %v1747_v3  ;;  %v4422_v17 = vpack.c.bf16 %v1748_v9, %v1744_v8  ;;  %v4440_v3 = vpack.c.bf16 %v1789_v62, %v1785_v61  ;;  %v1784_v4 = vld [vmem:[%s5698_s22 + $0x2f80] sm:$0xff]  ;;  %v1793_v9 = vld [vmem:[%s5698_s22 + $0x2fc8] sm:$0xff] }
 0x346   : > { %5169 = vmatprep.subr.bf16.mxu1 %v5168_v15  ;;  %v1755_v15 = vld [vmem:[%s5698_s22 + $0x2e98] sm:$0xff]  ;;  %v5190_v18 = vpack.c.bf16 %v1750_v12, %v1746_v10  ;;  %v1790_v8 = vld [vmem:[%s5698_s22 + $0x2fb0] sm:$0xff]  ;;  %v1797_v10 = vld [vmem:[%s5698_s22 + $0x2fe8] sm:$0xff] }
 0x347   : > { %v1799_v12 = vld [vmem:[%s5698_s22 + $0x2ff8] sm:$0xff] }
 0x348   : > { %4403 = vmatpush1.bf16.msra.mxu0 %v4402_v21  ;;  %v1756_v21 = vld [vmem:[%s5698_s22 + $0x2ea0] sm:$0xff] }
 0x349   : > { %5171 = vmatpush1.bf16.msra.mxu1 %v5170_v22  ;;  %4405 = vmatprep.subr.bf16.mxu0 %v4404_v23  ;;  %v1754_v22 = vld [vmem:[%s5698_s22 + $0x2e90] sm:$0xff]  ;;  %v5192_v23 = vpack.c.bf16 %v1759_v16, %v1755_v15  ;;  %v4426_v29 = vpack.c.bf16 %v1756_v21, %v1752_v20  ;;  %v4444_v15 = vpack.c.bf16 %v1797_v10, %v1793_v9  ;;  %v1792_v16 = vld [vmem:[%s5698_s22 + $0x2fc0] sm:$0xff] }
 0x34a   : > { %5173 = vmatprep.subr.bf16.mxu1 %v5172_v27  ;;  %v1763_v27 = vld [vmem:[%s5698_s22 + $0x2ed8] sm:$0xff]  ;;  %v5194_v30 = vpack.c.bf16 %v1758_v24, %v1754_v22  ;;  %v1798_v20 = vld [vmem:[%s5698_s22 + $0x2ff0] sm:$0xff]  ;;  %v1802_v24 = vlaneseq }
 0x34c   : > { %4407 = vmatpush1.bf16.msra.mxu0 %v4406_v33  ;;  %v1764_v33 = vld [vmem:[%s5698_s22 + $0x2ee0] sm:$0xff]  ;;  %v1803_v25 = vshrl.u32 %v1802_v24, 7 }
 0x34d   : > { %5175 = vmatpush1.bf16.msra.mxu1 %v5174_v34  ;;  %4409 = vmatprep.subr.bf16.mxu0 %v4408_v35  ;;  %v1762_v34 = vld [vmem:[%s5698_s22 + $0x2ed0] sm:$0xff]  ;;  %v5196_v35 = vpack.c.bf16 %v1767_v28, %v1763_v27  ;;  %v4430_v41 = vpack.c.bf16 %v1764_v33, %v1760_v32  ;;  %v1800_v27 = vld [vmem:[%s209_s28] sm:$0xf] }
 0x34e   : > { %5177 = vmatprep.subr.bf16.mxu1 %v5176_v39  ;;  %v1771_v39 = vld [vmem:[%s5698_s22 + $0x2f18] sm:$0xff]  ;;  %v5198_v42 = vpack.c.bf16 %v1766_v36, %v1762_v34  ;;  %v1804_v26 = vsub.s32 0, %v1803_v25  ;;  %v1812_v28 = vsub.s32 2, %v1803_v25 }
 0x350   : > { %4411 = vmatpush1.bf16.msra.mxu0 %v4410_v45  ;;  %v1772_v45 = vld [vmem:[%s5698_s22 + $0x2f20] sm:$0xff]  ;;  %v1813_v32 = vrot.slane %v1800_v27, %v1812_v28 }
 0x351   : > { %5179 = vmatpush1.bf16.msra.mxu1 %v5178_v46  ;;  %4413 = vmatprep.subr.bf16.mxu0 %v4412_v47  ;;  %v1770_v46 = vld [vmem:[%s5698_s22 + $0x2f10] sm:$0xff]  ;;  %v5200_v47 = vpack.c.bf16 %v1775_v40, %v1771_v39  ;;  %v4434_v53 = vpack.c.bf16 %v1772_v45, %v1768_v44 }
 0x352   : > { %5181 = vmatprep.subr.bf16.mxu1 %v5180_v51  ;;  %v1779_v51 = vld [vmem:[%s5698_s22 + $0x2f58] sm:$0xff]  ;;  %v5202_v54 = vpack.c.bf16 %v1774_v48, %v1770_v46 }
 0x354   : > { %4415 = vmatpush1.bf16.msra.mxu0 %v4414_v57  ;;  %v1780_v57 = vld [vmem:[%s5698_s22 + $0x2f60] sm:$0xff] }
 0x355   : > { %5183 = vmatpush1.bf16.msra.mxu1 %v5182_v58  ;;  %4417 = vmatprep.subr.bf16.mxu0 %v4416_v59  ;;  %v1778_v58 = vld [vmem:[%s5698_s22 + $0x2f50] sm:$0xff]  ;;  %v5204_v59 = vpack.c.bf16 %v1783_v52, %v1779_v51  ;;  %v4438_v1 = vpack.c.bf16 %v1780_v57, %v1776_v56 }
 0x356   : > { %5185 = vmatprep.subr.bf16.mxu1 %v5184_v63  ;;  %v1787_v63 = vld [vmem:[%s5698_s22 + $0x2f98] sm:$0xff]  ;;  %v5206_v2 = vpack.c.bf16 %v1782_v60, %v1778_v58 }
 0x358   : > { %4419 = vmatpush1.bf16.msra.mxu0 %v4418_v5  ;;  %v1788_v5 = vld [vmem:[%s5698_s22 + $0x2fa0] sm:$0xff] }
 0x359   : > { %5187 = vmatpush1.bf16.msra.mxu1 %v5186_v6  ;;  %4421 = vmatprep.subr.bf16.mxu0 %v4420_v7  ;;  %v1786_v6 = vld [vmem:[%s5698_s22 + $0x2f90] sm:$0xff]  ;;  %v5208_v7 = vpack.c.bf16 %v1791_v0, %v1787_v63  ;;  %v4442_v13 = vpack.c.bf16 %v1788_v5, %v1784_v4 }
 0x35a   : > { %5189 = vmatprep.subr.bf16.mxu1 %v5188_v11  ;;  %v1795_v11 = vld [vmem:[%s5698_s22 + $0x2fd8] sm:$0xff]  ;;  %v5210_v14 = vpack.c.bf16 %v1790_v8, %v1786_v6 }
 0x35c   : > { %4423 = vmatpush1.bf16.msra.mxu0 %v4422_v17  ;;  %v1796_v17 = vld [vmem:[%s5698_s22 + $0x2fe0] sm:$0xff] }
 0x35d   : > { %5191 = vmatpush1.bf16.msra.mxu1 %v5190_v18  ;;  %4425 = vmatprep.subr.bf16.mxu0 %v4424_v19  ;;  %v5212_v18 = vpack.c.bf16 %v1799_v12, %v1795_v11  ;;  %v1794_v19 = vld [vmem:[%s5698_s22 + $0x2fd0] sm:$0xff]  ;;  %v4446_v21 = vpack.c.bf16 %v1796_v17, %v1792_v16 }
 0x35e   : > { %5193 = vmatprep.subr.bf16.mxu1 %v5192_v23  ;;  %v5214_v22 = vpack.c.bf16 %v1798_v20, %v1794_v19  ;;  %v262_v23 = vld [vmem:[#allocation2 + $0xb0] sm:$0xff] }
 0x360   : > { %4427 = vmatpush1.bf16.msra.mxu0 %v4426_v29  ;;  %v1808_v29 = vsub.s32 1, %v1803_v25 }
 0x361   : > { %5195 = vmatpush1.bf16.msra.mxu1 %v5194_v30  ;;  %4429 = vmatprep.subr.bf16.mxu0 %v4428_v31  ;;  %v1816_v30 = vsub.s32 3, %v1803_v25  ;;  %v1805_v31 = vrot.slane %v1800_v27, %v1804_v26 }
 0x362   : > { %5197 = vmatprep.subr.bf16.mxu1 %v5196_v35  ;;  %v1809_v33 = vrot.slane %v1800_v27, %v1808_v29 }
 0x363   : > { %v1817_v34 = vrot.slane %v1800_v27, %v1816_v30 }
 0x364   : > { %4431 = vmatpush1.bf16.msra.mxu0 %v4430_v41 }
 0x365   : > { %5199 = vmatpush1.bf16.msra.mxu1 %v5198_v42  ;;  %4433 = vmatprep.subr.bf16.mxu0 %v4432_v43 }
 0x366   : > { %5201 = vmatprep.subr.bf16.mxu1 %v5200_v47 }
 0x368   : > { %4435 = vmatpush1.bf16.msra.mxu0 %v4434_v53 }
 0x369   : > { %5203 = vmatpush1.bf16.msra.mxu1 %v5202_v54  ;;  %4437 = vmatprep.subr.bf16.mxu0 %v4436_v55 }
 0x36a   : > { %5205 = vmatprep.subr.bf16.mxu1 %v5204_v59 }
 0x36c   : > { %4439 = vmatpush1.bf16.msra.mxu0 %v4438_v1 }
 0x36d   : > { %5207 = vmatpush1.bf16.msra.mxu1 %v5206_v2  ;;  %4441 = vmatprep.subr.bf16.mxu0 %v4440_v3 }
 0x36e   : > { %5209 = vmatprep.subr.bf16.mxu1 %v5208_v7 }
 0x370   : > { %4443 = vmatpush1.bf16.msra.mxu0 %v4442_v13 }
 0x371   : > { %5211 = vmatpush1.bf16.msra.mxu1 %v5210_v14  ;;  %4445 = vmatprep.subr.bf16.mxu0 %v4444_v15 }
 0x372   : > { %5213 = vmatprep.subr.bf16.mxu1 %v5212_v18 }
 0x374   : > { %4447 = vmatpush1.bf16.msra.mxu0 %v4446_v21 }
 0x375   : > { %5215 = vmatpush1.bf16.msra.mxu1 %v5214_v22 }
 0x377   : > { %2668 = vmatmul.mubr.f32.vlgmr.msra.gmra.mrb[0].mxu0 %v262_v23 }
 0x378   : > { %3520 = vmatmul.mubr.f32.vlgmr.msra.gmra.mrb[0].mxu1 %v262_v23 }
 0x44a   : > { %v2669_v35 = vpop.f32.mrb[0].mxu0 }
 0x44b   : > { %v5216_v36 = vadd.f32 %v2669_v35, %v1805_v31  ;;  %v3521_v37 = vpop.f32.mrb[0].mxu1  ;;  %v2671_v38 = vpop.f32.mrb[1].mxu0 }
 0x44c   : > { %v5218_v39 = vadd.f32 %v3521_v37, %v1813_v32  ;;  %v5217_v40 = vadd.f32 %v2671_v38, %v1809_v33  ;;  %v3523_v41 = vpop.f32.mrb[1].mxu1 }
 0x44d   : > { %vm3526_vm0 = vcmp.gt.f32.partialorder %v5216_v36, 0.0  ;;  %v3530_v42 = vmul.f32 0.1, %v5216_v36  ;;  %v5219_v43 = vadd.f32 %v3523_v41, %v1817_v34 }
 0x44e   : > { %vm3528_vm1 = vcmp.gt.f32.partialorder %v5218_v39, 0.0  ;;  %v3532_v44 = vmul.f32 0.1, %v5218_v39  ;;  %vm3527_vm2 = vcmp.gt.f32.partialorder %v5217_v40, 0.0  ;;  %v3531_v45 = vmul.f32 0.1, %v5217_v40 }
 0x44f   : > { %v3534_v46 = vsel %vm3526_vm0, %v5216_v36, %v3530_v42  ;;  %vm3529_vm3 = vcmp.gt.f32.partialorder %v5219_v43, 0.0  ;;  %v3533_v47 = vmul.f32 0.1, %v5219_v43 }
 0x450   : > { %3538 = vst [vmem:[%s236_s20] sm:$0xff] %v3534_v46  ;;  %v3536_v48 = vsel %vm3528_vm1, %v5218_v39, %v3532_v44  ;;  %v3535_v49 = vsel %vm3527_vm2, %v5217_v40, %v3531_v45 }
 0x451   : > { %3540 = vst [vmem:[%s236_s20 + $0x10] sm:$0xff] %v3536_v48  ;;  %3539 = vst [vmem:[%s236_s20 + $0x8] sm:$0xff] %v3535_v49  ;;  %v3537_v50 = vsel %vm3529_vm3, %v5219_v43, %v3533_v47 }
 0x452   : > { %3541 = vst [vmem:[%s236_s20 + $0x18] sm:$0xff] %v3537_v50 }
 0x453   : > { %5432 = shalt.err (!%p5429_p1)
}
 0x454   : > { %s5433_s17 = scalar_lea.hbm %s7246_s5, 512  ;;  %s5437_s21 = scalar_lea.hbm %s7292_s3, 2560 }
 0x455   : > { %p5434_p5 = scmp.ne.s32.totalorder %s7246_s5, %s5433_s17  ;;  %p5438_p6 = scmp.lt.u32.totalorder %s7246_s5, %s7292_s3 }
 0x456   : > { %p5439_p8 = scmp.lt.u32.totalorder %s5437_s21, %s5433_s17  ;;  %p5441_p11 = scmp.lt.u32.totalorder %s5433_s17, %s7246_s5 }
 0x457   : > { %p5435_p4 = pnand %p5434_p5, %p7313_p3 }
 0x458   : > { %p5440_p13 = por %p5439_p8, %p5438_p6 }
 0x459   : > { %p5436_p2 = pneg %p5435_p4 }
 0x45a   : > { %p5442_p0 = por %p5441_p11, %p5440_p13 }
 0x45c   : > { %p5443_p10 = pnand %p5442_p0, %p5436_p2 }
 0x45e   : > { %5446 = shalt.err (!%p5443_p10)
}
 0x45f   : > { %5274 = dma.vmem_to_hbm [thread:$0]  (%p7313_p3), %s7248_s23, 512, %s7246_s5, %s3543_s24  }
 0x460 PF: > { %p5294_p12 = scmp.ge.s32.totalorder %s5489_s15, 2  ;;  %s3569_s28 = sand.u32 1, %s5477_s12  }
 0x461   : > { %p7314_p9 = scmp.ne.s32.totalorder %s7303_s29, 0  ;;  %s3570_s4 = scalar_lea.sflag [#allocation4], %s3569_s28 }
 0x463   : > { %p5288_p7 = pnand %p5294_p12, %p7314_p9 }
 0x465   : > { %5472 = dma.done.wait (!%p5288_p7), %s3570_s4, 512  }
 0x466   : > { %5474 = vsyncadd (!%p5288_p7), %s3570_s4, 4294966784  ;;  %p17_p1 = scmp.ge.s32.totalorder %s5539_s16, 7   ;;  %s7315_s12 = smov %s5481_s13 }
 0x467   : > { %s7316_s13 = smov %s5485_s14  ;;  %s7317_s14 = smov %s5549_s19 }
 0x468   : > { %s7318_s15 = smov %s5539_s16  ;;  %19 = sbr.rel (!%p17_p1) target bundleno = 6 (0x6), region = 93 }
 0x46f   :  { %3575 = vsyncpa [#allocation3], 1 }
 0x470   :  { %3577 = vsyncpa [#allocation3 + $0x1], 1 }
 0x471   :  { %3578 = vsyncpa [#allocation6], 1 }
 0x472   :  { %3580 = vsyncpa [#allocation6 + $0x1], 1 }
 0x473   :  { %3581 = vsyncpa [#allocation4], 1 }
 0x474   :  { %3583 = vsyncpa [#allocation4 + $0x1], 1 }

</bundles_post_ra>
